<compile_context>
chip_gen: v6e
topology: v6e:2x2x1
jax: 0.10.0
libtpu: 0.0.40
codegen_flags: <defaults>
</compile_context>

<pallas_src>
import jax
import jax.numpy as jnp
from jax.experimental import pallas as pl
from jax.experimental.pallas import tpu as pltpu


def _round_up(x, m):
    return (x + m - 1) // m * m


# --------------------------------------------------------------------------
# conv1 patch prep (XLA, one pass over the tiny 784-element input image).
# Positions are ordered in conv2's parity-quad layout so the fused kernel can
# park conv1's pooled output directly in conv2's input layout.
# --------------------------------------------------------------------------
def _conv1_patches(x_nhw):
    """x_nhw: (N, 28, 28).  Returns (N, 4, 256, 16) patches where
       dim1 = conv1 pool phase (a, b) in {0,1}^2           (index 2*a + b)
       dim2 = quad*64 + Qi*8 + Qj  (quad = parity of the padded-16 grid coords)
       dim3 = 9 conv taps (3*di + dj), then a ones column (bias), then zeros.
    Padding positions (conv2's zero border) get an all-zero patch row, so the
    kernel's conv1 output is exactly zero there."""
    n = x_nhw.shape[0]
    xp = jnp.pad(x_nhw, ((0, 0), (1, 1), (1, 1)))                  # (N, 30, 30)
    phases = []
    for a in (0, 1):
        for b in (0, 1):
            taps = [xp[:, a + di:a + di + 28:2, b + dj:b + dj + 28:2]
                    for di in range(3) for dj in range(3)]
            phases.append(jnp.stack(taps, axis=-1))                # (N, 14, 14, 9)
    pr = jnp.stack(phases, axis=1)                                 # (N, 4, 14, 14, 9)

    out = jnp.zeros((n, 4, 4, 8, 8, 16), x_nhw.dtype)
    for qr in (0, 1):                    # row parity of the padded 16x16 grid
        for qc in (0, 1):                # col parity
            quad = 2 * qr + qc
            oi, oj = 1 - qr, 1 - qc      # where the real 7x7 block sits in the 8x8 quad
            blk = pr[:, :, 1 - qr::2, 1 - qc::2, :]                # (N, 4, 7, 7, 9)
            out = out.at[:, :, quad, oi:oi + 7, oj:oj + 7, :9].set(blk)
            out = out.at[:, :, quad, oi:oi + 7, oj:oj + 7, 9].set(1.0)
    return out.reshape(n, 4, 256, 16)


# --------------------------------------------------------------------------
# fused conv1 + ReLU + pool + conv2 + ReLU + pool kernel (batch-tiled)
# --------------------------------------------------------------------------
def _conv_block_kernel(p1_ref, w1_ref, w2_ref, b2_ref, o_ref, h1q_ref):
    bimg = p1_ref.shape[0]

    # ---- conv1: one MXU matmul over all pool phases / positions (bias folded
    #      in via the ones column, K padded to 16).
    p1 = p1_ref[...].reshape(bimg * 4 * 256, 16)
    y1 = jnp.dot(p1, w1_ref[...], preferred_element_type=jnp.float32)
    y1 = y1.reshape(bimg, 4, 256, 32)
    h1 = jnp.maximum(jnp.max(y1, axis=1), 0.0)          # 2x2 maxpool (phases) + ReLU
    # Park it in the parity-quad scratch; rows 64..71 stay zero (slab overrun pad,
    # only ever read by junk output columns).
    h1q_ref[:, :, :64, :] = h1.reshape(bimg, 4, 64, 32).astype(h1q_ref.dtype)
    h1q_ref[:, :, 64:, :] = jnp.zeros((bimg, 4, 8, 32), h1q_ref.dtype)

    # ---- conv2: one K=288 matmul per pool phase.  Every tap of every phase is
    #      a contiguous sublane slab of one quad; 9 slabs are concatenated
    #      along K in VMEM.
    w2 = w2_ref[...]                                     # (288, 64), read once
    pooled = None
    for pa in (0, 1):                                    # conv2-output row parity
        for pb in (0, 1):                                # conv2-output col parity
            slabs = []
            for di in range(3):
                rp, r0 = (pa + di) % 2, (pa + di) // 2
                for dj in range(3):
                    cp, c0 = (pb + dj) % 2, (pb + dj) // 2
                    start = r0 * 8 + c0                  # in {0, 1, 8, 9}
                    slabs.append(h1q_ref[:, 2 * rp + cp, start:start + 56, :])
            patch = jnp.concatenate(slabs, axis=-1)      # (B, 56, 288)
            y = jnp.dot(patch.reshape(bimg * 56, 288), w2,
                        preferred_element_type=jnp.float32)
            pooled = y if pooled is None else jnp.maximum(pooled, y)

    h2 = jnp.maximum(pooled.reshape(bimg, 56, 64) + b2_ref[...], 0.0)
    o_ref[...] = h2.astype(o_ref.dtype)                  # rows = i*8 + j (j==7 junk)


def conv_block(patches, w1ext, w2, b2, *, b_img):
    n = patches.shape[0]
    assert n % b_img == 0
    return pl.pallas_call(
        _conv_block_kernel,
        out_shape=jax.ShapeDtypeStruct((n, 56, 64), jnp.bfloat16),
        grid=(n // b_img,),
        in_specs=[
            pl.BlockSpec((b_img, 4, 256, 16), lambda i: (i, 0, 0, 0)),
            pl.BlockSpec((16, 32), lambda i: (0, 0)),
            pl.BlockSpec((288, 64), lambda i: (0, 0)),
            pl.BlockSpec((1, 64), lambda i: (0, 0)),
        ],
        out_specs=pl.BlockSpec((b_img, 56, 64), lambda i: (i, 0, 0)),
        scratch_shapes=[pltpu.VMEM((b_img, 4, 72, 32), jnp.bfloat16)],
        compiler_params=pltpu.CompilerParams(
            dimension_semantics=("parallel",)),
    )(patches, w1ext, w2, b2)


# --------------------------------------------------------------------------
# fused fc1 + ReLU + fc2 kernel (M tiled, weights resident, lane-dense output)
# --------------------------------------------------------------------------
def _fc_kernel(x_ref, w1_ref, b1_ref, w2_ref, b2_ref, o_ref):
    h = jnp.dot(x_ref[...], w1_ref[...], preferred_element_type=jnp.float32)
    h = jnp.maximum(h + b1_ref[...], 0.0)
    y = jnp.dot(h.astype(w2_ref.dtype), w2_ref[...],
                preferred_element_type=jnp.float32)
    o_ref[...] = y + b2_ref[...]


def fc1_relu_fc2(x, w1, b1, w2, b2):
    m, k = x.shape
    n1, n2 = w1.shape[1], w2.shape[1]
    # <= ~8 rows of pad waste; >=2 tiles once m >= 16 (keeps both TCs busy).
    tiles = 1 if m < 16 else max(2, pl.cdiv(m, 256))
    tm = _round_up(pl.cdiv(m, tiles), 8)
    m_pad = tm * tiles
    if m_pad != m:
        x = jnp.pad(x, ((0, m_pad - m), (0, 0)))
    out = pl.pallas_call(
        _fc_kernel,
        out_shape=jax.ShapeDtypeStruct((m_pad, n2), jnp.float32),
        grid=(tiles,),
        in_specs=[
            pl.BlockSpec((tm, k), lambda i: (i, 0)),
            pl.BlockSpec((k, n1), lambda i: (0, 0)),
            pl.BlockSpec((1, n1), lambda i: (0, 0)),
            pl.BlockSpec((n1, n2), lambda i: (0, 0)),
            pl.BlockSpec((1, n2), lambda i: (0, 0)),
        ],
        out_specs=pl.BlockSpec((tm, n2), lambda i: (i, 0)),
        compiler_params=pltpu.CompilerParams(
            dimension_semantics=("parallel",)),
    )(x, w1, b1, w2, b2)
    return out[:m]


# ------------------------------ parameters --------------------------------
def init_params(key):
    """Deterministic synthetic parameters matching SimpleCNN's shapes."""
    ks = jax.random.split(key, 8)

    def dense(k, fan_in, shape):
        return jax.random.normal(k, shape, jnp.float32) / jnp.sqrt(float(fan_in))

    return {
        "w1": dense(ks[0], 9 * 1, (3, 3, 1, 32)),           # conv1 (HWIO)
        "b1": dense(ks[1], 9 * 1, (32,)),
        "w2": dense(ks[2], 9 * 32, (3, 3, 32, 64)),         # conv2 (HWIO)
        "b2": dense(ks[3], 9 * 32, (64,)),
        "wf1": dense(ks[4], 64 * 7 * 7, (64 * 7 * 7, 128)),  # torch NCHW-flat row order
        "bf1": dense(ks[5], 64 * 7 * 7, (128,)),
        "wf2": dense(ks[6], 128, (128, 10)),
        "bf2": dense(ks[7], 128, (10,)),
    }


def prepare_params(params):
    """Reshape / permute / pad the torch-layout parameters for the kernels."""
    bf = jnp.bfloat16
    # conv1: 9 taps (3*di+dj) + bias row (ones-column trick) + zero pad to K=16.
    w1ext = jnp.zeros((16, 32), jnp.float32)
    w1ext = w1ext.at[:9].set(params["w1"].reshape(9, 32))
    w1ext = w1ext.at[9].set(params["b1"])
    # conv2: (3,3,32,64) -> (288,64); K index = (3*di+dj)*32 + cin (matches kernel concat).
    w2 = params["w2"].reshape(288, 64)
    b2 = params["b2"].reshape(1, 64)
    # fc1: remap torch's NCHW-flat rows to the conv kernel's (i*8+j, c) flatten,
    # inserting zero rows at the junk column positions (j == 7) -> K 3136 -> 3584.
    i2 = jnp.arange(7)[:, None, None]
    j2 = jnp.arange(7)[None, :, None]
    c = jnp.arange(64)[None, None, :]
    new_rows = ((i2 * 8 + j2) * 64 + c).reshape(-1)
    old_rows = (c * 49 + i2 * 7 + j2).reshape(-1)
    wf1 = jnp.zeros((56 * 64, 128), jnp.float32).at[new_rows].set(params["wf1"][old_rows])
    bf1 = params["bf1"].reshape(1, 128)
    # fc2: pad output dim 10 -> 128 so the final store is lane-dense.
    wf2 = jnp.zeros((128, 128), jnp.float32).at[:, :10].set(params["wf2"])
    bf2 = jnp.zeros((1, 128), jnp.float32).at[0, :10].set(params["bf2"])
    return {"w1": w1ext.astype(bf), "w2": w2.astype(bf), "b2": b2.astype(jnp.float32),
            "wf1": wf1.astype(bf), "bf1": bf1.astype(jnp.float32),
            "wf2": wf2.astype(bf), "bf2": bf2.astype(jnp.float32)}


# -------------------------------- forward ----------------------------------
def simple_cnn_forward(prep, x_nchw):
    n = x_nchw.shape[0]
    assert x_nchw.shape[1:] == (1, 28, 28), "SimpleCNN (fc1 = 64*7*7) implies 1x28x28 inputs"
    # conv batch tile: >=2 grid steps when possible, <=8 images per step.
    tiles = 1 if n < 2 else max(2, pl.cdiv(n, 8))
    b_img = pl.cdiv(n, tiles)
    n_pad = b_img * tiles
    x = x_nchw[:, 0].astype(jnp.bfloat16)                     # (N, 28, 28) bf16
    if n_pad != n:
        x = jnp.pad(x, ((0, n_pad - n), (0, 0), (0, 0)))

    patches = _conv1_patches(x)                                # (n_pad, 4, 256, 16)
    h2 = conv_block(patches, prep["w1"], prep["w2"], prep["b2"], b_img=b_img)
    flat = h2.reshape(n_pad, 56 * 64)                          # contiguous -> no copy
    logits = fc1_relu_fc2(flat, prep["wf1"], prep["bf1"], prep["wf2"], prep["bf2"])
    return logits[:n, :10]                                     # drop batch / lane padding


def reference_forward(params, x_nchw):
    """Pure-JAX reference (lax.conv / reduce_window) with the same bf16-input /
    f32-accumulate quantisation points as the Pallas path."""
    bf = jnp.bfloat16
    dn = ("NHWC", "HWIO", "NHWC")

    def conv_relu(x, w, b):
        y = jax.lax.conv_general_dilated(
            x.astype(bf), w.astype(bf), (1, 1), ((1, 1), (1, 1)),
            dimension_numbers=dn, preferred_element_type=jnp.float32)
        return jax.nn.relu(y + b)

    def pool(x):
        return jax.lax.reduce_window(x, -jnp.inf, jax.lax.max,
                                     (1, 2, 2, 1), (1, 2, 2, 1), "VALID")

    x = jnp.transpose(x_nchw, (0, 2, 3, 1))
    h = pool(conv_relu(x, params["w1"], params["b1"]))
    h = pool(conv_relu(h, params["w2"], params["b2"]))
    n = x.shape[0]
    flat = jnp.transpose(h, (0, 3, 1, 2)).reshape(n, 64 * 7 * 7)   # torch NCHW flatten
    h = jax.nn.relu(jnp.dot(flat.astype(bf), params["wf1"].astype(bf),
                            preferred_element_type=jnp.float32) + params["bf1"])
    return jnp.dot(h.astype(bf), params["wf2"].astype(bf),
                   preferred_element_type=jnp.float32) + params["bf2"]


if __name__ == "__main__":
    key = jax.random.PRNGKey(0)
    kx, kp = jax.random.split(key)

    # SimpleCNN's fc1 (64*7*7) implies 28x28 single-channel inputs (NCHW).
    x = jax.random.normal(kx, (2, 1, 28, 28), jnp.float32)
    params = init_params(kp)
    prep = prepare_params(params)

    fwd = jax.jit(simple_cnn_forward)
    out = jax.block_until_ready(fwd(prep, x))
    ref = jax.block_until_ready(reference_forward(params, x))

    assert out.shape == (2, 10), out.shape
    err = float(jnp.max(jnp.abs(out - ref)))
    assert jnp.allclose(out, ref, rtol=2e-2, atol=2e-2), (
        f"mismatch vs reference (max abs err {err})")
    print("KERNEL_OK")
</pallas_src>

<mosaic_0001>
module attributes {stable_mosaic.version = 11 : i64} {
  func.func @_conv_block_kernel(%arg0: i32, %arg1: memref<1x4x256x16xbf16, #tpu.memory_space<vmem>>, %arg2: memref<16x32xbf16, #tpu.memory_space<vmem>>, %arg3: memref<288x64xbf16, #tpu.memory_space<vmem>>, %arg4: memref<1x64xf32, #tpu.memory_space<vmem>>, %arg5: memref<1x56x64xbf16, #tpu.memory_space<vmem>>, %arg6: memref<1x4x72x32xbf16, #tpu.memory_space<vmem>>) attributes {dimension_semantics = [#tpu.dimension_semantics<parallel>], iteration_bounds = array<i64: 2>, scalar_prefetch = 0 : i64, scratch_operands = 1 : i64, tpu.core_type = #tpu.core_type<tc>, window_params = [{transform_indices = @transform_0, window_bounds = array<i64: 1, 4, 256, 16>}, {pipeline_mode = #tpu.pipeline_mode<synchronous>, transform_indices = @transform_1, window_bounds = array<i64: 16, 32>}, {pipeline_mode = #tpu.pipeline_mode<synchronous>, transform_indices = @transform_2, window_bounds = array<i64: 288, 64>}, {pipeline_mode = #tpu.pipeline_mode<synchronous>, transform_indices = @transform_3, window_bounds = array<i64: 1, 64>}, {transform_indices = @transform_4, window_bounds = array<i64: 1, 56, 64>}]} {
    %c0 = arith.constant 0 : index
    %c0_0 = arith.constant 0 : index
    %c0_1 = arith.constant 0 : index
    %c0_2 = arith.constant 0 : index
    %0 = vector.load %arg1[%c0, %c0_0, %c0_1, %c0_2] : memref<1x4x256x16xbf16, #tpu.memory_space<vmem>>, vector<1x4x256x16xbf16>
    %1 = vector.shape_cast %0 : vector<1x4x256x16xbf16> to vector<1024x16xbf16>
    %c0_3 = arith.constant 0 : index
    %c0_4 = arith.constant 0 : index
    %2 = vector.load %arg2[%c0_3, %c0_4] : memref<16x32xbf16, #tpu.memory_space<vmem>>, vector<16x32xbf16>
    %cst = arith.constant dense<0.000000e+00> : vector<1024x32xf32>
    %3 = tpu.matmul %1, %2, %cst {dimension_numbers = #tpu.dot_dimension_numbers<[1], [0], [0], [1], [0, 0, 1, 1], [], []>} : vector<1024x16xbf16>, vector<16x32xbf16>, vector<1024x32xf32> -> vector<1024x32xf32>
    %4 = vector.shape_cast %3 : vector<1024x32xf32> to vector<1x4x256x32xf32>
    %cst_5 = arith.constant dense<0xFF800000> : vector<1x256x32xf32>
    %5 = vector.multi_reduction <maximumf>, %4, %cst_5 [1] : vector<1x4x256x32xf32> to vector<1x256x32xf32>
    %cst_6 = arith.constant 0.000000e+00 : f32
    %6 = vector.broadcast %cst_6 : f32 to vector<1x256x32xf32>
    %7 = arith.maximumf %5, %6 : vector<1x256x32xf32>
    %8 = vector.shape_cast %7 : vector<1x256x32xf32> to vector<1x4x64x32xf32>
    %9 = arith.truncf %8 : vector<1x4x64x32xf32> to vector<1x4x64x32xbf16>
    %c0_7 = arith.constant 0 : index
    %c0_8 = arith.constant 0 : index
    %c0_9 = arith.constant 0 : index
    %c0_10 = arith.constant 0 : index
    %10 = vector.load %arg6[%c0_7, %c0_8, %c0_9, %c0_10] : memref<1x4x72x32xbf16, #tpu.memory_space<vmem>>, vector<1x4x64x32xbf16>
    tpu.vector_store %arg6[%c0_7, %c0_8, %c0_9, %c0_10], %9 {strides = array<i32>} : memref<1x4x72x32xbf16, #tpu.memory_space<vmem>>, vector<1x4x64x32xbf16>,
    %cst_11 = arith.constant 0.000000e+00 : bf16
    %11 = vector.broadcast %cst_11 : bf16 to vector<1x4x8x32xbf16>
    %c0_12 = arith.constant 0 : index
    %c0_13 = arith.constant 0 : index
    %c64 = arith.constant 64 : index
    %c0_14 = arith.constant 0 : index
    %12 = vector.load %arg6[%c0_12, %c0_13, %c64, %c0_14] : memref<1x4x72x32xbf16, #tpu.memory_space<vmem>>, vector<1x4x8x32xbf16>
    tpu.vector_store %arg6[%c0_12, %c0_13, %c64, %c0_14], %11 {strides = array<i32>} : memref<1x4x72x32xbf16, #tpu.memory_space<vmem>>, vector<1x4x8x32xbf16>,
    %c0_15 = arith.constant 0 : index
    %c0_16 = arith.constant 0 : index
    %13 = vector.load %arg3[%c0_15, %c0_16] : memref<288x64xbf16, #tpu.memory_space<vmem>>, vector<288x64xbf16>
    %c0_17 = arith.constant 0 : index
    %c0_18 = arith.constant 0 : index
    %c0_19 = arith.constant 0 : index
    %c0_20 = arith.constant 0 : index
    %14 = vector.load %arg6[%c0_17, %c0_18, %c0_19, %c0_20] : memref<1x4x72x32xbf16, #tpu.memory_space<vmem>>, vector<1x1x56x32xbf16>
    %15 = vector.shape_cast %14 : vector<1x1x56x32xbf16> to vector<1x56x32xbf16>
    %c0_21 = arith.constant 0 : index
    %c1 = arith.constant 1 : index
    %c0_22 = arith.constant 0 : index
    %c0_23 = arith.constant 0 : index
    %16 = vector.load %arg6[%c0_21, %c1, %c0_22, %c0_23] : memref<1x4x72x32xbf16, #tpu.memory_space<vmem>>, vector<1x1x56x32xbf16>
    %17 = vector.shape_cast %16 : vector<1x1x56x32xbf16> to vector<1x56x32xbf16>
    %c0_24 = arith.constant 0 : index
    %c0_25 = arith.constant 0 : index
    %c1_26 = arith.constant 1 : index
    %c0_27 = arith.constant 0 : index
    %18 = vector.load %arg6[%c0_24, %c0_25, %c1_26, %c0_27] : memref<1x4x72x32xbf16, #tpu.memory_space<vmem>>, vector<1x1x56x32xbf16>
    %19 = vector.shape_cast %18 : vector<1x1x56x32xbf16> to vector<1x56x32xbf16>
    %c0_28 = arith.constant 0 : index
    %c2 = arith.constant 2 : index
    %c0_29 = arith.constant 0 : index
    %c0_30 = arith.constant 0 : index
    %20 = vector.load %arg6[%c0_28, %c2, %c0_29, %c0_30] : memref<1x4x72x32xbf16, #tpu.memory_space<vmem>>, vector<1x1x56x32xbf16>
    %21 = vector.shape_cast %20 : vector<1x1x56x32xbf16> to vector<1x56x32xbf16>
    %c0_31 = arith.constant 0 : index
    %c3 = arith.constant 3 : index
    %c0_32 = arith.constant 0 : index
    %c0_33 = arith.constant 0 : index
    %22 = vector.load %arg6[%c0_31, %c3, %c0_32, %c0_33] : memref<1x4x72x32xbf16, #tpu.memory_space<vmem>>, vector<1x1x56x32xbf16>
    %23 = vector.shape_cast %22 : vector<1x1x56x32xbf16> to vector<1x56x32xbf16>
    %c0_34 = arith.constant 0 : index
    %c2_35 = arith.constant 2 : index
    %c1_36 = arith.constant 1 : index
    %c0_37 = arith.constant 0 : index
    %24 = vector.load %arg6[%c0_34, %c2_35, %c1_36, %c0_37] : memref<1x4x72x32xbf16, #tpu.memory_space<vmem>>, vector<1x1x56x32xbf16>
    %25 = vector.shape_cast %24 : vector<1x1x56x32xbf16> to vector<1x56x32xbf16>
    %c0_38 = arith.constant 0 : index
    %c0_39 = arith.constant 0 : index
    %c8 = arith.constant 8 : index
    %c0_40 = arith.constant 0 : index
    %26 = vector.load %arg6[%c0_38, %c0_39, %c8, %c0_40] : memref<1x4x72x32xbf16, #tpu.memory_space<vmem>>, vector<1x1x56x32xbf16>
    %27 = vector.shape_cast %26 : vector<1x1x56x32xbf16> to vector<1x56x32xbf16>
    %c0_41 = arith.constant 0 : index
    %c1_42 = arith.constant 1 : index
    %c8_43 = arith.constant 8 : index
    %c0_44 = arith.constant 0 : index
    %28 = vector.load %arg6[%c0_41, %c1_42, %c8_43, %c0_44] : memref<1x4x72x32xbf16, #tpu.memory_space<vmem>>, vector<1x1x56x32xbf16>
    %29 = vector.shape_cast %28 : vector<1x1x56x32xbf16> to vector<1x56x32xbf16>
    %c0_45 = arith.constant 0 : index
    %c0_46 = arith.constant 0 : index
    %c9 = arith.constant 9 : index
    %c0_47 = arith.constant 0 : index
    %30 = vector.load %arg6[%c0_45, %c0_46, %c9, %c0_47] : memref<1x4x72x32xbf16, #tpu.memory_space<vmem>>, vector<1x1x56x32xbf16>
    %31 = vector.shape_cast %30 : vector<1x1x56x32xbf16> to vector<1x56x32xbf16>
    %32 = tpu.concatenate %15, %17, %19, %21, %23, %25, %27, %29, %31 in 2 : vector<1x56x32xbf16>, vector<1x56x32xbf16>, vector<1x56x32xbf16>, vector<1x56x32xbf16>, vector<1x56x32xbf16>, vector<1x56x32xbf16>, vector<1x56x32xbf16>, vector<1x56x32xbf16>, vector<1x56x32xbf16> -> vector<1x56x288xbf16>
    %33 = vector.shape_cast %32 : vector<1x56x288xbf16> to vector<56x288xbf16>
    %cst_48 = arith.constant dense<0.000000e+00> : vector<56x64xf32>
    %34 = tpu.matmul %33, %13, %cst_48 {dimension_numbers = #tpu.dot_dimension_numbers<[1], [0], [0], [1], [0, 0, 1, 1], [], []>} : vector<56x288xbf16>, vector<288x64xbf16>, vector<56x64xf32> -> vector<56x64xf32>
    %c0_49 = arith.constant 0 : index
    %c1_50 = arith.constant 1 : index
    %c0_51 = arith.constant 0 : index
    %c0_52 = arith.constant 0 : index
    %35 = vector.load %arg6[%c0_49, %c1_50, %c0_51, %c0_52] : memref<1x4x72x32xbf16, #tpu.memory_space<vmem>>, vector<1x1x56x32xbf16>
    %36 = vector.shape_cast %35 : vector<1x1x56x32xbf16> to vector<1x56x32xbf16>
    %c0_53 = arith.constant 0 : index
    %c0_54 = arith.constant 0 : index
    %c1_55 = arith.constant 1 : index
    %c0_56 = arith.constant 0 : index
    %37 = vector.load %arg6[%c0_53, %c0_54, %c1_55, %c0_56] : memref<1x4x72x32xbf16, #tpu.memory_space<vmem>>, vector<1x1x56x32xbf16>
    %38 = vector.shape_cast %37 : vector<1x1x56x32xbf16> to vector<1x56x32xbf16>
    %c0_57 = arith.constant 0 : index
    %c1_58 = arith.constant 1 : index
    %c1_59 = arith.constant 1 : index
    %c0_60 = arith.constant 0 : index
    %39 = vector.load %arg6[%c0_57, %c1_58, %c1_59, %c0_60] : memref<1x4x72x32xbf16, #tpu.memory_space<vmem>>, vector<1x1x56x32xbf16>
    %40 = vector.shape_cast %39 : vector<1x1x56x32xbf16> to vector<1x56x32xbf16>
    %c0_61 = arith.constant 0 : index
    %c3_62 = arith.constant 3 : index
    %c0_63 = arith.constant 0 : index
    %c0_64 = arith.constant 0 : index
    %41 = vector.load %arg6[%c0_61, %c3_62, %c0_63, %c0_64] : memref<1x4x72x32xbf16, #tpu.memory_space<vmem>>, vector<1x1x56x32xbf16>
    %42 = vector.shape_cast %41 : vector<1x1x56x32xbf16> to vector<1x56x32xbf16>
    %c0_65 = arith.constant 0 : index
    %c2_66 = arith.constant 2 : index
    %c1_67 = arith.constant 1 : index
    %c0_68 = arith.constant 0 : index
    %43 = vector.load %arg6[%c0_65, %c2_66, %c1_67, %c0_68] : memref<1x4x72x32xbf16, #tpu.memory_space<vmem>>, vector<1x1x56x32xbf16>
    %44 = vector.shape_cast %43 : vector<1x1x56x32xbf16> to vector<1x56x32xbf16>
    %c0_69 = arith.constant 0 : index
    %c3_70 = arith.constant 3 : index
    %c1_71 = arith.constant 1 : index
    %c0_72 = arith.constant 0 : index
    %45 = vector.load %arg6[%c0_69, %c3_70, %c1_71, %c0_72] : memref<1x4x72x32xbf16, #tpu.memory_space<vmem>>, vector<1x1x56x32xbf16>
    %46 = vector.shape_cast %45 : vector<1x1x56x32xbf16> to vector<1x56x32xbf16>
    %c0_73 = arith.constant 0 : index
    %c1_74 = arith.constant 1 : index
    %c8_75 = arith.constant 8 : index
    %c0_76 = arith.constant 0 : index
    %47 = vector.load %arg6[%c0_73, %c1_74, %c8_75, %c0_76] : memref<1x4x72x32xbf16, #tpu.memory_space<vmem>>, vector<1x1x56x32xbf16>
    %48 = vector.shape_cast %47 : vector<1x1x56x32xbf16> to vector<1x56x32xbf16>
    %c0_77 = arith.constant 0 : index
    %c0_78 = arith.constant 0 : index
    %c9_79 = arith.constant 9 : index
    %c0_80 = arith.constant 0 : index
    %49 = vector.load %arg6[%c0_77, %c0_78, %c9_79, %c0_80] : memref<1x4x72x32xbf16, #tpu.memory_space<vmem>>, vector<1x1x56x32xbf16>
    %50 = vector.shape_cast %49 : vector<1x1x56x32xbf16> to vector<1x56x32xbf16>
    %c0_81 = arith.constant 0 : index
    %c1_82 = arith.constant 1 : index
    %c9_83 = arith.constant 9 : index
    %c0_84 = arith.constant 0 : index
    %51 = vector.load %arg6[%c0_81, %c1_82, %c9_83, %c0_84] : memref<1x4x72x32xbf16, #tpu.memory_space<vmem>>, vector<1x1x56x32xbf16>
    %52 = vector.shape_cast %51 : vector<1x1x56x32xbf16> to vector<1x56x32xbf16>
    %53 = tpu.concatenate %36, %38, %40, %42, %44, %46, %48, %50, %52 in 2 : vector<1x56x32xbf16>, vector<1x56x32xbf16>, vector<1x56x32xbf16>, vector<1x56x32xbf16>, vector<1x56x32xbf16>, vector<1x56x32xbf16>, vector<1x56x32xbf16>, vector<1x56x32xbf16>, vector<1x56x32xbf16> -> vector<1x56x288xbf16>
    %54 = vector.shape_cast %53 : vector<1x56x288xbf16> to vector<56x288xbf16>
    %cst_85 = arith.constant dense<0.000000e+00> : vector<56x64xf32>
    %55 = tpu.matmul %54, %13, %cst_85 {dimension_numbers = #tpu.dot_dimension_numbers<[1], [0], [0], [1], [0, 0, 1, 1], [], []>} : vector<56x288xbf16>, vector<288x64xbf16>, vector<56x64xf32> -> vector<56x64xf32>
    %56 = arith.maximumf %34, %55 : vector<56x64xf32>
    %c0_86 = arith.constant 0 : index
    %c2_87 = arith.constant 2 : index
    %c0_88 = arith.constant 0 : index
    %c0_89 = arith.constant 0 : index
    %57 = vector.load %arg6[%c0_86, %c2_87, %c0_88, %c0_89] : memref<1x4x72x32xbf16, #tpu.memory_space<vmem>>, vector<1x1x56x32xbf16>
    %58 = vector.shape_cast %57 : vector<1x1x56x32xbf16> to vector<1x56x32xbf16>
    %c0_90 = arith.constant 0 : index
    %c3_91 = arith.constant 3 : index
    %c0_92 = arith.constant 0 : index
    %c0_93 = arith.constant 0 : index
    %59 = vector.load %arg6[%c0_90, %c3_91, %c0_92, %c0_93] : memref<1x4x72x32xbf16, #tpu.memory_space<vmem>>, vector<1x1x56x32xbf16>
    %60 = vector.shape_cast %59 : vector<1x1x56x32xbf16> to vector<1x56x32xbf16>
    %c0_94 = arith.constant 0 : index
    %c2_95 = arith.constant 2 : index
    %c1_96 = arith.constant 1 : index
    %c0_97 = arith.constant 0 : index
    %61 = vector.load %arg6[%c0_94, %c2_95, %c1_96, %c0_97] : memref<1x4x72x32xbf16, #tpu.memory_space<vmem>>, vector<1x1x56x32xbf16>
    %62 = vector.shape_cast %61 : vector<1x1x56x32xbf16> to vector<1x56x32xbf16>
    %c0_98 = arith.constant 0 : index
    %c0_99 = arith.constant 0 : index
    %c8_100 = arith.constant 8 : index
    %c0_101 = arith.constant 0 : index
    %63 = vector.load %arg6[%c0_98, %c0_99, %c8_100, %c0_101] : memref<1x4x72x32xbf16, #tpu.memory_space<vmem>>, vector<1x1x56x32xbf16>
    %64 = vector.shape_cast %63 : vector<1x1x56x32xbf16> to vector<1x56x32xbf16>
    %c0_102 = arith.constant 0 : index
    %c1_103 = arith.constant 1 : index
    %c8_104 = arith.constant 8 : index
    %c0_105 = arith.constant 0 : index
    %65 = vector.load %arg6[%c0_102, %c1_103, %c8_104, %c0_105] : memref<1x4x72x32xbf16, #tpu.memory_space<vmem>>, vector<1x1x56x32xbf16>
    %66 = vector.shape_cast %65 : vector<1x1x56x32xbf16> to vector<1x56x32xbf16>
    %c0_106 = arith.constant 0 : index
    %c0_107 = arith.constant 0 : index
    %c9_108 = arith.constant 9 : index
    %c0_109 = arith.constant 0 : index
    %67 = vector.load %arg6[%c0_106, %c0_107, %c9_108, %c0_109] : memref<1x4x72x32xbf16, #tpu.memory_space<vmem>>, vector<1x1x56x32xbf16>
    %68 = vector.shape_cast %67 : vector<1x1x56x32xbf16> to vector<1x56x32xbf16>
    %c0_110 = arith.constant 0 : index
    %c2_111 = arith.constant 2 : index
    %c8_112 = arith.constant 8 : index
    %c0_113 = arith.constant 0 : index
    %69 = vector.load %arg6[%c0_110, %c2_111, %c8_112, %c0_113] : memref<1x4x72x32xbf16, #tpu.memory_space<vmem>>, vector<1x1x56x32xbf16>
    %70 = vector.shape_cast %69 : vector<1x1x56x32xbf16> to vector<1x56x32xbf16>
    %c0_114 = arith.constant 0 : index
    %c3_115 = arith.constant 3 : index
    %c8_116 = arith.constant 8 : index
    %c0_117 = arith.constant 0 : index
    %71 = vector.load %arg6[%c0_114, %c3_115, %c8_116, %c0_117] : memref<1x4x72x32xbf16, #tpu.memory_space<vmem>>, vector<1x1x56x32xbf16>
    %72 = vector.shape_cast %71 : vector<1x1x56x32xbf16> to vector<1x56x32xbf16>
    %c0_118 = arith.constant 0 : index
    %c2_119 = arith.constant 2 : index
    %c9_120 = arith.constant 9 : index
    %c0_121 = arith.constant 0 : index
    %73 = vector.load %arg6[%c0_118, %c2_119, %c9_120, %c0_121] : memref<1x4x72x32xbf16, #tpu.memory_space<vmem>>, vector<1x1x56x32xbf16>
    %74 = vector.shape_cast %73 : vector<1x1x56x32xbf16> to vector<1x56x32xbf16>
    %75 = tpu.concatenate %58, %60, %62, %64, %66, %68, %70, %72, %74 in 2 : vector<1x56x32xbf16>, vector<1x56x32xbf16>, vector<1x56x32xbf16>, vector<1x56x32xbf16>, vector<1x56x32xbf16>, vector<1x56x32xbf16>, vector<1x56x32xbf16>, vector<1x56x32xbf16>, vector<1x56x32xbf16> -> vector<1x56x288xbf16>
    %76 = vector.shape_cast %75 : vector<1x56x288xbf16> to vector<56x288xbf16>
    %cst_122 = arith.constant dense<0.000000e+00> : vector<56x64xf32>
    %77 = tpu.matmul %76, %13, %cst_122 {dimension_numbers = #tpu.dot_dimension_numbers<[1], [0], [0], [1], [0, 0, 1, 1], [], []>} : vector<56x288xbf16>, vector<288x64xbf16>, vector<56x64xf32> -> vector<56x64xf32>
    %78 = arith.maximumf %56, %77 : vector<56x64xf32>
    %c0_123 = arith.constant 0 : index
    %c3_124 = arith.constant 3 : index
    %c0_125 = arith.constant 0 : index
    %c0_126 = arith.constant 0 : index
    %79 = vector.load %arg6[%c0_123, %c3_124, %c0_125, %c0_126] : memref<1x4x72x32xbf16, #tpu.memory_space<vmem>>, vector<1x1x56x32xbf16>
    %80 = vector.shape_cast %79 : vector<1x1x56x32xbf16> to vector<1x56x32xbf16>
    %c0_127 = arith.constant 0 : index
    %c2_128 = arith.constant 2 : index
    %c1_129 = arith.constant 1 : index
    %c0_130 = arith.constant 0 : index
    %81 = vector.load %arg6[%c0_127, %c2_128, %c1_129, %c0_130] : memref<1x4x72x32xbf16, #tpu.memory_space<vmem>>, vector<1x1x56x32xbf16>
    %82 = vector.shape_cast %81 : vector<1x1x56x32xbf16> to vector<1x56x32xbf16>
    %c0_131 = arith.constant 0 : index
    %c3_132 = arith.constant 3 : index
    %c1_133 = arith.constant 1 : index
    %c0_134 = arith.constant 0 : index
    %83 = vector.load %arg6[%c0_131, %c3_132, %c1_133, %c0_134] : memref<1x4x72x32xbf16, #tpu.memory_space<vmem>>, vector<1x1x56x32xbf16>
    %84 = vector.shape_cast %83 : vector<1x1x56x32xbf16> to vector<1x56x32xbf16>
    %c0_135 = arith.constant 0 : index
    %c1_136 = arith.constant 1 : index
    %c8_137 = arith.constant 8 : index
    %c0_138 = arith.constant 0 : index
    %85 = vector.load %arg6[%c0_135, %c1_136, %c8_137, %c0_138] : memref<1x4x72x32xbf16, #tpu.memory_space<vmem>>, vector<1x1x56x32xbf16>
    %86 = vector.shape_cast %85 : vector<1x1x56x32xbf16> to vector<1x56x32xbf16>
    %c0_139 = arith.constant 0 : index
    %c0_140 = arith.constant 0 : index
    %c9_141 = arith.constant 9 : index
    %c0_142 = arith.constant 0 : index
    %87 = vector.load %arg6[%c0_139, %c0_140, %c9_141, %c0_142] : memref<1x4x72x32xbf16, #tpu.memory_space<vmem>>, vector<1x1x56x32xbf16>
    %88 = vector.shape_cast %87 : vector<1x1x56x32xbf16> to vector<1x56x32xbf16>
    %c0_143 = arith.constant 0 : index
    %c1_144 = arith.constant 1 : index
    %c9_145 = arith.constant 9 : index
    %c0_146 = arith.constant 0 : index
    %89 = vector.load %arg6[%c0_143, %c1_144, %c9_145, %c0_146] : memref<1x4x72x32xbf16, #tpu.memory_space<vmem>>, vector<1x1x56x32xbf16>
    %90 = vector.shape_cast %89 : vector<1x1x56x32xbf16> to vector<1x56x32xbf16>
    %c0_147 = arith.constant 0 : index
    %c3_148 = arith.constant 3 : index
    %c8_149 = arith.constant 8 : index
    %c0_150 = arith.constant 0 : index
    %91 = vector.load %arg6[%c0_147, %c3_148, %c8_149, %c0_150] : memref<1x4x72x32xbf16, #tpu.memory_space<vmem>>, vector<1x1x56x32xbf16>
    %92 = vector.shape_cast %91 : vector<1x1x56x32xbf16> to vector<1x56x32xbf16>
    %c0_151 = arith.constant 0 : index
    %c2_152 = arith.constant 2 : index
    %c9_153 = arith.constant 9 : index
    %c0_154 = arith.constant 0 : index
    %93 = vector.load %arg6[%c0_151, %c2_152, %c9_153, %c0_154] : memref<1x4x72x32xbf16, #tpu.memory_space<vmem>>, vector<1x1x56x32xbf16>
    %94 = vector.shape_cast %93 : vector<1x1x56x32xbf16> to vector<1x56x32xbf16>
    %c0_155 = arith.constant 0 : index
    %c3_156 = arith.constant 3 : index
    %c9_157 = arith.constant 9 : index
    %c0_158 = arith.constant 0 : index
    %95 = vector.load %arg6[%c0_155, %c3_156, %c9_157, %c0_158] : memref<1x4x72x32xbf16, #tpu.memory_space<vmem>>, vector<1x1x56x32xbf16>
    %96 = vector.shape_cast %95 : vector<1x1x56x32xbf16> to vector<1x56x32xbf16>
    %97 = tpu.concatenate %80, %82, %84, %86, %88, %90, %92, %94, %96 in 2 : vector<1x56x32xbf16>, vector<1x56x32xbf16>, vector<1x56x32xbf16>, vector<1x56x32xbf16>, vector<1x56x32xbf16>, vector<1x56x32xbf16>, vector<1x56x32xbf16>, vector<1x56x32xbf16>, vector<1x56x32xbf16> -> vector<1x56x288xbf16>
    %98 = vector.shape_cast %97 : vector<1x56x288xbf16> to vector<56x288xbf16>
    %cst_159 = arith.constant dense<0.000000e+00> : vector<56x64xf32>
    %99 = tpu.matmul %98, %13, %cst_159 {dimension_numbers = #tpu.dot_dimension_numbers<[1], [0], [0], [1], [0, 0, 1, 1], [], []>} : vector<56x288xbf16>, vector<288x64xbf16>, vector<56x64xf32> -> vector<56x64xf32>
    %100 = arith.maximumf %78, %99 : vector<56x64xf32>
    %101 = vector.shape_cast %100 : vector<56x64xf32> to vector<1x56x64xf32>
    %c0_160 = arith.constant 0 : index
    %c0_161 = arith.constant 0 : index
    %102 = vector.load %arg4[%c0_160, %c0_161] : memref<1x64xf32, #tpu.memory_space<vmem>>, vector<1x64xf32>
    %103 = vector.shape_cast %102 : vector<1x64xf32> to vector<1x1x64xf32>
    %104 = vector.broadcast %103 : vector<1x1x64xf32> to vector<1x56x64xf32>
    %105 = arith.addf %101, %104 : vector<1x56x64xf32>
    %cst_162 = arith.constant 0.000000e+00 : f32
    %106 = vector.broadcast %cst_162 : f32 to vector<1x56x64xf32>
    %107 = arith.maximumf %105, %106 : vector<1x56x64xf32>
    %108 = arith.truncf %107 : vector<1x56x64xf32> to vector<1x56x64xbf16>
    %c0_163 = arith.constant 0 : index
    %c0_164 = arith.constant 0 : index
    %c0_165 = arith.constant 0 : index
    %109 = vector.load %arg5[%c0_163, %c0_164, %c0_165] : memref<1x56x64xbf16, #tpu.memory_space<vmem>>, vector<1x56x64xbf16>
    tpu.vector_store %arg5[%c0_163, %c0_164, %c0_165], %108 {strides = array<i32>} : memref<1x56x64xbf16, #tpu.memory_space<vmem>>, vector<1x56x64xbf16>,
    return
  }
  func.func @transform_0(%arg0: i32) -> (i32, i32, i32, i32) {
    %c0_i32 = arith.constant 0 : i32
    %c0_i32_0 = arith.constant 0 : i32
    %c0_i32_1 = arith.constant 0 : i32
    %c0_i32_2 = arith.constant 0 : i32
    return %arg0, %c0_i32, %c0_i32_0, %c0_i32_1 : i32, i32, i32, i32
  }
  func.func @transform_1(%arg0: i32) -> (i32, i32) {
    %c0_i32 = arith.constant 0 : i32
    %c0_i32_0 = arith.constant 0 : i32
    %c0_i32_1 = arith.constant 0 : i32
    return %c0_i32, %c0_i32_0 : i32, i32
  }
  func.func @transform_2(%arg0: i32) -> (i32, i32) {
    %c0_i32 = arith.constant 0 : i32
    %c0_i32_0 = arith.constant 0 : i32
    %c0_i32_1 = arith.constant 0 : i32
    return %c0_i32, %c0_i32_0 : i32, i32
  }
  func.func @transform_3(%arg0: i32) -> (i32, i32) {
    %c0_i32 = arith.constant 0 : i32
    %c0_i32_0 = arith.constant 0 : i32
    %c0_i32_1 = arith.constant 0 : i32
    return %c0_i32, %c0_i32_0 : i32, i32
  }
  func.func @transform_4(%arg0: i32) -> (i32, i32, i32) {
    %c0_i32 = arith.constant 0 : i32
    %c0_i32_0 = arith.constant 0 : i32
    %c0_i32_1 = arith.constant 0 : i32
    return %arg0, %c0_i32, %c0_i32_0 : i32, i32, i32
  }
}

module attributes {stable_mosaic.version = 11 : i64} {
  func.func @_fc_kernel(%arg0: i32, %arg1: memref<8x3584xbf16, #tpu.memory_space<vmem>>, %arg2: memref<3584x128xbf16, #tpu.memory_space<vmem>>, %arg3: memref<1x128xf32, #tpu.memory_space<vmem>>, %arg4: memref<128x128xbf16, #tpu.memory_space<vmem>>, %arg5: memref<1x128xf32, #tpu.memory_space<vmem>>, %arg6: memref<8x128xf32, #tpu.memory_space<vmem>>) attributes {dimension_semantics = [#tpu.dimension_semantics<parallel>], iteration_bounds = array<i64: 1>, scalar_prefetch = 0 : i64, scratch_operands = 0 : i64, tpu.core_type = #tpu.core_type<tc>, window_params = [{transform_indices = @transform_0, window_bounds = array<i64: 8, 3584>}, {pipeline_mode = #tpu.pipeline_mode<synchronous>, transform_indices = @transform_1, window_bounds = array<i64: 3584, 128>}, {pipeline_mode = #tpu.pipeline_mode<synchronous>, transform_indices = @transform_2, window_bounds = array<i64: 1, 128>}, {pipeline_mode = #tpu.pipeline_mode<synchronous>, transform_indices = @transform_3, window_bounds = array<i64: 128, 128>}, {pipeline_mode = #tpu.pipeline_mode<synchronous>, transform_indices = @transform_4, window_bounds = array<i64: 1, 128>}, {transform_indices = @transform_5, window_bounds = array<i64: 8, 128>}]} {
    %c0 = arith.constant 0 : index
    %c0_0 = arith.constant 0 : index
    %0 = vector.load %arg1[%c0, %c0_0] : memref<8x3584xbf16, #tpu.memory_space<vmem>>, vector<8x3584xbf16>
    %c0_1 = arith.constant 0 : index
    %c0_2 = arith.constant 0 : index
    %1 = vector.load %arg2[%c0_1, %c0_2] : memref<3584x128xbf16, #tpu.memory_space<vmem>>, vector<3584x128xbf16>
    %cst = arith.constant dense<0.000000e+00> : vector<8x128xf32>
    %2 = tpu.matmul %0, %1, %cst {dimension_numbers = #tpu.dot_dimension_numbers<[1], [0], [0], [1], [0, 0, 1, 1], [], []>} : vector<8x3584xbf16>, vector<3584x128xbf16>, vector<8x128xf32> -> vector<8x128xf32>
    %c0_3 = arith.constant 0 : index
    %c0_4 = arith.constant 0 : index
    %3 = vector.load %arg3[%c0_3, %c0_4] : memref<1x128xf32, #tpu.memory_space<vmem>>, vector<1x128xf32>
    %4 = vector.broadcast %3 : vector<1x128xf32> to vector<8x128xf32>
    %5 = arith.addf %2, %4 : vector<8x128xf32>
    %cst_5 = arith.constant 0.000000e+00 : f32
    %6 = vector.broadcast %cst_5 : f32 to vector<8x128xf32>
    %7 = arith.maximumf %5, %6 : vector<8x128xf32>
    %8 = arith.truncf %7 : vector<8x128xf32> to vector<8x128xbf16>
    %c0_6 = arith.constant 0 : index
    %c0_7 = arith.constant 0 : index
    %9 = vector.load %arg4[%c0_6, %c0_7] : memref<128x128xbf16, #tpu.memory_space<vmem>>, vector<128x128xbf16>
    %cst_8 = arith.constant dense<0.000000e+00> : vector<8x128xf32>
    %10 = tpu.matmul %8, %9, %cst_8 {dimension_numbers = #tpu.dot_dimension_numbers<[1], [0], [0], [1], [0, 0, 1, 1], [], []>} : vector<8x128xbf16>, vector<128x128xbf16>, vector<8x128xf32> -> vector<8x128xf32>
    %c0_9 = arith.constant 0 : index
    %c0_10 = arith.constant 0 : index
    %11 = vector.load %arg5[%c0_9, %c0_10] : memref<1x128xf32, #tpu.memory_space<vmem>>, vector<1x128xf32>
    %12 = vector.broadcast %11 : vector<1x128xf32> to vector<8x128xf32>
    %13 = arith.addf %10, %12 : vector<8x128xf32>
    %c0_11 = arith.constant 0 : index
    %c0_12 = arith.constant 0 : index
    %14 = vector.load %arg6[%c0_11, %c0_12] : memref<8x128xf32, #tpu.memory_space<vmem>>, vector<8x128xf32>
    tpu.vector_store %arg6[%c0_11, %c0_12], %13 {strides = array<i32>} : memref<8x128xf32, #tpu.memory_space<vmem>>, vector<8x128xf32>,
    return
  }
  func.func @transform_0(%arg0: i32) -> (i32, i32) {
    %c0_i32 = arith.constant 0 : i32
    %c0_i32_0 = arith.constant 0 : i32
    return %arg0, %c0_i32 : i32, i32
  }
  func.func @transform_1(%arg0: i32) -> (i32, i32) {
    %c0_i32 = arith.constant 0 : i32
    %c0_i32_0 = arith.constant 0 : i32
    %c0_i32_1 = arith.constant 0 : i32
    return %c0_i32, %c0_i32_0 : i32, i32
  }
  func.func @transform_2(%arg0: i32) -> (i32, i32) {
    %c0_i32 = arith.constant 0 : i32
    %c0_i32_0 = arith.constant 0 : i32
    %c0_i32_1 = arith.constant 0 : i32
    return %c0_i32, %c0_i32_0 : i32, i32
  }
  func.func @transform_3(%arg0: i32) -> (i32, i32) {
    %c0_i32 = arith.constant 0 : i32
    %c0_i32_0 = arith.constant 0 : i32
    %c0_i32_1 = arith.constant 0 : i32
    return %c0_i32, %c0_i32_0 : i32, i32
  }
  func.func @transform_4(%arg0: i32) -> (i32, i32) {
    %c0_i32 = arith.constant 0 : i32
    %c0_i32_0 = arith.constant 0 : i32
    %c0_i32_1 = arith.constant 0 : i32
    return %c0_i32, %c0_i32_0 : i32, i32
  }
  func.func @transform_5(%arg0: i32) -> (i32, i32) {
    %c0_i32 = arith.constant 0 : i32
    %c0_i32_0 = arith.constant 0 : i32
    return %arg0, %c0_i32 : i32, i32
  }
}

</mosaic_0001>

<bundles_post_ra>
// kernel: simple_cnn_forward.2
= control target key start
LH: loop header
LB: loop body
LE: loop exit
PB: predicated region body
PF: predicated region fallthrough
CT: control target
= control target key end

     0   :  { %s4500_s15 = smov 0   ;;  %s6201_s0 = inlined_call_operand.vmem [shape: bf16[2,4,256,16], index: 0, kind: input, shape index: {}]   ;;  %s6202_s1 = inlined_call_operand.vmem [shape: bf16[16,32], index: 1, kind: input, shape index: {}]   ;;  %s6203_s2 = inlined_call_operand.vmem [shape: bf16[288,64], index: 2, kind: input, shape index: {}]   ;;  %s6204_s3 = inlined_call_operand.vmem [shape: f32[1,64], index: 3, kind: input, shape index: {}]   ;;  %s6205_s4 = inlined_call_operand.vmem [shape: bf16[2,56,64], index: 4, kind: output, shape index: {}]  }
   0x1 LB: > { %s3568_s16 = sadd.s32 4294967295, %s4469_s15   ;;  %p3572_p0 = scmp.ge.s32.totalorder %s4469_s15, 1  ;;  %s4469_s15 = sphi %s4500_s15, %s14_s15  }
   0x2   : > { %p162_p1 = scmp.lt.s32.totalorder %s4469_s15, 3 }
   0x4   : > { %p163_p2 = pnand %p3572_p0, %p162_p1 }
   0x6   : > { %166 = sbr.rel (%p163_p2) target bundleno = 1021 (0x3fd), region = 36 }
   0xb   : > { %v4318_v0 = vld [vmem:[%s6202_s1] sm:$0xff]   ;;  %p188_p3 = scmp.lt.s32.totalorder %s3568_s16, 1  ;;  %vm655_vm0 = vcmask 130048   ;;  %vm1393_vm1 = vcmask 261120   ;;  %vm1778_vm2 = vcmask 257024   ;;  %s4472_s5 = smov 64  }
   0xc   : > { %4123 = vmatprep.subr.bf16.mxu0 %v4318_v0  ;;  %vm1934_vm3 = vsmask.f32 7424  ;;  %s4473_s24 = smov 32   ;;  %s4474_s29 = smov 96   ;;  %vm2131_vm4 = vcmask 523264   ;;  %vm2140_vm5 = vcmask 785408  }
   0xd   : > { %s6396_s16 = smov (!%p188_p3, %s3568_s16), 1  ;;  %4124 = vmatpush3.bf16.msra.mxu0 %v4318_v0  ;;  %vm3505_vm6 = vcmask 519168  }
   0xe   : > { %s3834_s19 = sshll.u32 %s6396_s16, 9 }
   0xf   : > { %s4517_s22 = scalar_lea.vmem %s6201_s0, %s3834_s19 }
  0x10   : > { %v4319_v1 = vld [vmem:[%s4517_s22] sm:$0xff]   ;;  %v4320_v2 = vld [vmem:[%s4517_s22 + $0x8] sm:$0xff]   ;;  %v4321_v3 = vld [vmem:[%s4517_s22 + $0x10] sm:$0xff]  }
  0x11   : > { %4125 = vmatprep.mubr.msk.bf16.mxu0 %vm655_vm0, %v4319_v1  ;;  %v4322_v4 = vld [vmem:[%s4517_s22 + $0x18] sm:$0xff]   ;;  %v4323_v5 = vld [vmem:[%s4517_s22 + $0x20] sm:$0xff]   ;;  %v4324_v6 = vld [vmem:[%s4517_s22 + $0x28] sm:$0xff]  }
  0x12   : > { %4126 = vmatmul.mubr.msk.bf16.vlgmr.msra.gmra.mxu0 %vm655_vm0, %v4320_v2  ;;  %v4325_v7 = vld [vmem:[%s4517_s22 + $0x30] sm:$0xff]   ;;  %v4326_v8 = vld [vmem:[%s4517_s22 + $0x38] sm:$0xff]   ;;  %v4327_v9 = vld [vmem:[%s4517_s22 + $0x40] sm:$0xff]  }
  0x13   : > { %4129 = vmatprep.mubr.msk.bf16.mxu0 %vm655_vm0, %v4321_v3  ;;  %v4328_v10 = vld [vmem:[%s4517_s22 + $0x48] sm:$0xff]   ;;  %v4329_v11 = vld [vmem:[%s4517_s22 + $0x50] sm:$0xff]   ;;  %v4330_v12 = vld [vmem:[%s4517_s22 + $0x58] sm:$0xff]  }
  0x14   : > { %v4331_v13 = vld [vmem:[%s4517_s22 + $0x60] sm:$0xff]   ;;  %v4332_v14 = vld [vmem:[%s4517_s22 + $0x68] sm:$0xff]   ;;  %v4333_v15 = vld [vmem:[%s4517_s22 + $0x70] sm:$0xff]  }
  0x15   : > { %v4334_v16 = vld [vmem:[%s4517_s22 + $0x78] sm:$0xff]   ;;  %v4335_v17 = vld [vmem:[%s4517_s22 + $0x80] sm:$0xff]   ;;  %v4336_v18 = vld [vmem:[%s4517_s22 + $0x88] sm:$0xff]  }
  0x16   : > { %v4337_v19 = vld [vmem:[%s4517_s22 + $0x90] sm:$0xff]   ;;  %v4338_v20 = vld [vmem:[%s4517_s22 + $0x98] sm:$0xff]   ;;  %v4339_v21 = vld [vmem:[%s4517_s22 + $0xa0] sm:$0xff]  }
  0x17   : > { %v4340_v22 = vld [vmem:[%s4517_s22 + $0xa8] sm:$0xff]   ;;  %v4341_v23 = vld [vmem:[%s4517_s22 + $0xb0] sm:$0xff]   ;;  %v4342_v24 = vld [vmem:[%s4517_s22 + $0xb8] sm:$0xff]  }
  0x18   : > { %v4343_v25 = vld [vmem:[%s4517_s22 + $0xc0] sm:$0xff]   ;;  %v4344_v26 = vld [vmem:[%s4517_s22 + $0xc8] sm:$0xff]   ;;  %v4345_v27 = vld [vmem:[%s4517_s22 + $0xd0] sm:$0xff]  }
  0x19   : > { %v4346_v28 = vld [vmem:[%s4517_s22 + $0xd8] sm:$0xff]   ;;  %v4347_v29 = vld [vmem:[%s4517_s22 + $0xe0] sm:$0xff]   ;;  %v4348_v30 = vld [vmem:[%s4517_s22 + $0xe8] sm:$0xff]  }
  0x1a   : > { %4130 = vmatmul.mubr.msk.bf16.gmra.mxu0 %vm655_vm0, %v4322_v4  ;;  %v4349_v31 = vld [vmem:[%s4517_s22 + $0xf0] sm:$0xff]   ;;  %v4350_v32 = vld [vmem:[%s4517_s22 + $0xf8] sm:$0xff]   ;;  %v4351_v33 = vld [vmem:[%s4517_s22 + $0x100] sm:$0xff]  }
  0x1b   : > { %4133 = vmatprep.mubr.msk.bf16.mxu0 %vm655_vm0, %v4323_v5  ;;  %v4352_v34 = vld [vmem:[%s4517_s22 + $0x108] sm:$0xff]   ;;  %v4353_v35 = vld [vmem:[%s4517_s22 + $0x110] sm:$0xff]   ;;  %v4354_v36 = vld [vmem:[%s4517_s22 + $0x118] sm:$0xff]  }
  0x1c   : > { %v4355_v37 = vld [vmem:[%s4517_s22 + $0x120] sm:$0xff]   ;;  %v4356_v38 = vld [vmem:[%s4517_s22 + $0x128] sm:$0xff]   ;;  %v4357_v39 = vld [vmem:[%s4517_s22 + $0x130] sm:$0xff]  }
  0x1d   : > { %v4358_v40 = vld [vmem:[%s4517_s22 + $0x138] sm:$0xff]   ;;  %v4359_v41 = vld [vmem:[%s4517_s22 + $0x140] sm:$0xff]   ;;  %v4360_v42 = vld [vmem:[%s4517_s22 + $0x148] sm:$0xff]  }
  0x1e   : > { %v4361_v43 = vld [vmem:[%s4517_s22 + $0x150] sm:$0xff]   ;;  %v4362_v44 = vld [vmem:[%s4517_s22 + $0x158] sm:$0xff]   ;;  %v4363_v45 = vld [vmem:[%s4517_s22 + $0x160] sm:$0xff]  }
  0x1f   : > { %v4364_v46 = vld [vmem:[%s4517_s22 + $0x168] sm:$0xff]   ;;  %v4365_v47 = vld [vmem:[%s4517_s22 + $0x170] sm:$0xff]   ;;  %v4366_v48 = vld [vmem:[%s4517_s22 + $0x178] sm:$0xff]  }
  0x20   : > { %v4367_v49 = vld [vmem:[%s4517_s22 + $0x180] sm:$0xff]   ;;  %v4368_v50 = vld [vmem:[%s4517_s22 + $0x188] sm:$0xff]   ;;  %v4369_v51 = vld [vmem:[%s4517_s22 + $0x190] sm:$0xff]  }
  0x21   : > { %v4370_v55 = vld [vmem:[%s4517_s22 + $0x198] sm:$0xff]   ;;  %v4371_v56 = vld [vmem:[%s4517_s22 + $0x1a0] sm:$0xff]   ;;  %v4372_v61 = vld [vmem:[%s4517_s22 + $0x1a8] sm:$0xff]  }
  0x22   : > { %4134 = vmatmul.mubr.msk.bf16.gmra.mxu0 %vm655_vm0, %v4324_v6  ;;  %v4373_v62 = vld [vmem:[%s4517_s22 + $0x1b0] sm:$0xff]   ;;  %v4374_v3 = vld [vmem:[%s4517_s22 + $0x1b8] sm:$0xff]   ;;  %v4375_v4 = vld [vmem:[%s4517_s22 + $0x1c0] sm:$0xff]  }
  0x23   : > { %4137 = vmatprep.mubr.msk.bf16.mxu0 %vm655_vm0, %v4325_v7 }
  0x2a   : > { %4138 = vmatmul.mubr.msk.bf16.gmra.mxu0 %vm655_vm0, %v4326_v8 }
  0x2b   : > { %4141 = vmatprep.mubr.msk.bf16.mxu0 %vm655_vm0, %v4327_v9  ;;  %v4376_v9 = vld [vmem:[%s4517_s22 + $0x1c8] sm:$0xff]  }
  0x32   : > { %4142 = vmatmul.mubr.msk.bf16.gmra.mxu0 %vm655_vm0, %v4328_v10  ;;  %v4377_v10 = vld [vmem:[%s4517_s22 + $0x1d0] sm:$0xff]  }
  0x33   : > { %4145 = vmatprep.mubr.msk.bf16.mxu0 %vm655_vm0, %v4329_v11 }
  0x3a   : > { %4146 = vmatmul.mubr.msk.bf16.gmra.mxu0 %vm655_vm0, %v4330_v12 }
  0x3b   : > { %4149 = vmatprep.mubr.msk.bf16.mxu0 %vm655_vm0, %v4331_v13 }
  0x42   : > { %4150 = vmatmul.mubr.msk.bf16.gmra.mxu0 %vm655_vm0, %v4332_v14 }
  0x43   : > { %4153 = vmatprep.mubr.msk.bf16.mxu0 %vm655_vm0, %v4333_v15  ;;  %v4378_v15 = vld [vmem:[%s4517_s22 + $0x1d8] sm:$0xff]  }
  0x4a   : > { %4154 = vmatmul.mubr.msk.bf16.gmra.mxu0 %vm655_vm0, %v4334_v16  ;;  %v4379_v16 = vld [vmem:[%s4517_s22 + $0x1e0] sm:$0xff]  }
  0x4b   : > { %4157 = vmatprep.mubr.msk.bf16.mxu0 %vm655_vm0, %v4335_v17 }
  0x52   : > { %4158 = vmatmul.mubr.msk.bf16.gmra.mxu0 %vm655_vm0, %v4336_v18 }
  0x53   : > { %4161 = vmatprep.mubr.msk.bf16.mxu0 %vm655_vm0, %v4337_v19 }
  0x5a   : > { %4162 = vmatmul.mubr.msk.bf16.gmra.mxu0 %vm655_vm0, %v4338_v20 }
  0x5b   : > { %4165 = vmatprep.mubr.msk.bf16.mxu0 %vm655_vm0, %v4339_v21  ;;  %v4380_v21 = vld [vmem:[%s4517_s22 + $0x1e8] sm:$0xff]  }
  0x62   : > { %4166 = vmatmul.mubr.msk.bf16.gmra.mxu0 %vm655_vm0, %v4340_v22  ;;  %v4381_v22 = vld [vmem:[%s4517_s22 + $0x1f0] sm:$0xff]  }
  0x63   : > { %4169 = vmatprep.mubr.msk.bf16.mxu0 %vm655_vm0, %v4341_v23 }
  0x6a   : > { %4170 = vmatmul.mubr.msk.bf16.gmra.mxu0 %vm655_vm0, %v4342_v24 }
  0x6b   : > { %4173 = vmatprep.mubr.msk.bf16.mxu0 %vm655_vm0, %v4343_v25 }
  0x72   : > { %4174 = vmatmul.mubr.msk.bf16.gmra.mxu0 %vm655_vm0, %v4344_v26 }
  0x73   : > { %4177 = vmatprep.mubr.msk.bf16.mxu0 %vm655_vm0, %v4345_v27  ;;  %v4382_v27 = vld [vmem:[%s4517_s22 + $0x1f8] sm:$0xff]  }
  0x7a   : > { %4178 = vmatmul.mubr.msk.bf16.gmra.mxu0 %vm655_vm0, %v4346_v28 }
  0x7b   : > { %4181 = vmatprep.mubr.msk.bf16.mxu0 %vm655_vm0, %v4347_v29 }
  0x82   : > { %4182 = vmatmul.mubr.msk.bf16.gmra.mxu0 %vm655_vm0, %v4348_v30 }
  0x83   : > { %4185 = vmatprep.mubr.msk.bf16.mxu0 %vm655_vm0, %v4349_v31 }
  0x8a   : > { %4186 = vmatmul.mubr.msk.bf16.gmra.mxu0 %vm655_vm0, %v4350_v32 }
  0x8b   : > { %4189 = vmatprep.mubr.msk.bf16.mxu0 %vm655_vm0, %v4351_v33 }
  0x92   : > { %4190 = vmatmul.mubr.msk.bf16.gmra.mxu0 %vm655_vm0, %v4352_v34 }
  0x93   : > { %4193 = vmatprep.mubr.msk.bf16.mxu0 %vm655_vm0, %v4353_v35 }
  0x9a   : > { %4194 = vmatmul.mubr.msk.bf16.gmra.mxu0 %vm655_vm0, %v4354_v36 }
  0x9b   : > { %4197 = vmatprep.mubr.msk.bf16.mxu0 %vm655_vm0, %v4355_v37 }
  0xa2   : > { %4198 = vmatmul.mubr.msk.bf16.gmra.mxu0 %vm655_vm0, %v4356_v38 }
  0xa3   : > { %4201 = vmatprep.mubr.msk.bf16.mxu0 %vm655_vm0, %v4357_v39 }
  0xaa   : > { %4202 = vmatmul.mubr.msk.bf16.gmra.mxu0 %vm655_vm0, %v4358_v40 }
  0xab   : > { %4205 = vmatprep.mubr.msk.bf16.mxu0 %vm655_vm0, %v4359_v41 }
  0xb2   : > { %4206 = vmatmul.mubr.msk.bf16.gmra.mxu0 %vm655_vm0, %v4360_v42 }
  0xb3   : > { %4209 = vmatprep.mubr.msk.bf16.mxu0 %vm655_vm0, %v4361_v43 }
  0xba   : > { %4210 = vmatmul.mubr.msk.bf16.gmra.mxu0 %vm655_vm0, %v4362_v44 }
  0xbb   : > { %4213 = vmatprep.mubr.msk.bf16.mxu0 %vm655_vm0, %v4363_v45 }
  0xc2   : > { %4214 = vmatmul.mubr.msk.bf16.gmra.mxu0 %vm655_vm0, %v4364_v46 }
  0xc3   : > { %4217 = vmatprep.mubr.msk.bf16.mxu0 %vm655_vm0, %v4365_v47 }
  0xca   : > { %4218 = vmatmul.mubr.msk.bf16.gmra.mxu0 %vm655_vm0, %v4366_v48 }
  0xcb   : > { %4221 = vmatprep.mubr.msk.bf16.mxu0 %vm655_vm0, %v4367_v49 }
  0xd2   : > { %v4127_v52 = vpop.f32.mrf.mxu0  ;;  %4222 = vmatmul.mubr.msk.bf16.gmra.mxu0 %vm655_vm0, %v4368_v50 }
  0xd3   : > { %4225 = vmatprep.mubr.msk.bf16.mxu0 %vm655_vm0, %v4369_v51  ;;  %v4710_v34 = vsel %vm1393_vm1, %v4127_v52, -inf  ;;  %v4399_v52 = vld [vmem:[%s6203_s2 + $0x80] sm:$0xff]  }
  0xd4   : > { %v4621_v53 = vpop.f32.mrf.mxu0 }
  0xd5   : > { %v4719_v38 = vsel %vm1393_vm1, %v4621_v53, -inf }
  0xd6   : > { %v4623_v54 = vpop.f32.mrf.mxu0 }
  0xd7   : > { %v4728_v42 = vsel %vm1393_vm1, %v4623_v54, -inf }
  0xd8   : > { %v4627_v57 = vpop.f32.mrf.mxu0 }
  0xd9   : > { %v4737_v46 = vsel %vm1393_vm1, %v4627_v57, -inf }
  0xda   : > { %v4629_v58 = vpop.f32.mrf.mxu0  ;;  %4226 = vmatmul.mubr.msk.bf16.gmra.mxu0 %vm655_vm0, %v4370_v55 }
  0xdb   : > { %4229 = vmatprep.mubr.msk.bf16.mxu0 %vm655_vm0, %v4371_v56  ;;  %v4746_v50 = vsel %vm1393_vm1, %v4629_v58, -inf }
  0xdc   : > { %v4633_v59 = vpop.f32.mrf.mxu0 }
  0xdd   : > { %v4755_v54 = vsel %vm1393_vm1, %v4633_v59, -inf }
  0xde   : > { %v4635_v60 = vpop.f32.mrf.mxu0 }
  0xdf   : > { %v4764_v58 = vsel %vm1393_vm1, %v4635_v60, -inf }
  0xe0   : > { %v4639_v63 = vpop.f32.mrf.mxu0 }
  0xe1   : > { %v4773_v59 = vsel %vm1393_vm1, %v4639_v63, -inf }
  0xe2   : > { %v4641_v0 = vpop.f32.mrf.mxu0  ;;  %4230 = vmatmul.mubr.msk.bf16.gmra.mxu0 %vm655_vm0, %v4372_v61 }
  0xe3   : > { %4233 = vmatprep.mubr.msk.bf16.mxu0 %vm655_vm0, %v4373_v62  ;;  %v4782_v60 = vsel %vm1393_vm1, %v4641_v0, -inf }
  0xe4   : > { %v4645_v1 = vpop.f32.mrf.mxu0 }
  0xe5   : > { %v4791_v63 = vsel %vm1393_vm1, %v4645_v1, -inf }
  0xe6   : > { %v4647_v2 = vpop.f32.mrf.mxu0 }
  0xe7   : > { %v4800_v0 = vsel %vm1393_vm1, %v4647_v2, -inf }
  0xe8   : > { %v4651_v5 = vpop.f32.mrf.mxu0 }
  0xe9   : > { %v4809_v1 = vsel %vm1393_vm1, %v4651_v5, -inf }
  0xea   : > { %v4653_v6 = vpop.f32.mrf.mxu0  ;;  %4234 = vmatmul.mubr.msk.bf16.gmra.mxu0 %vm655_vm0, %v4374_v3 }
  0xeb   : > { %4237 = vmatprep.mubr.msk.bf16.mxu0 %vm655_vm0, %v4375_v4  ;;  %v4818_v2 = vsel %vm1393_vm1, %v4653_v6, -inf }
  0xec   : > { %v4657_v7 = vpop.f32.mrf.mxu0 }
  0xed   : > { %v4831_v6 = vsel %vm1393_vm1, %v4657_v7, -inf }
  0xee   : > { %v4659_v8 = vpop.f32.mrf.mxu0 }
  0xf0   : > { %v4663_v11 = vpop.f32.mrf.mxu0 }
  0xf1   : > { %v4849_v7 = vsel %vm1393_vm1, %v4663_v11, -inf }
  0xf2   : > { %v4665_v12 = vpop.f32.mrf.mxu0  ;;  %4238 = vmatmul.mubr.msk.bf16.gmra.mxu0 %vm655_vm0, %v4376_v9 }
  0xf3   : > { %4241 = vmatprep.mubr.msk.bf16.mxu0 %vm655_vm0, %v4377_v10 }
  0xf4   : > { %v4669_v13 = vpop.f32.mrf.mxu0 }
  0xf5   : > { %v4867_v11 = vsel %vm1393_vm1, %v4669_v13, -inf }
  0xf6   : > { %v4671_v14 = vpop.f32.mrf.mxu0  ;;  %6248 = vst [vmem:[#allocation4_spill] sm:$0xff] %v4867_v11 }
  0xf8   : > { %v4675_v17 = vpop.f32.mrf.mxu0 }
  0xfa   : > { %v4677_v18 = vpop.f32.mrf.mxu0  ;;  %4242 = vmatmul.mubr.msk.bf16.gmra.mxu0 %vm655_vm0, %v4378_v15 }
  0xfb   : > { %4245 = vmatprep.mubr.msk.bf16.mxu0 %vm655_vm0, %v4379_v16 }
  0xfc   : > { %v4681_v19 = vpop.f32.mrf.mxu0 }
  0xfe   : > { %v4683_v20 = vpop.f32.mrf.mxu0 }
 0x100   : > { %v4687_v23 = vpop.f32.mrf.mxu0 }
 0x102   : > { %v4689_v24 = vpop.f32.mrf.mxu0  ;;  %4246 = vmatmul.mubr.msk.bf16.gmra.mxu0 %vm655_vm0, %v4380_v21 }
 0x103   : > { %4249 = vmatprep.mubr.msk.bf16.mxu0 %vm655_vm0, %v4381_v22 }
 0x104   : > { %v4693_v25 = vpop.f32.mrf.mxu0 }
 0x106   : > { %v4695_v26 = vpop.f32.mrf.mxu0 }
 0x108   : > { %v4698_v28 = vpop.f32.mrf.mxu0 }
 0x10a   : > { %v4700_v29 = vpop.f32.mrf.mxu0  ;;  %4250 = vmatmul.mubr.msk.bf16.gmra.mxu0 %vm655_vm0, %v4382_v27 }
 0x10c   : > { %v4703_v30 = vpop.f32.mrf.mxu0 }
 0x10e   : > { %v4705_v31 = vpop.f32.mrf.mxu0 }
 0x110   : > { %v4707_v32 = vpop.f32.mrf.mxu0 }
 0x112   : > { %v4159_v33 = vpop.f32.mrf.mxu0 }
 0x113   : > { %v4713_v35 = vsel %vm1393_vm1, %v4159_v33, -inf }
 0x114   : > { %v1010_v37 = vpop.f32.mrf.mxu0 }
 0x115   : > { %v4722_v39 = vsel %vm1393_vm1, %v1010_v37, -inf }
 0x116   : > { %v4160_v41 = vpop.f32.mrf.mxu0 }
 0x117   : > { %v4731_v43 = vsel %vm1393_vm1, %v4160_v41, -inf }
 0x118   : > { %v1013_v45 = vpop.f32.mrf.mxu0 }
 0x119   : > { %v4740_v47 = vsel %vm1393_vm1, %v1013_v45, -inf }
 0x11a   : > { %v4163_v49 = vpop.f32.mrf.mxu0 }
 0x11b   : > { %v4749_v51 = vsel %vm1393_vm1, %v4163_v49, -inf }
 0x11c   : > { %v1026_v53 = vpop.f32.mrf.mxu0 }
 0x11d   : > { %v4758_v55 = vsel %vm1393_vm1, %v1026_v53, -inf  ;;  %v4840_v53 = vsel %vm1393_vm1, %v4659_v8, -inf  ;;  %v4858_v8 = vsel %vm1393_vm1, %v4665_v12, -inf  ;;  %v4876_v12 = vsel %vm1393_vm1, %v4671_v14, -inf  ;;  %v4996_v14 = vld [vmem:[%s6203_s2 + $0x88] sm:$0xff]  }
 0x11e   : > { %v4164_v57 = vpop.f32.mrf.mxu0  ;;  %6250 = vst [vmem:[#allocation6_spill] sm:$0xff] %v4876_v12  ;;  %6276 = vst [vmem:[#allocation32_spill] sm:$0xff] %v4996_v14  ;;  %4289 = vmatprep.subr.bf16.mxu0 %v4996_v14 }
 0x11f   : > { %v4767_v61 = vsel %vm1393_vm1, %v4164_v57, -inf  ;;  %4290 = vmatpush3.bf16.msra.mxu0 %v4996_v14 }
 0x120   : > { %v1029_v3 = vpop.f32.mrf.mxu0  ;;  %4291 = vmatprep.subr.bf16.mxu0 %v4399_v52 }
 0x121   : > { %v4776_v4 = vsel %vm1393_vm1, %v1029_v3, -inf }
 0x122   : > { %v4167_v10 = vpop.f32.mrf.mxu0 }
 0x123   : > { %v4785_v15 = vsel %vm1393_vm1, %v4167_v10, -inf  ;;  %v4471_v10 = vmov 0   ;;  %4292 = vmatpush3.bf16.msra.mxu0 %v4399_v52 }
 0x124   : > { %v1042_v21 = vpop.f32.mrf.mxu0  ;;  %1811 = vst.msk [vmem:[#allocation2 + $0x20] sm:$0xf] %vm1778_vm2, %v4471_v10  ;;  %1812 = vst.msk [vmem:[#allocation2 + $0x44] sm:$0xf] %vm1778_vm2, %v4471_v10 }
 0x125   : > { %v4794_v22 = vsel %vm1393_vm1, %v1042_v21, -inf  ;;  %1813 = vst.msk [vmem:[#allocation2 + $0x68] sm:$0xf] %vm1778_vm2, %v4471_v10  ;;  %1814 = vst.msk [vmem:[#allocation2 + $0x8c] sm:$0xf] %vm1778_vm2, %v4471_v10 }
 0x126   : > { %v4168_v33 = vpop.f32.mrf.mxu0 }
 0x127   : > { %v4803_v37 = vsel %vm1393_vm1, %v4168_v33, -inf }
 0x128   : > { %v1045_v45 = vpop.f32.mrf.mxu0 }
 0x129   : > { %v4812_v49 = vsel %vm1393_vm1, %v1045_v45, -inf }
 0x12a   : > { %v4171_v57 = vpop.f32.mrf.mxu0 }
 0x12b   : > { %v4821_v3 = vsel %vm1393_vm1, %v4171_v57, -inf }
 0x12c   : > { %v1058_v21 = vpop.f32.mrf.mxu0 }
 0x12d   : > { %v4834_v33 = vsel %vm1393_vm1, %v1058_v21, -inf }
 0x12e   : > { %v4172_v57 = vpop.f32.mrf.mxu0 }
 0x12f   : > { %v4843_v10 = vsel %vm1393_vm1, %v4172_v57, -inf }
 0x130   : > { %v1061_v41 = vpop.f32.mrf.mxu0 }
 0x131   : > { %v4852_v21 = vsel %vm1393_vm1, %v1061_v41, -inf }
 0x132   : > { %v4175_v27 = vpop.f32.mrf.mxu0 }
 0x133   : > { %v4861_v57 = vsel %vm1393_vm1, %v4175_v27, -inf }
 0x134   : > { %6247 = vst [vmem:[#allocation3_spill] sm:$0xff] %v4861_v57  ;;  %v1074_v16 = vpop.f32.mrf.mxu0 }
 0x135   : > { %v4870_v41 = vsel %vm1393_vm1, %v1074_v16, -inf  ;;  %v4887_v16 = vsel %vm1393_vm1, %v4677_v18, -inf  ;;  %v4905_v18 = vsel %vm1393_vm1, %v4683_v20, -inf  ;;  %v4923_v20 = vsel %vm1393_vm1, %v4689_v24, -inf }
 0x136   : > { %6249 = vst [vmem:[#allocation5_spill] sm:$0xff] %v4870_v41  ;;  %v4176_v9 = vpop.f32.mrf.mxu0  ;;  %6252 = vst [vmem:[#allocation8_spill] sm:$0xff] %v4887_v16  ;;  %v4941_v24 = vsel %vm1393_vm1, %v4695_v26, -inf  ;;  %v4959_v26 = vsel %vm1393_vm1, %v4700_v29, -inf  ;;  %v4977_v29 = vsel %vm1393_vm1, %v4705_v31, -inf }
 0x137   : > { %v4879_v27 = vsel %vm1393_vm1, %v4176_v9, -inf  ;;  %v4896_v9 = vsel %vm1393_vm1, %v4681_v19, -inf  ;;  %6256 = vst [vmem:[#allocation12_spill] sm:$0xff] %v4905_v18  ;;  %v4914_v19 = vsel %vm1393_vm1, %v4687_v23, -inf  ;;  %6260 = vst [vmem:[#allocation16_spill] sm:$0xff] %v4923_v20  ;;  %v4932_v23 = vsel %vm1393_vm1, %v4693_v25, -inf }
 0x138   : > { %6251 = vst [vmem:[#allocation7_spill] sm:$0xff] %v4879_v27  ;;  %v4883_v62 = vpop.f32.mrf.mxu0  ;;  %6254 = vst [vmem:[#allocation10_spill] sm:$0xff] %v4896_v9  ;;  %v4950_v25 = vsel %vm1393_vm1, %v4698_v28, -inf  ;;  %v4968_v28 = vsel %vm1393_vm1, %v4703_v30, -inf  ;;  %v4986_v30 = vsel %vm1393_vm1, %v4707_v32, -inf }
 0x139   : > { %6258 = vst [vmem:[#allocation14_spill] sm:$0xff] %v4914_v19  ;;  %6262 = vst [vmem:[#allocation18_spill] sm:$0xff] %v4932_v23 }
 0x13a   : > { %v4179_v13 = vpop.f32.mrf.mxu0  ;;  %6264 = vst [vmem:[#allocation20_spill] sm:$0xff] %v4941_v24  ;;  %6266 = vst [vmem:[#allocation22_spill] sm:$0xff] %v4950_v25 }
 0x13b   : > { %v4890_v45 = vsel %vm1393_vm1, %v4179_v13, -inf  ;;  %6268 = vst [vmem:[#allocation24_spill] sm:$0xff] %v4959_v26  ;;  %6270 = vst [vmem:[#allocation26_spill] sm:$0xff] %v4968_v28 }
 0x13c   : > { %6253 = vst [vmem:[#allocation9_spill] sm:$0xff] %v4890_v45  ;;  %v1090_v56 = vpop.f32.mrf.mxu0  ;;  %6272 = vst [vmem:[#allocation28_spill] sm:$0xff] %v4977_v29 }
 0x13d   : > { %v4899_v5 = vsel %vm1393_vm1, %v1090_v56, -inf  ;;  %6274 = vst [vmem:[#allocation30_spill] sm:$0xff] %v4986_v30 }
 0x13e   : > { %6255 = vst [vmem:[#allocation11_spill] sm:$0xff] %v4899_v5  ;;  %v4180_v48 = vpop.f32.mrf.mxu0 }
 0x13f   : > { %v4908_v13 = vsel %vm1393_vm1, %v4180_v48, -inf }
 0x140   : > { %6257 = vst [vmem:[#allocation13_spill] sm:$0xff] %v4908_v13  ;;  %v1093_v44 = vpop.f32.mrf.mxu0 }
 0x141   : > { %v4917_v56 = vsel %vm1393_vm1, %v1093_v44, -inf }
 0x142   : > { %6259 = vst [vmem:[#allocation15_spill] sm:$0xff] %v4917_v56  ;;  %v4183_v40 = vpop.f32.mrf.mxu0 }
 0x143   : > { %v4926_v48 = vsel %vm1393_vm1, %v4183_v40, -inf }
 0x144   : > { %6261 = vst [vmem:[#allocation17_spill] sm:$0xff] %v4926_v48  ;;  %v1106_v36 = vpop.f32.mrf.mxu0 }
 0x145   : > { %v4935_v44 = vsel %vm1393_vm1, %v1106_v36, -inf }
 0x146   : > { %6263 = vst [vmem:[#allocation19_spill] sm:$0xff] %v4935_v44  ;;  %v4184_v56 = vpop.f32.mrf.mxu0 }
 0x147   : > { %v4944_v40 = vsel %vm1393_vm1, %v4184_v56, -inf }
 0x148   : > { %6265 = vst [vmem:[#allocation21_spill] sm:$0xff] %v4944_v40  ;;  %v1109_v48 = vpop.f32.mrf.mxu0 }
 0x149   : > { %v4953_v36 = vsel %vm1393_vm1, %v1109_v48, -inf }
 0x14a   : > { %6267 = vst [vmem:[#allocation23_spill] sm:$0xff] %v4953_v36  ;;  %v4187_v44 = vpop.f32.mrf.mxu0 }
 0x14b   : > { %v4962_v56 = vsel %vm1393_vm1, %v4187_v44, -inf }
 0x14c   : > { %6269 = vst [vmem:[#allocation25_spill] sm:$0xff] %v4962_v56  ;;  %v1122_v40 = vpop.f32.mrf.mxu0 }
 0x14d   : > { %v4971_v48 = vsel %vm1393_vm1, %v1122_v40, -inf }
 0x14e   : > { %6271 = vst [vmem:[#allocation27_spill] sm:$0xff] %v4971_v48  ;;  %v4188_v36 = vpop.f32.mrf.mxu0 }
 0x14f   : > { %v4980_v44 = vsel %vm1393_vm1, %v4188_v36, -inf }
 0x150   : > { %6273 = vst [vmem:[#allocation29_spill] sm:$0xff] %v4980_v44  ;;  %v1125_v56 = vpop.f32.mrf.mxu0 }
 0x151   : > { %v4989_v40 = vsel %vm1393_vm1, %v1125_v56, -inf }
 0x152   : > { %6275 = vst [vmem:[#allocation31_spill] sm:$0xff] %v4989_v40  ;;  %v4191_v48 = vpop.f32.mrf.mxu0 }
 0x154   : > { %v1138_v31 = vpop.f32.mrf.mxu0 }
 0x156   : > { %v4192_v28 = vpop.f32.mrf.mxu0 }
 0x158   : > { %v1141_v26 = vpop.f32.mrf.mxu0 }
 0x15a   : > { %v4195_v36 = vpop.f32.mrf.mxu0 }
 0x15c   : > { %v1154_v25 = vpop.f32.mrf.mxu0 }
 0x15e   : > { %v4196_v24 = vpop.f32.mrf.mxu0 }
 0x160   : > { %v4998_v32 = vpop.f32.mrf.mxu0 }
 0x162   : > { %v5002_v56 = vpop.f32.mrf.mxu0 }
 0x164   : > { %v5007_v40 = vpop.f32.mrf.mxu0 }
 0x166   : > { %v5009_v30 = vpop.f32.mrf.mxu0 }
 0x168   : > { %v5011_v44 = vpop.f32.mrf.mxu0 }
 0x16a   : > { %v5013_v29 = vpop.f32.mrf.mxu0 }
 0x16c   : > { %v5015_v23 = vpop.f32.mrf.mxu0 }
 0x16e   : > { %v5017_v20 = vpop.f32.mrf.mxu0 }
 0x170   : > { %v5019_v14 = vpop.f32.mrf.mxu0 }
 0x172   : > { %v5021_v19 = vpop.f32.mrf.mxu0 }
 0x174   : > { %v5023_v13 = vpop.f32.mrf.mxu0 }
 0x175   : > { %6277 = vst [vmem:[#allocation33_spill] sm:$0xff] %v5023_v13 }
 0x176   : > { %v5025_v18 = vpop.f32.mrf.mxu0 }
 0x177   : > { %6278 = vst [vmem:[#allocation34_spill] sm:$0xff] %v5025_v18 }
 0x178   : > { %v5027_v5 = vpop.f32.mrf.mxu0 }
 0x179   : > { %6279 = vst [vmem:[#allocation35_spill] sm:$0xff] %v5027_v5 }
 0x17a   : > { %v5029_v52 = vpop.f32.mrf.mxu0 }
 0x17b   : > { %6280 = vst [vmem:[#allocation36_spill] sm:$0xff] %v5029_v52 }
 0x17c   : > { %v5031_v9 = vpop.f32.mrf.mxu0 }
 0x17d   : > { %6281 = vst [vmem:[#allocation37_spill] sm:$0xff] %v5031_v9  ;;  %v1411_v9 = vsel %vm1393_vm1, %v4191_v48, -inf }
 0x17e   : > { %v5033_v45 = vpop.f32.mrf.mxu0 }
 0x17f   : > { %6282 = vst [vmem:[#allocation38_spill] sm:$0xff] %v5033_v45 }
 0x180   : > { %v5035_v16 = vpop.f32.mrf.mxu0 }
 0x181   : > { %6283 = vst [vmem:[#allocation39_spill] sm:$0xff] %v5035_v16  ;;  %v1397_v16 = vsel %vm1393_vm1, %v1138_v31, -inf  ;;  %v6294_v31 = vmax.f32 %v4728_v42, %v4731_v43  ;;  %v6296_v42 = vmax.f32 %v4746_v50, %v4749_v51  ;;  %v1432_v50 = vsel %vm1393_vm1, %v4998_v32, -inf }
 0x182   : > { %v5037_v27 = vpop.f32.mrf.mxu0 }
 0x183   : > { %6284 = vst [vmem:[#allocation40_spill] sm:$0xff] %v5037_v27  ;;  %v6292_v27 = vmax.f32 %v4710_v34, %v4713_v35  ;;  %v1439_v35 = vsel %vm1393_vm1, %v4195_v36, -inf }
 0x184   : > { %v5039_v12 = vpop.f32.mrf.mxu0  ;;  %v1440_v43 = vmax.f32 %v6296_v42, %v1439_v35 }
 0x185   : > { %6285 = vst [vmem:[#allocation41_spill] sm:$0xff] %v5039_v12  ;;  %v1412_v12 = vmax.f32 %v6292_v27, %v1411_v9 }
 0x186   : > { %v5041_v41 = vpop.f32.mrf.mxu0 }
 0x187   : > { %6286 = vst [vmem:[#allocation42_spill] sm:$0xff] %v5041_v41  ;;  %v1418_v41 = vsel %vm1393_vm1, %v4192_v28, -inf }
 0x188   : > { %v5043_v11 = vpop.f32.mrf.mxu0  ;;  %v1419_v34 = vmax.f32 %v6294_v31, %v1418_v41 }
 0x189   : > { %6287 = vst [vmem:[#allocation43_spill] sm:$0xff] %v5043_v11 }
 0x18a   : > { %v5045_v13 = vpop.f32.mrf.mxu0 }
 0x18b   : > { %6288 = vst [vmem:[#allocation44_spill] sm:$0xff] %v5045_v13 }
 0x18c   : > { %v5047_v18 = vpop.f32.mrf.mxu0 }
 0x18d   : > { %6289 = vst [vmem:[#allocation45_spill] sm:$0xff] %v5047_v18  ;;  %v6293_v18 = vmax.f32 %v4719_v38, %v4722_v39 }
 0x18e   : > { %v5049_v5 = vpop.f32.mrf.mxu0 }
 0x18f   : > { %6290 = vst [vmem:[#allocation46_spill] sm:$0xff] %v5049_v5  ;;  %v1398_v13 = vmax.f32 %v6293_v18, %v1397_v16  ;;  %v1404_v5 = vsel %vm1393_vm1, %v1141_v26, -inf }
 0x190   : > { %v5052_v52 = vpop.f32.mrf.mxu0 }
 0x191   : > { %6291 = vst [vmem:[#allocation47_spill] sm:$0xff] %v5052_v52 }
 0x192   : > { %v4223_v45 = vpop.f32.mrf.mxu0 }
 0x193   : > { %v1413_v11 = vsel %vm1393_vm1, %v4223_v45, -inf  ;;  %v6295_v45 = vmax.f32 %v4737_v46, %v4740_v47 }
 0x194   : > { %v1414_v48 = vmax.f32 %v1412_v12, %v1413_v11  ;;  %v1266_v57 = vpop.f32.mrf.mxu0  ;;  %v1425_v11 = vsel %vm1393_vm1, %v1154_v25, -inf  ;;  %v6297_v25 = vmax.f32 %v4755_v54, %v4758_v55  ;;  %v1467_v54 = vsel %vm1393_vm1, %v5002_v56, -inf }
 0x195   : > { %v1399_v52 = vsel %vm1393_vm1, %v1266_v57, -inf  ;;  %v1405_v38 = vmax.f32 %v6295_v45, %v1404_v5  ;;  %v6299_v45 = vmax.f32 %v4773_v59, %v4776_v4  ;;  %v1474_v59 = vsel %vm1393_vm1, %v5009_v30, -inf }
 0x196   : > { %v1620_v27 = vmax.f32 %v1414_v48, 0.0  ;;  %v1400_v9 = vmax.f32 %v1398_v13, %v1399_v52  ;;  %v4224_v28 = vpop.f32.mrf.mxu0  ;;  %v1446_v13 = vsel %vm1393_vm1, %v4196_v24, -inf  ;;  %v1426_v36 = vmax.f32 %v6297_v25, %v1425_v11 }
 0x197   : > { %v1420_v39 = vsel %vm1393_vm1, %v4224_v28, -inf  ;;  %v1495_v30 = vsel %vm1393_vm1, %v5013_v29, -inf }
 0x198   : > { %v3837_v12 = vpack.c.bf16 %v1620_v27, %v1620_v27  ;;  %v1618_v16 = vmax.f32 %v1400_v9, 0.0  ;;  %v1421_v57 = vmax.f32 %v1419_v34, %v1420_v39  ;;  %v1269_v18 = vpop.f32.mrf.mxu0  ;;  %v6298_v34 = vmax.f32 %v4764_v58, %v4767_v61 }
 0x199   : > { %v1406_v41 = vsel %vm1393_vm1, %v1269_v18, -inf  ;;  %v1453_v58 = vsel %vm1393_vm1, %v5007_v40, -inf }
 0x19a   : > { %1781 = vst.msk [vmem:[#allocation2 + $0x8] sm:$0xf] %vm1778_vm2, %v3837_v12  ;;  %v3835_v46 = vpack.c.bf16 %v1618_v16, %v1618_v16  ;;  %v1621_v47 = vmax.f32 %v1421_v57, 0.0  ;;  %v1407_v5 = vmax.f32 %v1405_v38, %v1406_v41  ;;  %v4227_v26 = vpop.f32.mrf.mxu0  ;;  %v1447_v35 = vmax.f32 %v6298_v34, %v1446_v13 }
 0x19b   : > { %v1441_v52 = vsel %vm1393_vm1, %v4227_v26, -inf  ;;  %v1433_v38 = vmax.f32 %v6299_v45, %v1432_v50  ;;  %v6300_v16 = vmax.f32 %v4782_v60, %v4785_v15  ;;  %v5110_v41 = vsel %vm1393_vm1, %v4675_v17, -inf }
 0x19c   : > { %1779 = vst.msk [vmem:[#allocation2] sm:$0xf] %vm1778_vm2, %v3835_v46  ;;  %v3838_v51 = vpack.c.bf16 %v1621_v47, %v1621_v47  ;;  %v1619_v48 = vmax.f32 %v1407_v5, 0.0  ;;  %v1442_v24 = vmax.f32 %v1440_v43, %v1441_v52  ;;  %v1282_v31 = vpop.f32.mrf.mxu0  ;;  %v6301_v13 = vmax.f32 %v4791_v63, %v4794_v22 }
 0x19d   : > { %v1427_v27 = vsel %vm1393_vm1, %v1282_v31, -inf  ;;  %v1468_v57 = vmax.f32 %v6300_v16, %v1467_v54  ;;  %v1460_v15 = vsel %vm1393_vm1, %v5011_v44, -inf  ;;  %v5123_v17 = vsel %vm1393_vm1, %v4883_v62, -inf }
 0x19e   : > { %1782 = vst.msk [vmem:[#allocation2 + $0xc] sm:$0xf] %vm1778_vm2, %v3838_v51  ;;  %v3836_v55 = vpack.c.bf16 %v1619_v48, %v1619_v48  ;;  %v1624_v9 = vmax.f32 %v1442_v24, 0.0  ;;  %v1428_v32 = vmax.f32 %v1426_v36, %v1427_v27  ;;  %v4228_v28 = vpop.f32.mrf.mxu0  ;;  %v1454_v60 = vmax.f32 %v6301_v13, %v1453_v58 }
 0x19f   : > { %v1448_v39 = vsel %vm1393_vm1, %v4228_v28, -inf  ;;  %v6302_v63 = vmax.f32 %v4800_v0, %v4803_v37  ;;  %v1481_v44 = vsel %vm1393_vm1, %v5015_v23, -inf  ;;  %v1502_v52 = vsel %vm1393_vm1, %v5017_v20, -inf  ;;  %v4415_v0 = vld [vmem:[%s6203_s2 + $0x78] sm:$0xff]  }
 0x1a0   : > { %1780 = vst.msk [vmem:[#allocation2 + $0x4] sm:$0xf] %vm1778_vm2, %v3836_v55  ;;  %v3841_v61 = vpack.c.bf16 %v1624_v9, %v1624_v9  ;;  %v1622_v11 = vmax.f32 %v1428_v32, 0.0  ;;  %v1449_v56 = vmax.f32 %v1447_v35, %v1448_v39  ;;  %v1285_v12 = vpop.f32.mrf.mxu0  ;;  %v6303_v37 = vmax.f32 %v4809_v1, %v4812_v49  ;;  %3939 = vmatprep.subr.bf16.mxu1 %v4415_v0  ;;  %v4416_v1 = vld [vmem:[%s6203_s2 + $0x38] sm:$0xff]   ;;  %v4421_v0 = vld [vmem:[%s6203_s2 + $0x28] sm:$0xff]  }
 0x1a1   : > { %v1434_v18 = vsel %vm1393_vm1, %v1285_v12, -inf  ;;  %v1475_v22 = vmax.f32 %v6302_v63, %v1474_v59  ;;  %v1853_v24 = vld [vmem:[#allocation2 + $0x8] sm:$0xf]  ;;  %v6304_v31 = vmax.f32 %v4818_v2, %v4821_v3  ;;  %v6305_v49 = vmax.f32 %v4831_v6, %v4834_v33  ;;  %3940 = vmatpush3.bf16.msra.mxu1 %v4416_v1  ;;  %v6312_v1 = vld [vmem:[#allocation4_spill] sm:$0xff] }
 0x1a2   : > { %1785 = vst.msk [vmem:[#allocation2 + $0x18] sm:$0xf] %vm1778_vm2, %v3841_v61  ;;  %v3839_v4 = vpack.c.bf16 %v1622_v11, %v1622_v11  ;;  %v1625_v42 = vmax.f32 %v1449_v56, 0.0  ;;  %v1435_v40 = vmax.f32 %v1433_v38, %v1434_v18  ;;  %v4231_v43 = vpop.f32.mrf.mxu0  ;;  %v1461_v23 = vmax.f32 %v6303_v37, %v1460_v15  ;;  %v6311_v37 = vld [vmem:[#allocation34_spill] sm:$0xff] }
 0x1a3   : > { %v1469_v46 = vsel %vm1393_vm1, %v4231_v43, -inf  ;;  %v1496_v20 = vmax.f32 %v6304_v31, %v1495_v30  ;;  %v1851_v28 = vld [vmem:[#allocation2] sm:$0xf]  ;;  %v1482_v2 = vmax.f32 %v6305_v49, %v1481_v44  ;;  %v6306_v3 = vmax.f32 %v4840_v53, %v4843_v10  ;;  %v4418_v53 = vld [vmem:[%s6203_s2 + $0x70] sm:$0xff]  }
 0x1a4   : > { %1783 = vst.msk [vmem:[#allocation2 + $0x10] sm:$0xf] %vm1778_vm2, %v3839_v4  ;;  %v3842_v47 = vpack.c.bf16 %v1625_v42, %v1625_v42  ;;  %v1623_v5 = vmax.f32 %v1435_v40, 0.0  ;;  %v1470_v26 = vmax.f32 %v1468_v57, %v1469_v46  ;;  %v1298_v25 = vpop.f32.mrf.mxu0  ;;  %v1488_v61 = vsel %vm1393_vm1, %v5019_v14, -inf  ;;  %3941 = vmatprep.subr.bf16.mxu1 %v4418_v53  ;;  %v6308_v46 = vld [vmem:[#allocation3_spill] sm:$0xff]  ;;  %v6313_v49 = vld [vmem:[#allocation5_spill] sm:$0xff] }
 0x1a5   : > { %v1455_v36 = vsel %vm1393_vm1, %v1298_v25, -inf  ;;  %v1854_v29 = vld [vmem:[#allocation2 + $0xc] sm:$0xf]  ;;  %v1503_v38 = vmax.f32 %v6306_v3, %v1502_v52  ;;  %v1523_v33 = vsel %vm1393_vm1, %v5021_v19, -inf  ;;  %v6307_v43 = vmax.f32 %v4849_v7, %v4852_v21  ;;  %v4419_v7 = vld [vmem:[%s6203_s2 + $0x30] sm:$0xff]  }
 0x1a6   : > { %1786 = vst.msk [vmem:[#allocation2 + $0x1c] sm:$0xf] %vm1778_vm2, %v3842_v47  ;;  %v3840_v50 = vpack.c.bf16 %v1623_v5, %v1623_v5  ;;  %v1628_v51 = vmax.f32 %v1470_v26, 0.0  ;;  %v1456_v48 = vmax.f32 %v1454_v60, %v1455_v36  ;;  %v4232_v62 = vpop.f32.mrf.mxu0  ;;  %v5144_v27 = vcombine.low %v1853_v24, %v1854_v29  ;;  %v4420_v21 = vld [vmem:[%s6203_s2 + $0x68] sm:$0xff]   ;;  %3942 = vmatpush3.bf16.msra.mxu1 %v4419_v7 }
 0x1a7   : > { %v1476_v34 = vsel %vm1393_vm1, %v4232_v62, -inf  ;;  %v1852_v35 = vld [vmem:[#allocation2 + $0x4] sm:$0xf]  ;;  %v1489_v19 = vmax.f32 %v6307_v43, %v1488_v61  ;;  %v6309_v30 = vmax.f32 %v4858_v8, %v6308_v46  ;;  %3943 = vmatprep.subr.bf16.mxu1 %v4420_v21 }
 0x1a8   : > { %1784 = vst.msk [vmem:[#allocation2 + $0x14] sm:$0xf] %vm1778_vm2, %v3840_v50  ;;  %v3845_v54 = vpack.c.bf16 %v1628_v51, %v1628_v51  ;;  %v1626_v55 = vmax.f32 %v1456_v48, 0.0  ;;  %v1477_v9 = vmax.f32 %v1475_v22, %v1476_v34  ;;  %v1301_v32 = vpop.f32.mrf.mxu0  ;;  %v5147_v45 = vcombine.low %v1852_v35, %v1853_v24  ;;  %v6310_v22 = vld [vmem:[#allocation33_spill] sm:$0xff] }
 0x1a9   : > { %v1462_v39 = vsel %vm1393_vm1, %v1301_v32, -inf  ;;  %v5159_v58 = vcombine.low %v1851_v28, %v1852_v35  ;;  %v1943_v57 = vshll.u32 %v5144_v27, 16  ;;  %v1524_v47 = vmax.f32 %v6309_v30, %v1523_v33  ;;  %v4422_v28 = vld [vmem:[%s6203_s2 + $0x60] sm:$0xff]   ;;  %v4425_v30 = vld [vmem:[%s6203_s2 + $0x58] sm:$0xff]  }
 0x1aa   : > { %1789 = vst.msk [vmem:[#allocation2 + $0x2c] sm:$0xf] %vm1778_vm2, %v3845_v54  ;;  %v3843_v11 = vpack.c.bf16 %v1626_v55, %v1626_v55  ;;  %v1629_v56 = vmax.f32 %v1477_v9, 0.0  ;;  %v1463_v12 = vmax.f32 %v1461_v23, %v1462_v39  ;;  %2066 = vrot.lane.b32.xlu1 %v5147_v45, %s4472_s5  ;;  %v4235_v6 = vpop.f32.mrf.mxu0  ;;  %v1509_v8 = vsel %vm1393_vm1, %v6310_v22, -inf  ;;  %3944 = vmatpush3.bf16.msra.mxu1 %v4421_v0 }
 0x1ab   : > { %v1497_v10 = vsel %vm1393_vm1, %v4235_v6, -inf  ;;  %v1855_v14 = vld [vmem:[#allocation2 + $0x10] sm:$0xf]  ;;  %v1938_v16 = vshll.u32 %v5159_v58, 16  ;;  %v1936_v60 = vshrl.u32 %v5159_v58, 16  ;;  %v1945_v52 = vrot.slane %v1943_v57, 1  ;;  %3945 = vmatprep.subr.bf16.mxu1 %v4422_v28 }
 0x1ac   : > { %1787 = vst.msk [vmem:[#allocation2 + $0x24] sm:$0xf] %vm1778_vm2, %v3843_v11  ;;  %v3846_v18 = vpack.c.bf16 %v1629_v56, %v1629_v56  ;;  %v1627_v59 = vmax.f32 %v1463_v12, 0.0  ;;  %v1498_v4 = vmax.f32 %v1496_v20, %v1497_v10  ;;  %v1314_v42 = vpop.f32.mrf.mxu0  ;;  %v5175_v40 = vcombine.low %v1854_v29, %v1855_v14  ;;  %v4423_v10 = vld [vmem:[%s6203_s2 + $0x20] sm:$0xff]   ;;  %v6317_v57 = vld [vmem:[#allocation7_spill] sm:$0xff] }
 0x1ad   : > { %v1483_v13 = vsel %vm1393_vm1, %v1314_v42, -inf  ;;  %v1940_v15 = vrot.slane %v1938_v16, 1  ;;  %v1530_v23 = vsel %vm1393_vm1, %v6311_v37, -inf  ;;  %v1947_v34 = vshrl.u32 %v5144_v27, 16  ;;  %v6316_v16 = vld [vmem:[#allocation6_spill] sm:$0xff]  ;;  %v6326_v28 = vld [vmem:[#allocation11_spill] sm:$0xff] }
 0x1ae   : > { %1790 = vst.msk [vmem:[#allocation2 + $0x30] sm:$0xf] %vm1778_vm2, %v3846_v18  ;;  %v3844_v5 = vpack.c.bf16 %v1627_v59, %v1627_v59  ;;  %v1632_v26 = vmax.f32 %v1498_v4, 0.0  ;;  %v1484_v25 = vmax.f32 %v1482_v2, %v1483_v13  ;;  %2068 = vrot.lane.b32.xlu0 %v5175_v40, %s4472_s5  ;;  %v4236_v63 = vpop.f32.mrf.mxu0  ;;  %v6314_v2 = vmax.f32 %v6312_v1, %v6313_v49  ;;  %v6319_v4 = vld [vmem:[#allocation36_spill] sm:$0xff] }
 0x1af   : > { %v5196_v44 = vld [vmem:[#allocation2 + $0x14] sm:$0xf]  ;;  %v1504_v36 = vsel %vm1393_vm1, %v4236_v63, -inf  ;;  %v1941_v29 = vor.u32 %v1940_v15, %v1936_v60  ;;  %v1949_v11 = vor.u32 %v1947_v34, %v1945_v52  ;;  %v6318_v18 = vmax.f32 %v6316_v16, %v6317_v57  ;;  %3946 = vmatpush3.bf16.msra.mxu1 %v4423_v10  ;;  %v6330_v10 = vld [vmem:[#allocation13_spill] sm:$0xff]  ;;  %v6332_v57 = vld [vmem:[#allocation40_spill] sm:$0xff] }
 0x1b0   : > { %1788 = vst.msk [vmem:[#allocation2 + $0x28] sm:$0xf] %vm1778_vm2, %v3844_v5  ;;  %v3849_v50 = vpack.c.bf16 %v1632_v26, %v1632_v26  ;;  %v1630_v51 = vmax.f32 %v1484_v25, 0.0  ;;  %v5201_v48 = vcombine.low %v1855_v14, %v5196_v44  ;;  %v1505_v62 = vmax.f32 %v1503_v38, %v1504_v36  ;;  %v1317_v24 = vpop.f32.mrf.mxu0  ;;  %v6315_v38 = vld [vmem:[#allocation35_spill] sm:$0xff]  ;;  %v6320_v5 = vld [vmem:[#allocation37_spill] sm:$0xff]  ;;  %3947 = vmatprep.subr.bf16.mxu1 %v4425_v30  ;;  %v6334_v30 = vld [vmem:[#allocation14_spill] sm:$0xff] }
 0x1b1   : > { %v1490_v31 = vsel %vm1393_vm1, %v1317_v24, -inf  ;;  %v5210_v20 = vsel %vm1934_vm3, %v1941_v29, %v1945_v52  ;;  %v1510_v3 = vmax.f32 %v6314_v2, %v1509_v8  ;;  %v1516_v39 = vsel %vm1393_vm1, %v6315_v38, -inf  ;;  %v1861_v29 = vld [vmem:[#allocation2 + $0x2c] sm:$0xf]  ;;  %v4426_v52 = vld [vmem:[%s6203_s2 + $0x18] sm:$0xff]   ;;  %v6328_v2 = vld [vmem:[#allocation39_spill] sm:$0xff] }
 0x1b2   : > { %1793 = vst.msk [vmem:[#allocation2 + $0x3c] sm:$0xf] %vm1778_vm2, %v3849_v50  ;;  %v3847_v35 = vpack.c.bf16 %v1630_v51, %v1630_v51  ;;  %v1633_v54 = vmax.f32 %v1505_v62, 0.0  ;;  %v1491_v55 = vmax.f32 %v1489_v19, %v1490_v31  ;;  %1966 = vrot.lane.b32.xlu1 %v5210_v20, %s4472_s5  ;;  %v4239_v9 = vpop.f32.mrf.mxu0  ;;  %v1951_v32 = vshll.u32 %v5201_v48, 16  ;;  %v6321_v50 = vld [vmem:[#allocation8_spill] sm:$0xff]  ;;  %v6322_v51 = vld [vmem:[#allocation9_spill] sm:$0xff] }
 0x1b3   : > { %v1525_v61 = vsel %vm1393_vm1, %v4239_v9, -inf  ;;  %v1515_v14 = vmax.f32 %v5110_v41, %v5123_v17  ;;  %v1531_v59 = vmax.f32 %v6318_v18, %v1530_v23  ;;  %v1551_v42 = vsel %vm1393_vm1, %v6319_v4, -inf  ;;  %v1859_v19 = vld [vmem:[#allocation2 + $0x24] sm:$0xf]  ;;  %v6324_v23 = vld [vmem:[#allocation38_spill] sm:$0xff]  ;;  %v4427_v9 = vld [vmem:[%s6203_s2 + $0x50] sm:$0xff]   ;;  %3948 = vmatpush3.bf16.msra.mxu1 %v4426_v52 }
 0x1b4   : > { %1791 = vst.msk [vmem:[#allocation2 + $0x34] sm:$0xf] %vm1778_vm2, %v3847_v35  ;;  %v3850_v56 = vpack.c.bf16 %v1633_v54, %v1633_v54  ;;  %v1631_v12 = vmax.f32 %v1491_v55, 0.0  ;;  %v1526_v6 = vmax.f32 %v1524_v47, %v1525_v61  ;;  %v1330_v53 = vpop.f32.mrf.mxu0  ;;  %v5227_v33 = vrot.slane %v1951_v32, 1  ;;  %v6325_v32 = vld [vmem:[#allocation10_spill] sm:$0xff]  ;;  %3949 = vmatprep.subr.bf16.mxu1 %v4427_v9 }
 0x1b5   : > { %v1511_v43 = vsel %vm1393_vm1, %v1330_v53, -inf  ;;  %v1862_v17 = vld [vmem:[#allocation2 + $0x30] sm:$0xf]  ;;  %v1517_v47 = vmax.f32 %v1515_v14, %v1516_v39  ;;  %v1537_v26 = vsel %vm1393_vm1, %v6320_v5, -inf  ;;  %v6323_v62 = vmax.f32 %v6321_v50, %v6322_v51  ;;  %v6329_v53 = vld [vmem:[#allocation12_spill] sm:$0xff]  ;;  %v5320_v52 = vld [vmem:[%s6203_s2 + $0x8] sm:$0xff]  }
 0x1b6   : > { %1794 = vst.msk [vmem:[#allocation2 + $0x40] sm:$0xf] %vm1778_vm2, %v3850_v56  ;;  %v3848_v13 = vpack.c.bf16 %v1631_v12, %v1631_v12  ;;  %v1636_v60 = vmax.f32 %v1526_v6, 0.0  ;;  %v1512_v15 = vmax.f32 %v1510_v3, %v1511_v43  ;;  %v4240_v46 = vpop.f32.mrf.mxu0  ;;  %v5243_v41 = vsel %vm1934_vm3, %v1949_v11, %v5227_v33  ;;  %v4428_v6 = vld [vmem:[%s6203_s2 + $0x10] sm:$0xff]   ;;  %v6337_v50 = vld [vmem:[#allocation16_spill] sm:$0xff]  ;;  %v6338_v51 = vld [vmem:[#allocation17_spill] sm:$0xff] }
 0x1b7   : > { %v1532_v25 = vsel %vm1393_vm1, %v4240_v46, -inf  ;;  %1968 = vrot.lane.b32.xlu1 %v5243_v41, %s4472_s5  ;;  %v5253_v63 = vld [vmem:[#allocation2 + $0x28] sm:$0xf]  ;;  %v1552_v24 = vmax.f32 %v6323_v62, %v1551_v42  ;;  %v5266_v37 = vcombine.low %v1861_v29, %v1862_v17  ;;  %v1558_v31 = vsel %vm1393_vm1, %v6324_v23, -inf  ;;  %v6333_v42 = vld [vmem:[#allocation41_spill] sm:$0xff]  ;;  %3950 = vmatpush3.bf16.msra.mxu1 %v4428_v6  ;;  %v6341_v23 = vld [vmem:[#allocation19_spill] sm:$0xff] }
 0x1b8   : > { %1792 = vst.msk [vmem:[#allocation2 + $0x38] sm:$0xf] %vm1778_vm2, %v3848_v13  ;;  %v3853_v7 = vpack.c.bf16 %v1636_v60, %v1636_v60  ;;  %v1634_v21 = vmax.f32 %v1512_v15, 0.0  ;;  %v1533_v22 = vmax.f32 %v1531_v59, %v1532_v25  ;;  %v1333_v8 = vpop.f32.mrf.mxu0  ;;  %v5257_v36 = vcombine.low %v1859_v19, %v5253_v63  ;;  %v5307_v46 = vld [vmem:[%s6203_s2 + $0x48] sm:$0xff]  }
 0x1b9   : > { %v1518_v0 = vsel %vm1393_vm1, %v1333_v8, -inf  ;;  %v6327_v1 = vmax.f32 %v6325_v32, %v6326_v28  ;;  %v1544_v3 = vsel %vm1393_vm1, %v6328_v2, -inf  ;;  %v5286_v12 = vcombine.low %v5253_v63, %v1861_v29  ;;  %3951 = vmatprep.subr.bf16.mxu1 %v5307_v46  ;;  %v6345_v2 = vld [vmem:[#allocation44_spill] sm:$0xff] }
 0x1ba   : > { %1797 = vst.msk [vmem:[#allocation2 + $0x50] sm:$0xf] %vm1778_vm2, %v3853_v7  ;;  %v3851_v34 = vpack.c.bf16 %v1634_v21, %v1634_v21  ;;  %v1637_v35 = vmax.f32 %v1533_v22, 0.0  ;;  %v1519_v54 = vmax.f32 %v1517_v47, %v1518_v0  ;;  %1923 = vrot.lane.b32.xlu0 %v5257_v36, %s4473_s24  ;;  %v4243_v55 = vpop.f32.mrf.mxu0  ;;  %v6331_v14 = vmax.f32 %v6329_v53, %v6330_v10  ;;  %v6335_v47 = vld [vmem:[#allocation15_spill] sm:$0xff]  ;;  %v6340_v0 = vld [vmem:[#allocation18_spill] sm:$0xff] }
 0x1bb   : > { %v1538_v49 = vmax.f32 %v6327_v1, %v1537_v26  ;;  %v1553_v38 = vsel %vm1393_vm1, %v4243_v55, -inf  ;;  %1925 = vrot.lane.b32.xlu1 %v5266_v37, %s4473_s24  ;;  %v1579_v18 = vsel %vm1393_vm1, %v6332_v57, -inf  ;;  %v5297_v4 = vld [vmem:[#allocation2 + $0x34] sm:$0xf]  ;;  %v1565_v43 = vsel %vm1393_vm1, %v6333_v42, -inf  ;;  %3952 = vmatpush3.bf16.msra.mxu1 %v5320_v52 }
 0x1bc   : > { %1795 = vst.msk [vmem:[#allocation2 + $0x48] sm:$0xf] %vm1778_vm2, %v3851_v34  ;;  %v3854_v39 = vpack.c.bf16 %v1637_v35, %v1637_v35  ;;  %v1635_v61 = vmax.f32 %v1519_v54, 0.0  ;;  %v1554_v11 = vmax.f32 %v1552_v24, %v1553_v38  ;;  %v1346_v56 = vpop.f32.mrf.mxu0  ;;  %v1559_v16 = vmax.f32 %v6331_v14, %v1558_v31  ;;  %v6344_v1 = vld [vmem:[#allocation43_spill] sm:$0xff]  ;;  %v6346_v38 = vld [vmem:[#allocation45_spill] sm:$0xff] }
 0x1bd   : > { %v1539_v59 = vsel %vm1393_vm1, %v1346_v56, -inf  ;;  %v6336_v5 = vmax.f32 %v6334_v30, %v6335_v47  ;;  %v5315_v29 = vcombine.low %v1862_v17, %v5297_v4  ;;  %v6339_v62 = vmax.f32 %v6337_v50, %v6338_v51  ;;  %v6343_v17 = vld [vmem:[#allocation42_spill] sm:$0xff]  ;;  %v1866_v57 = vld [vmem:[#allocation2 + $0x1c] sm:$0x1] }
 0x1be   : > { %1798 = vst.msk [vmem:[#allocation2 + $0x54] sm:$0xf] %vm1778_vm2, %v3854_v39  ;;  %v3852_v19 = vpack.c.bf16 %v1635_v61, %v1635_v61  ;;  %v1640_v13 = vmax.f32 %v1554_v11, 0.0  ;;  %v1540_v60 = vmax.f32 %v1538_v49, %v1539_v59  ;;  %2080 = vrot.lane.b32.xlu0 %v5286_v12, %s4474_s29  ;;  %v4244_v15 = vpop.f32.mrf.mxu0  ;;  %v6342_v31 = vmax.f32 %v6340_v0, %v6341_v23  ;;  %v6347_v11 = vld [vmem:[#allocation46_spill] sm:$0xff]  ;;  %v6349_v59 = vld [vmem:[#allocation21_spill] sm:$0xff] }
 0x1bf   : > { %v1545_v26 = vmax.f32 %v6336_v5, %v1544_v3  ;;  %v1560_v25 = vsel %vm1393_vm1, %v4244_v15, -inf  ;;  %v1580_v24 = vmax.f32 %v6339_v62, %v1579_v18  ;;  %v1586_v54 = vsel %vm1393_vm1, %v6343_v17, -inf  ;;  %v6348_v18 = vld [vmem:[#allocation20_spill] sm:$0xff]  ;;  %v5359_v15 = vld [vmem:[%s6203_s2 + $0x40] sm:$0xff]   ;;  %v6354_v62 = vld [vmem:[#allocation47_spill] sm:$0xff] }
 0x1c0   : > { %1796 = vst.msk [vmem:[#allocation2 + $0x4c] sm:$0xf] %vm1778_vm2, %v3852_v19  ;;  %v3857_v7 = vpack.c.bf16 %v1640_v13, %v1640_v13  ;;  %v1638_v21 = vmax.f32 %v1540_v60, 0.0  ;;  %v1561_v22 = vmax.f32 %v1559_v16, %v1560_v25  ;;  %v1349_v8 = vpop.f32.mrf.mxu0  ;;  %v1566_v34 = vmax.f32 %v6342_v31, %v1565_v43  ;;  %v5345_v16 = vld [vmem:[#allocation2 + $0x18] sm:$0xf]  ;;  %3953 = vmatprep.subr.bf16.mxu1 %v5359_v15 }
 0x1c1   : > { %v1546_v35 = vsel %vm1393_vm1, %v1349_v8, -inf  ;;  %v1572_v49 = vsel %vm1393_vm1, %v6344_v1, -inf  ;;  %v1607_v3 = vsel %vm1393_vm1, %v6345_v2, -inf  ;;  %v1593_v39 = vsel %vm1393_vm1, %v6346_v38, -inf  ;;  %v5352_v13 = vld [vmem:[#allocation2 + $0x50] sm:$0xf] }
 0x1c2   : > { %1801 = vst.msk [vmem:[#allocation2 + $0x60] sm:$0xf] %vm1778_vm2, %v3857_v7  ;;  %v3855_v55 = vpack.c.bf16 %v1638_v21, %v1638_v21  ;;  %v1641_v9 = vmax.f32 %v1561_v22, 0.0  ;;  %v1547_v32 = vmax.f32 %v1545_v26, %v1546_v35  ;;  %2082 = vrot.lane.b32.xlu0 %v5315_v29, %s4474_s29  ;;  %v4247_v28 = vpop.f32.mrf.mxu0  ;;  %v1614_v56 = vsel %vm1393_vm1, %v6347_v11, -inf  ;;  %v5369_v21 = vld [vmem:[%s6203_s2] sm:$0xff]   ;;  %v6351_v22 = vld [vmem:[#allocation22_spill] sm:$0xff] }
 0x1c3   : > { %v1581_v61 = vsel %vm1393_vm1, %v4247_v28, -inf  ;;  %v6350_v42 = vmax.f32 %v6348_v18, %v6349_v59  ;;  %v1868_v7 = vld [vmem:[#allocation2 + $0x48] sm:$0xf]  ;;  %v6352_v8 = vld [vmem:[#allocation23_spill] sm:$0xff]  ;;  %v5380_v31 = vcombine.low %v5345_v16, %v1866_v57  ;;  %3954 = vmatpush3.bf16.msra.mxu1 %v5369_v21 }
 0x1c4   : > { %1799 = vst.msk [vmem:[#allocation2 + $0x58] sm:$0xf] %vm1778_vm2, %v3855_v55  ;;  %v3858_v6 = vpack.c.bf16 %v1641_v9, %v1641_v9  ;;  %v1639_v53 = vmax.f32 %v1547_v32, 0.0  ;;  %v1582_v10 = vmax.f32 %v1580_v24, %v1581_v61  ;;  %v1362_v14 = vpop.f32.mrf.mxu0  ;;  %v6353_v50 = vmax.f32 %v6351_v22, %v6352_v8  ;;  %v6355_v9 = vld [vmem:[#allocation24_spill] sm:$0xff]  ;;  %v6356_v32 = vld [vmem:[#allocation25_spill] sm:$0xff]  ;;  %v6359_v2 = vld [vmem:[#allocation27_spill] sm:$0xff] }
 0x1c5   : > { %v1587_v43 = vmax.f32 %v6350_v42, %v1586_v54  ;;  %v1567_v19 = vsel %vm1393_vm1, %v1362_v14, -inf  ;;  %v5354_v60 = vld [vmem:[#allocation2 + $0x54] sm:$0xf]  ;;  %v1600_v24 = vsel %vm1393_vm1, %v6354_v62, -inf  ;;  %v6357_v28 = vmax.f32 %v6355_v9, %v6356_v32 }
 0x1c6   : > { %1802 = vst.msk [vmem:[#allocation2 + $0x64] sm:$0xf] %vm1778_vm2, %v3858_v6  ;;  %v3856_v30 = vpack.c.bf16 %v1639_v53, %v1639_v53  ;;  %v1644_v47 = vmax.f32 %v1582_v10, 0.0  ;;  %v1568_v5 = vmax.f32 %v1566_v34, %v1567_v19  ;;  %v4248_v26 = vpop.f32.mrf.mxu0  ;;  %v5364_v25 = vcombine.low %v5352_v13, %v5354_v60  ;;  %v6361_v6 = vld [vmem:[#allocation32_spill] sm:$0xff]  ;;  %v6363_v10 = vld [vmem:[#allocation29_spill] sm:$0xff]  ;;  %v6365_v19 = vld [vmem:[#allocation30_spill] sm:$0xff] }
 0x1c7   : > { %v1573_v51 = vmax.f32 %v6353_v50, %v1572_v49  ;;  %v1588_v0 = vsel %vm1393_vm1, %v4248_v26, -inf  ;;  %v5377_v23 = vld [vmem:[#allocation2 + $0x4c] sm:$0xf]  ;;  %v1608_v1 = vmax.f32 %v6357_v28, %v1607_v3  ;;  %4253 = vmatprep.subr.bf16.mxu1 %v6361_v6  ;;  %v6362_v53 = vld [vmem:[#allocation28_spill] sm:$0xff]  ;;  %v6366_v3 = vld [vmem:[#allocation31_spill] sm:$0xff] }
 0x1c8   : > { %1800 = vst.msk [vmem:[#allocation2 + $0x5c] sm:$0xf] %vm1778_vm2, %v3856_v30  ;;  %v3861_v34 = vpack.c.bf16 %v1644_v47, %v1644_v47  ;;  %v1642_v35 = vmax.f32 %v1568_v5, 0.0  ;;  %v1589_v17 = vmax.f32 %v1587_v43, %v1588_v0  ;;  %1994 = vrot.lane.b32.xlu1 %v5364_v25, %s4474_s29  ;;  %v1365_v54 = vpop.f32.mrf.mxu0  ;;  %v5387_v55 = vcombine.low %v1868_v7, %v5377_v23  ;;  %v6358_v49 = vld [vmem:[#allocation26_spill] sm:$0xff]  ;;  %v5405_v5 = vld [vmem:[#allocation2 + $0x38] sm:$0xf] }
 0x1c9   : > { %v6360_v38 = vmax.f32 %v6358_v49, %v6359_v2  ;;  %v1574_v11 = vsel %vm1393_vm1, %v1365_v54, -inf  ;;  %v6364_v14 = vmax.f32 %v6362_v53, %v6363_v10  ;;  %v6367_v30 = vmax.f32 %v6365_v19, %v6366_v3 }
 0x1ca   : > { %1805 = vst.msk [vmem:[#allocation2 + $0x74] sm:$0xf] %vm1778_vm2, %v3861_v34  ;;  %v3859_v18 = vpack.c.bf16 %v1642_v35, %v1642_v35  ;;  %v1645_v59 = vmax.f32 %v1589_v17, 0.0  ;;  %v1575_v42 = vmax.f32 %v1573_v51, %v1574_v11  ;;  %v4251_v43 = vpop.f32.mrf.mxu0  ;;  %v2024_v26 = vshll.u32 %v5387_v55, 16 }
 0x1cb   : > { %v1594_v61 = vmax.f32 %v6360_v38, %v1593_v39  ;;  %v1615_v57 = vmax.f32 %v6364_v14, %v1614_v56  ;;  %v1601_v47 = vmax.f32 %v6367_v30, %v1600_v24  ;;  %v1609_v39 = vsel %vm1393_vm1, %v4251_v43, -inf  ;;  %v5422_v28 = vld [vmem:[#allocation2 + $0x58] sm:$0xf] }
 0x1cc   : > { %v2029_v7 = vshll.u32 %v5364_v25, 16  ;;  %1803 = vst.msk [vmem:[#allocation2 + $0x6c] sm:$0xf] %vm1778_vm2, %v3859_v18  ;;  %v3862_v56 = vpack.c.bf16 %v1645_v59, %v1645_v59  ;;  %v1643_v22 = vmax.f32 %v1575_v42, 0.0  ;;  %v1610_v8 = vmax.f32 %v1608_v1, %v1609_v39  ;;  %1992 = vrot.lane.b32.xlu1 %v5387_v55, %s4474_s29  ;;  %v1378_v50 = vpop.f32.mrf.mxu0 }
 0x1cd   : > { %v1959_v51 = vshll.u32 %v5380_v31, 16  ;;  %v1595_v62 = vsel %vm1393_vm1, %v1378_v50, -inf  ;;  %v2022_v24 = vshrl.u32 %v5387_v55, 16  ;;  %v2026_v0 = vrot.slane %v2024_v26, 1  ;;  %v1883_v3 = vld [vmem:[#allocation2 + $0x64] sm:$0x1] }
 0x1ce   : > { %v1955_v34 = vshrl.u32 %v5201_v48, 16  ;;  %v5419_v35 = vcombine.low %v5297_v4, %v5405_v5  ;;  %1806 = vst.msk [vmem:[#allocation2 + $0x78] sm:$0xf] %vm1778_vm2, %v3862_v56  ;;  %v3860_v17 = vpack.c.bf16 %v1643_v22, %v1643_v22  ;;  %v1648_v54 = vmax.f32 %v1610_v8, 0.0  ;;  %v4252_v32 = vpop.f32.mrf.mxu0  ;;  %v5457_v56 = vld [vmem:[#allocation2 + $0x60] sm:$0xf] }
 0x1cf   : > { %v1596_v9 = vmax.f32 %v1594_v61, %v1595_v62  ;;  %v1616_v1 = vsel %vm1393_vm1, %v4252_v32, -inf  ;;  %v2027_v49 = vor.u32 %v2026_v0, %v2022_v24  ;;  %v2031_v2 = vrot.slane %v2029_v7, 1  ;;  %v5426_v11 = vld [vmem:[#allocation2 + $0x5c] sm:$0xf] }
 0x1d0   : > { %v1957_v38 = vor.u32 %v1955_v34, %v5227_v33  ;;  %1804 = vst.msk [vmem:[#allocation2 + $0x70] sm:$0xf] %vm1778_vm2, %v3860_v17  ;;  %v3865_v4 = vpack.c.bf16 %v1648_v54, %v1648_v54  ;;  %v1617_v53 = vmax.f32 %v1615_v57, %v1616_v1  ;;  %1927 = vrot.lane.b32.xlu1 %v5419_v35, %s4473_s24  ;;  %v1381_v61 = vpop.f32.mrf.mxu0  ;;  %v1961_v33 = vrot.slane %v1959_v51, 1  ;;  %v5465_v62 = vld [vmem:[#allocation2 + $0x3c] sm:$0xf] }
 0x1d1   : > { %v1646_v6 = vmax.f32 %v1596_v9, 0.0  ;;  %v5433_v10 = vcombine.low %v5422_v28, %v5426_v11  ;;  %v1602_v14 = vsel %vm1393_vm1, %v1381_v61, -inf  ;;  %v5437_v18 = vsel %vm1934_vm3, %v2027_v49, %v2031_v2  ;;  %v2433_v34 = vld [vmem:[#allocation2 + $0x24] sm:$0xf] }
 0x1d2   : > { %1809 = vst.msk [vmem:[#allocation2 + $0x84] sm:$0xf] %vm1778_vm2, %v3865_v4  ;;  %v1649_v42 = vmax.f32 %v1617_v53, 0.0  ;;  %v1603_v43 = vmax.f32 %v1601_v47, %v1602_v14  ;;  %2052 = vrot.lane.b32.xlu0 %v5437_v18, %s4473_s24  ;;  %v5444_v19 = vsel %vm1934_vm3, %v1957_v38, %v1961_v33  ;;  %v5455_v47 = vcombine.low %v5196_v44, %v5345_v16 }
 0x1d3   : > { %6368 = vst [vmem:[#allocation3_spill] sm:$0xff] %v5433_v10  ;;  %v3863_v59 = vpack.c.bf16 %v1646_v6, %v1646_v6  ;;  %v2037_v57 = vshll.u32 %v5433_v10, 16  ;;  %v2033_v22 = vshrl.u32 %v5364_v25, 16  ;;  %v3754_v24 = vcombine.low %v5457_v56, %v1883_v3 }
 0x1d4   : > { %v3866_v26 = vpack.c.bf16 %v1649_v42, %v1649_v42  ;;  %v1647_v7 = vmax.f32 %v1603_v43, 0.0  ;;  %1970 = vrot.lane.b32.xlu1 %v5444_v19, %s4472_s5  ;;  %v3786_v9 = vcombine.low %v2433_v34, %v5253_v63  ;;  %v5479_v32 = vcombine.low %v5465_v62, %v5465_v62 }
 0x1d5   : > { %1807 = vst.msk [vmem:[#allocation2 + $0x7c] sm:$0xf] %vm1778_vm2, %v3863_v59  ;;  %v2039_v8 = vrot.slane %v2037_v57, 1  ;;  %v2035_v44 = vor.u32 %v2033_v22, %v2031_v2  ;;  %v2045_v1 = vshll.u32 %v3754_v24, 16  ;;  %v2041_v49 = vshrl.u32 %v5433_v10, 16 }
 0x1d6   : > { %1810 = vst.msk [vmem:[#allocation2 + $0x88] sm:$0xf] %vm1778_vm2, %v3866_v26  ;;  %v3864_v51 = vpack.c.bf16 %v1647_v7, %v1647_v7  ;;  %2070 = vrot.lane.b32.xlu0 %v5455_v47, %s4472_s5  ;;  %v5486_v4 = vcombine.low %v5405_v5, %v5465_v62  ;;  %v1963_v63 = vshrl.u32 %v5380_v31, 16  ;;  %v2468_v42 = vshll.u32 %v3786_v9, 16 }
 0x1d7   : > { %v4400_v0 = vld [vmem:[#allocation2 + $0x70] sm:$0xff]   ;;  %v5472_v17 = vsel %vm1934_vm3, %v2035_v44, %v2039_v8  ;;  %v2043_v6 = vor.u32 %v2041_v49, %v2039_v8  ;;  %v2047_v59 = vrot.slane %v2045_v1, 1  ;;  %v2049_v22 = vshrl.u32 %v3754_v24, 16 }
 0x1d8   : > { %1808 = vst.msk [vmem:[#allocation2 + $0x80] sm:$0xf] %vm1778_vm2, %v3864_v51  ;;  %1996 = vrot.lane.b32.xlu1 %v5433_v10, %s4474_s29  ;;  %v3236_v54 = vshll.u32 %v4400_v0, 16  ;;  %6369 = vst [vmem:[#allocation33_spill] sm:$0xff] %v5486_v4  ;;  %v3234_v53 = vshrl.u32 %v4400_v0, 16  ;;  %v5491_v14 = vor.u32 %v1963_v63, %v1961_v33  ;;  %v5504_v33 = vcombine.low %v5457_v56, %v5457_v56 }
 0x1d9   : > { %v5496_v5 = vsel %vm1934_vm3, %v2043_v6, %v2047_v59  ;;  %v2470_v44 = vrot.slane %v2468_v42, 1  ;;  %v5508_v0 = vor.u32 %v2049_v22, %v2047_v59  ;;  %v2466_v1 = vshrl.u32 %v3786_v9, 16 }
 0x1da   : > { %2054 = vrot.lane.b32.xlu0 %v5472_v17, %s4473_s24  ;;  %v3238_v38 = vrot.slane %v3236_v54, 1  ;;  %6370 = vst [vmem:[#allocation34_spill] sm:$0xff] %v5504_v33  ;;  %v5511_v54 = vld [vmem:[#allocation2 + $0x1c] sm:$0xf]  ;;  %v2473_v49 = vshll.u32 %v5266_v37, 16  ;;  %v2481_v6 = vshll.u32 %v5419_v35, 16 }
 0x1db   : > { %v2471_v24 = vor.u32 %v2470_v44, %v2466_v1  ;;  %v2099_v59 = vshll.u32 %v5175_v40, 16 }
 0x1dc   : > { %v4401_v2 = vld [vmem:[#allocation2 + $0x78] sm:$0xff]   ;;  %1929 = vrot.lane.b32.xlu1 %v5479_v32, %s4473_s24  ;;  %v3239_v43 = vor.u32 %v3238_v38, %v3234_v53  ;;  %v2475_v38 = vrot.slane %v2473_v49, 1  ;;  %v2094_v53 = vshll.u32 %v5147_v45, 16 }
 0x1dd   : > { %v3241_v61 = vshll.u32 %v4401_v2, 16  ;;  %v3245_v26 = vshrl.u32 %v4401_v2, 16  ;;  %v5521_v2 = vcombine.low %v5511_v54, %v5511_v54  ;;  %v5523_v63 = vld [vmem:[#allocation2 + $0x88] sm:$0x1f]  }
 0x1de   : > { %2084 = vrot.lane.b32.xlu0 %v5486_v4, %s4474_s29  ;;  %6371 = vst [vmem:[#allocation4_spill] sm:$0xff] %v5523_v63  ;;  %v2476_v9 = vsel %vm1934_vm3, %v2471_v24, %v2475_v38  ;;  %v3257_v42 = vshll.u32 %v5523_v63, 16 }
 0x1df   : > { %v3243_v57 = vrot.slane %v3241_v61, 1  ;;  %v4403_v3 = vld [vmem:[#allocation2 + $0x80] sm:$0xff]  }
 0x1e0   : > { %1972 = vrot.lane.b32.xlu1 %v5491_v14, %s4472_s5  ;;  %v3249_v7 = vshll.u32 %v4403_v3, 16  ;;  %v5531_v61 = vld [vmem:[#allocation2 + $0x40] ss:$0 sps:$4 sm:$0xff]   ;;  %v5540_v22 = vrot.slane %v3257_v42, 1 }
 0x1e1   : > { %v3244_v31 = vsel %vm1934_vm3, %v3239_v43, %v3243_v57  ;;  %v3247_v8 = vor.u32 %v3245_v26, %v3243_v57  ;;  %6372 = vst [vmem:[#allocation5_spill] sm:$0xff] %v5531_v61  ;;  %v5537_v43 = vld [vmem:[#allocation2 + $0x70] sm:$0xf]  ;;  %v2483_v26 = vrot.slane %v2481_v6, 1 }
 0x1e2   : > { %2056 = vrot.lane.b32.xlu0 %v5496_v5, %s4473_s24  ;;  %4293 = vmatprep.mubr.msk.bf16.mxu0 %vm1393_vm1, %v3244_v31  ;;  %v3251_v51 = vrot.slane %v3249_v7, 1  ;;  %v2477_v31 = vshrl.u32 %v5266_v37, 16  ;;  %v2096_v7 = vrot.slane %v2094_v53, 1  ;;  %6373 = vst [vmem:[#allocation35_spill] sm:$0xff] %v5540_v22  ;;  %v2434_v53 = vld [vmem:[#allocation2 + $0x40] sm:$0x1] }
 0x1e4   : > { %1998 = vrot.lane.b32.xlu1 %v5504_v33, %s4474_s29  ;;  %v3252_v34 = vsel %vm1934_vm3, %v3247_v8, %v3251_v51  ;;  %v2435_v8 = vld [vmem:[#allocation2 + $0x6c] sm:$0xf]  ;;  %v2479_v44 = vor.u32 %v2477_v31, %v2475_v38  ;;  %v2111_v33 = vshrl.u32 %v5455_v47, 16 }
 0x1e5   : > { %4294 = vmatmul.mubr.msk.bf16.vlgmr.msra.gmra.mxu0 %vm1393_vm1, %v3252_v34  ;;  %v2101_v34 = vrot.slane %v2099_v59, 1  ;;  %v3788_v1 = vcombine.low %v2435_v8, %v5537_v43  ;;  %v5564_v59 = vld [vmem:[#allocation2 + $0x74] sm:$0xf]  ;;  %v5574_v8 = vld [vmem:[#allocation2 + $0x6c] sm:$0xff]  }
 0x1e6   : > { %2058 = vrot.lane.b32.xlu0 %v5508_v0, %s4473_s24 }
 0x1e7   : > { %v2535_v6 = vshll.u32 %v3788_v1, 16 }
 0x1e8   : > { %2451 = vrot.lane.b32.xlu1 %v5210_v20, %s4473_s24  ;;  %v3253_v20 = vshrl.u32 %v4403_v3, 16  ;;  %v2092_v3 = vshrl.u32 %v5147_v45, 16 }
 0x1ea   : > { %2072 = vrot.lane.b32.xlu0 %v5521_v2, %s4472_s5  ;;  %v3255_v57 = vor.u32 %v3253_v20, %v3251_v51  ;;  %v2484_v51 = vsel %vm1934_vm3, %v2479_v44, %v2483_v26  ;;  %v2097_v24 = vor.u32 %v2096_v7, %v2092_v3  ;;  %v5562_v20 = vld [vmem:[#allocation2 + $0x74] sm:$0xff]   ;;  %v3787_v7 = vcombine.low %v5465_v62, %v2434_v53 }
 0x1eb   : > { %v2537_v3 = vrot.slane %v2535_v6, 1  ;;  %v2485_v6 = vshrl.u32 %v5419_v35, 16 }
 0x1ec   : > { %2496 = vrot.lane.b32.xlu1 %v2476_v9, %s4472_s5  ;;  %v5548_v49 = vsel %vm1934_vm3, %v3255_v57, %v5540_v22  ;;  %v5555_v9 = vld [vmem:[#allocation2 + $0x78] sm:$0xf]  ;;  %v5558_v38 = vsel %vm1934_vm3, %v2097_v24, %v2101_v34  ;;  %v2103_v57 = vshrl.u32 %v5175_v40, 16  ;;  %v2533_v24 = vshrl.u32 %v3788_v1, 16 }
 0x1ed   : > { %6374 = vst [vmem:[#allocation6_spill] sm:$0xff] %v5548_v49  ;;  %v3789_v42 = vcombine.low %v5564_v59, %v5555_v9  ;;  %v2489_v53 = vshll.u32 %v3787_v7, 16  ;;  %v2487_v1 = vor.u32 %v2485_v6, %v2483_v26 }
 0x1ee   : > { %2086 = vrot.lane.b32.xlu0 %v5531_v61, %s4474_s29  ;;  %v2105_v44 = vor.u32 %v2103_v57, %v2101_v34  ;;  %v2538_v62 = vor.u32 %v2537_v3, %v2533_v24  ;;  %v1886_v57 = vld [vmem:[#allocation2 + $0x20] sm:$0x1] }
 0x1ef   : > { %v2540_v50 = vshll.u32 %v3789_v42, 16  ;;  %v2491_v22 = vrot.slane %v2489_v53, 1  ;;  %v3763_v24 = vcombine.low %v5511_v54, %v1886_v57  ;;  %v2544_v26 = vshrl.u32 %v3789_v42, 16 }
 0x1f0   : > { %2453 = vrot.lane.b32.xlu1 %v5243_v41, %s4473_s24  ;;  %v2107_v41 = vshll.u32 %v5455_v47, 16 }
 0x1f1   : > { %v2542_v34 = vrot.slane %v2540_v50, 1  ;;  %v2492_v63 = vsel %vm1934_vm3, %v2487_v1, %v2491_v22  ;;  %v2442_v50 = vld [vmem:[#allocation2 + $0x88] sm:$0x1]  ;;  %v2115_v53 = vshll.u32 %v3763_v24, 16 }
 0x1f2   : > { %2571 = vrot.lane.b32.xlu0 %v5286_v12, %s4472_s5  ;;  %v2109_v31 = vrot.slane %v2107_v41, 1  ;;  %v5583_v41 = vld [vmem:[#allocation2 + $0x7c] sm:$0xf] }
 0x1f3   : > { %v2546_v49 = vor.u32 %v2544_v26, %v2542_v34  ;;  %v2117_v1 = vrot.slane %v2115_v53, 1 }
 0x1f4   : > { %2498 = vrot.lane.b32.xlu1 %v2484_v51, %s4472_s5  ;;  %v5576_v51 = vld [vmem:[#allocation2 + $0x80] sm:$0xf]  ;;  %v5581_v39 = vsel %vm1934_vm3, %v2105_v44, %v2109_v31  ;;  %v5593_v44 = vsel %vm1934_vm3, %v2538_v62, %v2542_v34  ;;  %v5604_v62 = vld [vmem:[#allocation2 + $0x84] sm:$0xf]  ;;  %v2113_v42 = vor.u32 %v2111_v33, %v2109_v31  ;;  %v2493_v34 = vshrl.u32 %v3787_v7, 16 }
 0x1f5   : > { %v3790_v30 = vcombine.low %v5583_v41, %v5576_v51  ;;  %v3791_v54 = vcombine.low %v5604_v62, %v2442_v50 }
 0x1f6   : > { %2579 = vrot.lane.b32.xlu0 %v5558_v38, %s4474_s29  ;;  %v5618_v26 = vsel %vm1934_vm3, %v2113_v42, %v2117_v1  ;;  %v5697_v42 = vld [vmem:[#allocation2 + $0x54] sm:$0xff]  }
 0x1f7   : > { %v2548_v3 = vshll.u32 %v3790_v30, 16  ;;  %v2552_v57 = vshrl.u32 %v3790_v30, 16  ;;  %v5628_v30 = vld [vmem:[#allocation2 + $0x84] ss:$0 sps:$4 sm:$0xff]  }
 0x1f8   : > { %2506 = vrot.lane.b32.xlu1 %v5562_v20, %s4474_s29 }
 0x1f9   : > { %v2550_v6 = vrot.slane %v2548_v3, 1  ;;  %v2556_v3 = vshll.u32 %v3791_v54, 16 }
 0x1fa   : > { %2573 = vrot.lane.b32.xlu0 %v5315_v29, %s4472_s5 }
 0x1fb   : > { %v2554_v50 = vor.u32 %v2552_v57, %v2550_v6  ;;  %v2558_v10 = vrot.slane %v2556_v3, 1 }
 0x1fc   : > { %2504 = vrot.lane.b32.xlu1 %v5574_v8, %s4474_s29 }
 0x1fd   : > { %v5624_v33 = vsel %vm1934_vm3, %v2554_v50, %v2558_v10 }
 0x1fe   : > { %2581 = vrot.lane.b32.xlu0 %v5581_v39, %s4474_s29 }
 0x200   : > { %2455 = vrot.lane.b32.xlu1 %v5444_v19, %s4473_s24  ;;  %v5602_v19 = vld [vmem:[#allocation2 + $0x7c] sm:$0xff]  }
 0x202   : > { %2563 = vrot.lane.b32.xlu0 %v5593_v44, %s4473_s24 }
 0x204   : > { %2500 = vrot.lane.b32.xlu1 %v2492_v63, %s4472_s5  ;;  %v5611_v63 = vsel %vm1934_vm3, %v2546_v49, %v2550_v6  ;;  %v2495_v49 = vor.u32 %v2493_v34, %v2491_v22  ;;  %v2119_v22 = vshrl.u32 %v3763_v24, 16  ;;  %v3804_v6 = vcombine.low %v5537_v43, %v5564_v59 }
 0x206   : > { %2575 = vrot.lane.b32.xlu0 %v5486_v4, %s4472_s5  ;;  %v5642_v7 = vor.u32 %v2119_v22, %v2117_v1  ;;  %v5705_v1 = vcombine.low %v5576_v51, %v5604_v62  ;;  %v2847_v62 = vld [vmem:[#allocation2 + $0x64] sm:$0xf] }
 0x208   : > { %2508 = vrot.lane.b32.xlu1 %v5602_v19, %s4474_s29 }
 0x20a   : > { %2565 = vrot.lane.b32.xlu0 %v5611_v63, %s4473_s24 }
 0x20c   : > { %2457 = vrot.lane.b32.xlu1 %v5491_v14, %s4473_s24  ;;  %v2560_v14 = vshrl.u32 %v3791_v54, 16 }
 0x20e   : > { %2583 = vrot.lane.b32.xlu0 %v5618_v26, %s4474_s29  ;;  %v5632_v31 = vor.u32 %v2560_v14, %v2558_v10  ;;  %v6375_v10 = vcombine.low %v5377_v23, %v5352_v13  ;;  %v6376_v23 = vcombine.low %v5354_v60, %v5422_v28  ;;  %v4436_v28 = vld [vmem:[#allocation2 + $0x4c] sm:$0xff]  }
 0x20f   : > { %v2937_v57 = vshll.u32 %v4436_v28, 16  ;;  %v5720_v14 = vld [vmem:[#allocation2 + $0x30] sm:$0xff]  }
 0x210   : > { %2502 = vrot.lane.b32.xlu1 %v2495_v49, %s4472_s5 }
 0x211   : > { %v2939_v49 = vrot.slane %v2937_v57, 1 }
 0x212   : > { %2567 = vrot.lane.b32.xlu0 %v5624_v33, %s4473_s24 }
 0x214   : > { %2510 = vrot.lane.b32.xlu1 %v5628_v30, %s4474_s29 }
 0x216   : > { %2569 = vrot.lane.b32.xlu0 %v5632_v31, %s4473_s24 }
 0x218   : > { %2856 = vrot.lane.b32.xlu1 %v5574_v8, %s4473_s24 }
 0x21a   : > { %2577 = vrot.lane.b32.xlu0 %v5531_v61, %s4472_s5  ;;  %v3803_v61 = vcombine.low %v2847_v62, %v2847_v62 }
 0x21c   : > { %2864 = vrot.lane.b32.xlu1 %v5437_v18, %s4472_s5  ;;  %v2067_v24 = vpop.permute.xlu1 %2066 }
 0x21e   : > { %2585 = vrot.lane.b32.xlu0 %v5642_v7, %s4474_s29 }
 0x220   : > { %2872 = vrot.lane.b32.xlu1 %v5147_v45, %s4474_s29  ;;  %v5665_v53 = vpop.permute.xlu0 %2068 }
 0x222   : > { %2880 = vrot.lane.b32.xlu0 %v5558_v38, %s4473_s24 }
 0x224   : > { %2858 = vrot.lane.b32.xlu1 %v5562_v20, %s4473_s24  ;;  %v1967_v45 = vpop.permute.xlu1 %1966 }
 0x226   : > { %2894 = vrot.lane.b32.xlu0 %v6375_v10, %s4472_s5  ;;  %v2935_v10 = vshrl.u32 %v4436_v28, 16 }
 0x228   : > { %2866 = vrot.lane.b32.xlu1 %v5472_v17, %s4472_s5  ;;  %v2940_v4 = vor.u32 %v2939_v49, %v2935_v10 }
 0x229   : > { %v5667_v13 = vpop.permute.xlu1 %1968 }
 0x22a   : > { %2908 = vrot.lane.b32.xlu0 %v3804_v6, %s4474_s29 }
 0x22c   : > { %2874 = vrot.lane.b32.xlu1 %v5175_v40, %s4474_s29  ;;  %v1924_v43 = vpop.permute.xlu0 %1923  ;;  %v5679_v40 = vcombine.low %v5555_v9, %v5583_v41  ;;  %v6378_v9 = vcombine.low %v5426_v11, %v5457_v56  ;;  %v2942_v11 = vshll.u32 %v5697_v42, 16  ;;  %v4439_v56 = vld [vmem:[#allocation2 + $0x28] sm:$0xff]  }
 0x22d   : > { %v1926_v59 = vpop.permute.xlu1 %1925  ;;  %v2123_v34 = vsel %vm1393_vm1, %v5159_v58, %v1924_v43  ;;  %v2610_v43 = vshll.u32 %v4439_v56, 16  ;;  %v2608_v10 = vshrl.u32 %v4439_v56, 16 }
 0x22e   : > { %2882 = vrot.lane.b32.xlu0 %v5581_v39, %s4473_s24 }
 0x230   : > { %2860 = vrot.lane.b32.xlu1 %v5602_v19, %s4473_s24  ;;  %v5685_v54 = vpop.permute.xlu0 %2080 }
 0x231   : > { %6377 = vst [vmem:[#allocation7_spill] sm:$0xff] %v5685_v54 }
 0x232   : > { %2896 = vrot.lane.b32.xlu0 %v6376_v23, %s4472_s5  ;;  %v2944_v23 = vrot.slane %v2942_v11, 1 }
 0x234   : > { %2868 = vrot.lane.b32.xlu1 %v5496_v5, %s4472_s5  ;;  %v5744_v11 = vsel %vm1934_vm3, %v2940_v4, %v2944_v23 }
 0x236   : > { %2910 = vrot.lane.b32.xlu0 %v5679_v40, %s4474_s29 }
 0x238   : > { %2876 = vrot.lane.b32.xlu1 %v5455_v47, %s4474_s29  ;;  %v5699_v47 = vpop.permute.xlu0 %2082 }
 0x23a   : > { %2884 = vrot.lane.b32.xlu0 %v5618_v26, %s4473_s24  ;;  %v5689_v60 = vpop.permute.xlu1 %1994 }
 0x23c   : > { %2862 = vrot.lane.b32.xlu1 %v5628_v30, %s4473_s24 }
 0x23e   : > { %2898 = vrot.lane.b32.xlu0 %v6378_v9, %s4472_s5  ;;  %v1993_v41 = vpop.permute.xlu1 %1992  ;;  %v5731_v9 = vld [vmem:[#allocation2 + $0x5c] sm:$0xff]  }
 0x240   : > { %2870 = vrot.lane.b32.xlu1 %v5508_v0, %s4472_s5 }
 0x242   : > { %2912 = vrot.lane.b32.xlu0 %v5705_v1, %s4474_s29  ;;  %v5709_v3 = vpop.permute.xlu1 %1927 }
 0x244   : > { %v2053_v50 = vpop.permute.xlu0 %2052  ;;  %2878 = vrot.lane.b32.xlu1 %v5521_v2, %s4474_s29 }
 0x245   : > { %v5718_v51 = vsel %vm1393_vm1, %v5574_v8, %v2053_v50  ;;  %v2133_v8 = vsel %vm2131_vm4, %v2123_v34, %v1967_v45  ;;  %v5740_v45 = vld [vmem:[%s6203_s2 + $0x88] sm:$0xff]   ;;  %v5750_v34 = vld [vmem:[%s6203_s2 + $0x80] sm:$0xff]  }
 0x246   : > { %2886 = vrot.lane.b32.xlu0 %v5642_v7, %s4473_s24  ;;  %v5724_v22 = vpop.permute.xlu1 %1970  ;;  %v2166_v58 = vsel %vm2131_vm4, %v5718_v51, %v2067_v24  ;;  %v2142_v50 = vsel %vm2140_vm5, %v2133_v8, %v1993_v41  ;;  %v2615_v24 = vshll.u32 %v5720_v14, 16  ;;  %v2612_v41 = vrot.slane %v2610_v43, 1  ;;  %v4442_v8 = vld [vmem:[#allocation2 + $0x38] sm:$0xff]   ;;  %v2855_v43 = vld [vmem:[#allocation2 + $0x68] sm:$0x1] }
 0x247   : > { %v2174_v2 = vsel %vm2140_vm5, %v2166_v58, %v5685_v54  ;;  %v5757_v58 = vld [vmem:[#allocation2 + $0x88] ss:$0 sps:$4 sm:$0xff]   ;;  %v5777_v54 = vld [vmem:[%s6203_s2 + $0x78] sm:$0xff]  }
 0x248   : > { %v2071_v57 = vpop.permute.xlu0 %2070  ;;  %2337 = vmatprep.mubr.bf16.mxu1 %v2174_v2  ;;  %3197 = vrot.lane.b32.xlu1 %v3804_v6, %s4472_s5  ;;  %v2950_v6 = vshll.u32 %v5731_v9, 16  ;;  %v2617_v2 = vrot.slane %v2615_v24, 1  ;;  %v2613_v24 = vor.u32 %v2612_v41, %v2608_v10 }
 0x249   : > { %2338 = vmatmul.mubr.bf16.vlgmr.msra.gmra.mxu1 %v2142_v50 }
 0x24a   : > { %2900 = vrot.lane.b32.xlu0 %v3803_v61, %s4472_s5  ;;  %v1997_v28 = vpop.permute.xlu1 %1996  ;;  %4254 = vmatpush3.bf16.msra.mxu1 %v5740_v45  ;;  %v2125_v61 = vsel %vm1393_vm1, %v5144_v27, %v1926_v59  ;;  %v2946_v59 = vshrl.u32 %v5697_v42, 16 }
 0x24b   : > { %4255 = vmatprep.subr.bf16.mxu1 %v5750_v34  ;;  %v2135_v56 = vsel %vm2131_vm4, %v2125_v61, %v5667_v13  ;;  %v5787_v13 = vsel %vm1934_vm3, %v2613_v24, %v2617_v2 }
 0x24c   : > { %v2055_v49 = vpop.permute.xlu0 %2054  ;;  %3205 = vrot.lane.b32.xlu1 %v5744_v11, %s4474_s29  ;;  %v2145_v42 = vsel %vm2140_vm5, %v2135_v56, %v5689_v60  ;;  %v2948_v41 = vor.u32 %v2946_v59, %v2944_v23  ;;  %v2954_v23 = vshrl.u32 %v5731_v9, 16  ;;  %v2127_v59 = vsel %vm1393_vm1, %v5201_v48, %v5709_v3 }
 0x24d   : > { %v5761_v4 = vsel %vm1393_vm1, %v5562_v20, %v2055_v49  ;;  %v2952_v49 = vrot.slane %v2950_v6, 1  ;;  %v2623_v6 = vshll.u32 %v4442_v8, 16 }
 0x24e   : > { %2914 = vrot.lane.b32.xlu0 %v5757_v58, %s4474_s29  ;;  %v1930_v50 = vpop.permute.xlu1 %1929  ;;  %v2168_v27 = vsel %vm2131_vm4, %v5761_v4, %v5665_v53  ;;  %4256 = vmatpush3.bf16.msra.mxu1 %v5750_v34 }
 0x24f   : > { %v2177_v20 = vsel %vm2140_vm5, %v2168_v27, %v5699_v47  ;;  %3985 = vmatprep.subr.bf16.mxu1 %v5777_v54  ;;  %v3811_v27 = vcombine.low %v2847_v62, %v2855_v43  ;;  %v5792_v10 = vsel %vm1934_vm3, %v2948_v41, %v2952_v49  ;;  %v2625_v62 = vrot.slane %v2623_v6, 1  ;;  %v4443_v41 = vld [vmem:[#allocation2 + $0x40] sm:$0x1f]  }
 0x250   : > { %v5780_v53 = vpop.permute.xlu0 %2084  ;;  %2345 = vmatprep.mubr.bf16.mxu1 %v2177_v20  ;;  %3199 = vrot.lane.b32.xlu1 %v5679_v40, %s4472_s5  ;;  %v2619_v40 = vshrl.u32 %v5720_v14, 16  ;;  %v2137_v14 = vsel %vm2131_vm4, %v2127_v59, %v5724_v22  ;;  %v2956_v9 = vor.u32 %v2954_v23, %v2952_v49  ;;  %v2631_v49 = vshll.u32 %v4443_v41, 16 }
 0x251   : > { %6379 = vst [vmem:[#allocation36_spill] sm:$0xff] %v5780_v53  ;;  %2346 = vmatmul.mubr.bf16.gmra.mxu1 %v2145_v42  ;;  %v2958_v43 = vshll.u32 %v3811_v27, 16  ;;  %v2148_v48 = vsel %vm2140_vm5, %v2137_v14, %v1997_v28  ;;  %v3740_v28 = vcombine.low %v5345_v16, %v5345_v16  ;;  %v2962_v16 = vshrl.u32 %v3811_v27, 16 }
 0x252   : > { %3189 = vrot.lane.b32.xlu0 %v5787_v13, %s4473_s24  ;;  %v1973_v61 = vpop.permute.xlu1 %1972  ;;  %v2621_v42 = vor.u32 %v2619_v40, %v2617_v2  ;;  %v2627_v2 = vshrl.u32 %v4442_v8, 16  ;;  %v2635_v27 = vshrl.u32 %v4443_v41, 16 }
 0x253   : > { %v2960_v3 = vrot.slane %v2958_v43, 1  ;;  %v2633_v43 = vrot.slane %v2631_v49, 1  ;;  %v2130_v8 = vsel %vm1393_vm1, %v3740_v28, %v1930_v50  ;;  %v5915_v28 = vld [vmem:[%s6203_s2 + $0x60] sm:$0xff]  }
 0x254   : > { %v2057_v20 = vpop.permute.xlu0 %2056  ;;  %3207 = vrot.lane.b32.xlu1 %v5792_v10, %s4474_s29 }
 0x255   : > { %v5799_v60 = vsel %vm1393_vm1, %v5602_v19, %v2057_v20 }
 0x256   : > { %6380 = vst [vmem:[#allocation37_spill] sm:$0xff] %v5799_v60  ;;  %3181 = vrot.lane.b32.xlu0 %v5593_v44, %s4472_s5  ;;  %v1999_v56 = vpop.permute.xlu1 %1998  ;;  %v2170_v24 = vsel %vm2131_vm4, %v5799_v60, %v2071_v57  ;;  %v5817_v44 = vsel %vm1934_vm3, %v2621_v42, %v2625_v62  ;;  %v5824_v57 = vsel %vm1934_vm3, %v2956_v9, %v2960_v3 }
 0x257   : > { %v2180_v19 = vsel %vm2140_vm5, %v2170_v24, %v5780_v53  ;;  %v5866_v9 = vor.u32 %v2635_v27, %v2633_v43 }
 0x258   : > { %v2059_v6 = vpop.permute.xlu0 %2058  ;;  %2353 = vmatprep.mubr.bf16.mxu1 %v2180_v19  ;;  %3201 = vrot.lane.b32.xlu1 %v5705_v1, %s4472_s5  ;;  %v2629_v1 = vor.u32 %v2627_v2, %v2625_v62  ;;  %v5856_v19 = vor.u32 %v2962_v16, %v2960_v3  ;;  %v5899_v2 = vld [vmem:[%s6203_s2 + $0x68] sm:$0xff]  }
 0x259   : > { %2354 = vmatmul.mubr.bf16.gmra.mxu1 %v2148_v48  ;;  %v5836_v23 = vsel %vm1393_vm1, %v5628_v30, %v2059_v6  ;;  %v5885_v6 = vld [vmem:[%s6203_s2 + $0x70] sm:$0xff]  }
 0x25a   : > { %3191 = vrot.lane.b32.xlu0 %v5817_v44, %s4473_s24  ;;  %v5821_v22 = vpop.permute.xlu1 %2451  ;;  %6381 = vst [vmem:[#allocation8_spill] sm:$0xff] %v5836_v23  ;;  %v5847_v62 = vsel %vm1934_vm3, %v2629_v1, %v2633_v43  ;;  %v5893_v48 = vld [vmem:[%s6203_s2 + $0x30] sm:$0xff]  }
 0x25c   : > { %v2073_v20 = vpop.permute.xlu0 %2072  ;;  %3209 = vrot.lane.b32.xlu1 %v5824_v57, %s4474_s29 }
 0x25d   : > { %v2172_v59 = vsel %vm2131_vm4, %v5836_v23, %v2073_v20 }
 0x25e   : > { %3183 = vrot.lane.b32.xlu0 %v5611_v63, %s4472_s5  ;;  %v5832_v40 = vpop.permute.xlu1 %2496  ;;  %v2139_v63 = vsel %vm2131_vm4, %v2130_v8, %v1973_v61 }
 0x25f   : > { %v2151_v14 = vsel %vm2140_vm5, %v2139_v63, %v1999_v56  ;;  %v5875_v56 = vld [vmem:[%s6203_s2 + $0x38] sm:$0xff]  }
 0x260   : > { %v5841_v24 = vpop.permute.xlu0 %2086  ;;  %3203 = vrot.lane.b32.xlu1 %v5757_v58, %s4472_s5  ;;  %v5929_v63 = vld [vmem:[%s6203_s2 + $0x58] sm:$0xff]  }
 0x261   : > { %6382 = vst [vmem:[#allocation9_spill] sm:$0xff] %v5841_v24  ;;  %v2183_v30 = vsel %vm2140_vm5, %v2172_v59, %v5841_v24  ;;  %v5923_v59 = vld [vmem:[%s6203_s2 + $0x20] sm:$0xff]   ;;  %v2640_v24 = vsel %vm1393_vm1, %v5257_v36, %v5821_v22 }
 0x262   : > { %3193 = vrot.lane.b32.xlu0 %v5847_v62, %s4473_s24  ;;  %2361 = vmatprep.mubr.bf16.mxu1 %v2183_v30  ;;  %v5853_v50 = vpop.permute.xlu1 %2453  ;;  %v5935_v30 = vld [vmem:[%s6203_s2 + $0x18] sm:$0xff]  }
 0x263   : > { %2362 = vmatmul.mubr.bf16.gmra.mxu1 %v2151_v14 }
 0x264   : > { %v2572_v58 = vpop.permute.xlu0 %2571  ;;  %4257 = vmatprep.mubr.msk.bf16.mxu1 %vm1393_vm1, %v5558_v38  ;;  %3211 = vrot.lane.b32.xlu1 %v5856_v19, %s4474_s29 }
 0x266   : > { %3185 = vrot.lane.b32.xlu0 %v5624_v33, %s4472_s5  ;;  %v5864_v61 = vpop.permute.xlu1 %2498 }
 0x268   : > { %v2580_v42 = vpop.permute.xlu0 %2579 }
 0x26a   : > { %3195 = vrot.lane.b32.xlu0 %v5866_v9, %s4473_s24  ;;  %v5880_v41 = vpop.permute.xlu1 %2506 }
 0x26b   : > { %4258 = vmatmul.mubr.msk.bf16.vlgmr.msra.gmra.mxu1 %vm1393_vm1, %v5581_v39 }
 0x26c   : > { %3986 = vmatpush3.bf16.msra.mxu1 %v5875_v56  ;;  %v2574_v33 = vpop.permute.xlu0 %2573  ;;  %4261 = vmatprep.mubr.msk.bf16.mxu1 %vm1393_vm1, %v5618_v26 }
 0x26d   : > { %3987 = vmatprep.subr.bf16.mxu1 %v5885_v6 }
 0x26e   : > { %3187 = vrot.lane.b32.xlu0 %v5632_v31, %s4472_s5  ;;  %v2505_v49 = vpop.permute.xlu1 %2504  ;;  %v5907_v31 = vld [vmem:[%s6203_s2 + $0x28] sm:$0xff]   ;;  %s4305_s5 = smul.u32 28, %s6396_s16 }
 0x270   : > { %3988 = vmatpush3.bf16.msra.mxu1 %v5893_v48  ;;  %v2582_v3 = vpop.permute.xlu0 %2581  ;;  %s6173_s6 = scalar_lea.vmem %s6205_s4, %s4305_s5 }
 0x271   : > { %3989 = vmatprep.subr.bf16.mxu1 %v5899_v2 }
 0x273   : > { %4262 = vmatmul.mubr.msk.bf16.gmra.mxu1 %vm1393_vm1, %v5642_v7 }
 0x274   : > { %3990 = vmatpush3.bf16.msra.mxu1 %v5907_v31  ;;  %v2564_v20 = vpop.permute.xlu0 %2563 }
 0x275   : > { %v2670_v1 = vsel %vm1393_vm1, %v5437_v18, %v2564_v20  ;;  %3991 = vmatprep.subr.bf16.mxu1 %v5915_v28  ;;  %v2456_v18 = vpop.permute.xlu1 %2455 }
 0x276   : > { %v2681_v43 = vsel %vm2131_vm4, %v2670_v1, %v2572_v58  ;;  %v5941_v58 = vld [vmem:[%s6203_s2 + $0x50] sm:$0xff]  }
 0x277   : > { %v2689_v8 = vsel %vm2140_vm5, %v2681_v43, %v2580_v42  ;;  %v5947_v42 = vld [vmem:[%s6203_s2 + $0x10] sm:$0xff]  }
 0x278   : > { %3992 = vmatpush3.bf16.msra.mxu1 %v5923_v59  ;;  %v2576_v16 = vpop.permute.xlu0 %2575  ;;  %2744 = vmatprep.mubr.bf16.mxu1 %v2689_v8 }
 0x279   : > { %3993 = vmatprep.subr.bf16.mxu1 %v5929_v63  ;;  %v2501_v27 = vpop.permute.xlu1 %2500 }
 0x27c   : > { %3994 = vmatpush3.bf16.msra.mxu1 %v5935_v30  ;;  %v2566_v14 = vpop.permute.xlu0 %2565 }
 0x27d   : > { %3995 = vmatprep.subr.bf16.mxu1 %v5941_v58  ;;  %v2509_v43 = vpop.permute.xlu1 %2508  ;;  %v2673_v8 = vsel %vm1393_vm1, %v5472_v17, %v2566_v14  ;;  %v2642_v17 = vsel %vm1393_vm1, %v5266_v37, %v5853_v50  ;;  %v2644_v50 = vsel %vm1393_vm1, %v5419_v35, %v2456_v18 }
 0x27e   : > { %v2683_v53 = vsel %vm2131_vm4, %v2673_v8, %v2574_v33 }
 0x280   : > { %3996 = vmatpush3.bf16.msra.mxu1 %v5947_v42  ;;  %v2584_v20 = vpop.permute.xlu0 %2583 }
 0x281   : > { %3997 = vmatprep.subr.bf16.mxu1 %v5307_v46  ;;  %v2649_v46 = vsel %vm2131_vm4, %v2640_v24, %v5832_v40  ;;  %v2458_v60 = vpop.permute.xlu1 %2457 }
 0x282   : > { %v2647_v8 = vsel %vm1393_vm1, %v5479_v32, %v2458_v60 }
 0x284   : > { %3998 = vmatpush3.bf16.msra.mxu1 %v5320_v52  ;;  %v2568_v1 = vpop.permute.xlu0 %2567  ;;  %v2657_v52 = vsel %vm2140_vm5, %v2649_v46, %v2505_v49  ;;  %v2653_v49 = vsel %vm2131_vm4, %v2644_v50, %v2501_v27 }
 0x285   : > { %3999 = vmatprep.subr.bf16.mxu1 %v5359_v15  ;;  %v2692_v15 = vsel %vm2140_vm5, %v2683_v53, %v2582_v3  ;;  %v2651_v53 = vsel %vm2131_vm4, %v2642_v17, %v5864_v61  ;;  %v2503_v24 = vpop.permute.xlu1 %2502  ;;  %v2663_v14 = vsel %vm2140_vm5, %v2653_v49, %v2509_v43  ;;  %v6024_v17 = vld [vmem:[%s6203_s2 + $0x8] sm:$0xff]  }
 0x286   : > { %v2655_v35 = vsel %vm2131_vm4, %v2647_v8, %v2503_v24 }
 0x288   : > { %4000 = vmatpush3.bf16.msra.mxu1 %v5369_v21  ;;  %v2570_v23 = vpop.permute.xlu0 %2569  ;;  %v2676_v21 = vsel %vm1393_vm1, %v5496_v5, %v2568_v1  ;;  %v2660_v5 = vsel %vm2140_vm5, %v2651_v53, %v5880_v41 }
 0x289   : > { %4265 = vmatprep.subr.bf16.mxu1 %v5740_v45  ;;  %v2685_v40 = vsel %vm2131_vm4, %v2676_v21, %v2576_v16  ;;  %v2511_v37 = vpop.permute.xlu1 %2510  ;;  %v2679_v61 = vsel %vm1393_vm1, %v5508_v0, %v2570_v23  ;;  %v6018_v21 = vld [vmem:[%s6203_s2 + $0x48] sm:$0xff]  }
 0x28a   : > { %v2695_v33 = vsel %vm2140_vm5, %v2685_v40, %v2584_v20  ;;  %v2666_v27 = vsel %vm2140_vm5, %v2655_v35, %v2511_v37 }
 0x28b   : > { %2745 = vmatmul.mubr.bf16.vlgmr.msra.gmra.mxu1 %v2657_v52 }
 0x28c   : > { %2752 = vmatprep.mubr.bf16.mxu1 %v2692_v15  ;;  %4266 = vmatpush3.bf16.msra.mxu1 %v5740_v45  ;;  %v2578_v36 = vpop.permute.xlu0 %2577 }
 0x28d   : > { %4267 = vmatprep.subr.bf16.mxu1 %v5750_v34  ;;  %v2687_v16 = vsel %vm2131_vm4, %v2679_v61, %v2578_v36  ;;  %v2857_v20 = vpop.permute.xlu1 %2856 }
 0x28e   : > { %v2966_v24 = vsel %vm1393_vm1, %v5387_v55, %v2857_v20 }
 0x290   : > { %v2586_v22 = vpop.permute.xlu0 %2585  ;;  %4268 = vmatpush3.bf16.msra.mxu1 %v5750_v34 }
 0x291   : > { %4031 = vmatprep.subr.bf16.mxu1 %v5777_v54  ;;  %v2698_v41 = vsel %vm2140_vm5, %v2687_v16, %v2586_v22  ;;  %v2865_v46 = vpop.permute.xlu1 %2864  ;;  %v6030_v22 = vld [vmem:[%s6203_s2 + $0x40] sm:$0xff]  }
 0x293   : > { %2753 = vmatmul.mubr.bf16.gmra.mxu1 %v2660_v5  ;;  %v6038_v5 = vld [vmem:[%s6203_s2] sm:$0xff]  }
 0x294   : > { %2760 = vmatprep.mubr.bf16.mxu1 %v2695_v33  ;;  %v2881_v3 = vpop.permute.xlu0 %2880  ;;  %v2975_v33 = vsel %vm2131_vm4, %v2966_v24, %v2865_v46 }
 0x295   : > { %v2873_v23 = vpop.permute.xlu1 %2872  ;;  %v2996_v43 = vsel %vm1393_vm1, %v5286_v12, %v2881_v3 }
 0x296   : > { %v2983_v37 = vsel %vm2140_vm5, %v2975_v33, %v2873_v23 }
 0x298   : > { %v2895_v1 = vpop.permute.xlu0 %2894 }
 0x299   : > { %v2859_v60 = vpop.permute.xlu1 %2858 }
 0x29a   : > { %v2968_v16 = vsel %vm1393_vm1, %v5364_v25, %v2859_v60  ;;  %v6384_v25 = vld [vmem:[#allocation3_spill] sm:$0xff] }
 0x29b   : > { %2761 = vmatmul.mubr.bf16.gmra.mxu1 %v2663_v14  ;;  %v6383_v14 = vld [vmem:[#allocation33_spill] sm:$0xff] }
 0x29c   : > { %2768 = vmatprep.mubr.bf16.mxu1 %v2698_v41  ;;  %v2909_v18 = vpop.permute.xlu0 %2908 }
 0x2a0   : > { %v2883_v0 = vpop.permute.xlu0 %2882 }
 0x2a1   : > { %v2999_v3 = vsel %vm1393_vm1, %v5315_v29, %v2883_v0 }
 0x2a3   : > { %2769 = vmatmul.mubr.bf16.gmra.mxu1 %v2666_v27 }
 0x2a4   : > { %4269 = vmatprep.mubr.msk.bf16.mxu1 %vm1393_vm1, %v5787_v13  ;;  %v2897_v32 = vpop.permute.xlu0 %2896  ;;  %v3007_v13 = vsel %vm2131_vm4, %v2996_v43, %v2895_v1 }
 0x2a5   : > { %v3009_v50 = vsel %vm2131_vm4, %v2999_v3, %v2897_v32  ;;  %v6385_v32 = vld [vmem:[#allocation5_spill] sm:$0xff] }
 0x2a8   : > { %v2911_v52 = vpop.permute.xlu0 %2910 }
 0x2a9   : > { %v3018_v55 = vsel %vm2140_vm5, %v3009_v50, %v2911_v52  ;;  %v6386_v52 = vld [vmem:[#allocation34_spill] sm:$0xff] }
 0x2ab   : > { %4270 = vmatmul.mubr.msk.bf16.vlgmr.msra.gmra.mxu1 %vm1393_vm1, %v5817_v44  ;;  %v3015_v44 = vsel %vm2140_vm5, %v3007_v13, %v2909_v18 }
 0x2ac   : > { %4032 = vmatpush3.bf16.msra.mxu1 %v5875_v56  ;;  %4273 = vmatprep.mubr.msk.bf16.mxu1 %vm1393_vm1, %v5847_v62  ;;  %v2867_v62 = vpop.permute.xlu1 %2866  ;;  %v2885_v12 = vpop.permute.xlu0 %2884 }
 0x2ad   : > { %4033 = vmatprep.subr.bf16.mxu1 %v5885_v6  ;;  %v2977_v29 = vsel %vm2131_vm4, %v2968_v16, %v2867_v62  ;;  %v3002_v41 = vsel %vm1393_vm1, %v6383_v14, %v2885_v12  ;;  %v6388_v14 = vld [vmem:[#allocation37_spill] sm:$0xff] }
 0x2b0   : > { %4034 = vmatpush3.bf16.msra.mxu1 %v5893_v48  ;;  %v2875_v15 = vpop.permute.xlu1 %2874 }
 0x2b1   : > { %4035 = vmatprep.subr.bf16.mxu1 %v5899_v2  ;;  %v2986_v8 = vsel %vm2140_vm5, %v2977_v29, %v2875_v15 }
 0x2b3   : > { %4274 = vmatmul.mubr.msk.bf16.gmra.mxu1 %vm1393_vm1, %v5866_v9  ;;  %v2899_v9 = vpop.permute.xlu0 %2898 }
 0x2b4   : > { %4036 = vmatpush3.bf16.msra.mxu1 %v5907_v31  ;;  %3070 = vmatprep.mubr.bf16.mxu1 %v3015_v44  ;;  %v2861_v36 = vpop.permute.xlu1 %2860  ;;  %v3011_v1 = vsel %vm2131_vm4, %v3002_v41, %v2899_v9 }
 0x2b5   : > { %4037 = vmatprep.subr.bf16.mxu1 %v5915_v28  ;;  %v2970_v27 = vsel %vm1393_vm1, %v6384_v25, %v2861_v36 }
 0x2b7   : > { %v2913_v40 = vpop.permute.xlu0 %2912 }
 0x2b8   : > { %4038 = vmatpush3.bf16.msra.mxu1 %v5923_v59  ;;  %v2869_v53 = vpop.permute.xlu1 %2868  ;;  %v3021_v18 = vsel %vm2140_vm5, %v3011_v1, %v2913_v40 }
 0x2b9   : > { %4039 = vmatprep.subr.bf16.mxu1 %v5929_v63  ;;  %v2979_v0 = vsel %vm2131_vm4, %v2970_v27, %v2869_v53 }
 0x2bb   : > { %v2887_v49 = vpop.permute.xlu0 %2886 }
 0x2bc   : > { %4040 = vmatpush3.bf16.msra.mxu1 %v5935_v30  ;;  %v2877_v61 = vpop.permute.xlu1 %2876 }
 0x2bd   : > { %4041 = vmatprep.subr.bf16.mxu1 %v5941_v58  ;;  %v2989_v43 = vsel %vm2140_vm5, %v2979_v0, %v2877_v61 }
 0x2bf   : > { %v2901_v20 = vpop.permute.xlu0 %2900 }
 0x2c0   : > { %4042 = vmatpush3.bf16.msra.mxu1 %v5947_v42  ;;  %v2863_v35 = vpop.permute.xlu1 %2862 }
 0x2c1   : > { %4043 = vmatprep.subr.bf16.mxu1 %v6018_v21  ;;  %v2973_v62 = vsel %vm1393_vm1, %v6386_v52, %v2863_v35  ;;  %v6389_v35 = vld [vmem:[#allocation36_spill] sm:$0xff]  ;;  %v6392_v52 = vld [vmem:[#allocation6_spill] sm:$0xff] }
 0x2c3   : > { %v2915_v46 = vpop.permute.xlu0 %2914 }
 0x2c4   : > { %4044 = vmatpush3.bf16.msra.mxu1 %v6024_v17  ;;  %v2871_v23 = vpop.permute.xlu1 %2870 }
 0x2c5   : > { %4045 = vmatprep.subr.bf16.mxu1 %v6030_v22  ;;  %v2981_v12 = vsel %vm2131_vm4, %v2973_v62, %v2871_v23  ;;  %v6390_v23 = vld [vmem:[#allocation8_spill] sm:$0xff] }
 0x2c7   : > { %v3190_v9 = vpop.permute.xlu0 %3189 }
 0x2c8   : > { %4046 = vmatpush3.bf16.msra.mxu1 %v6038_v5  ;;  %v2879_v44 = vpop.permute.xlu1 %2878  ;;  %v3281_v40 = vsel %vm1393_vm1, %v5558_v38, %v3190_v9 }
 0x2c9   : > { %4277 = vmatprep.subr.bf16.mxu1 %v5740_v45  ;;  %v2992_v15 = vsel %vm2140_vm5, %v2981_v12, %v2879_v44 }
 0x2cb   : > { %3071 = vmatmul.mubr.bf16.vlgmr.msra.gmra.mxu1 %v2983_v37 }
 0x2cc   : > { %3078 = vmatprep.mubr.bf16.mxu1 %v3018_v55  ;;  %4278 = vmatpush3.bf16.msra.mxu1 %v5740_v45  ;;  %v3198_v36 = vpop.permute.xlu1 %3197 }
 0x2cd   : > { %4279 = vmatprep.subr.bf16.mxu1 %v5750_v34  ;;  %v3289_v53 = vsel %vm2131_vm4, %v3281_v40, %v3198_v36  ;;  %v6394_v40 = vld [vmem:[#allocation35_spill] sm:$0xff] }
 0x2d0   : > { %4280 = vmatpush3.bf16.msra.mxu1 %v5750_v34 }
 0x2d1   : > { %4077 = vmatprep.subr.bf16.mxu1 %v5777_v54  ;;  %v3005_v54 = vsel %vm1393_vm1, %v6385_v32, %v2887_v49 }
 0x2d2   : > { %v3013_v60 = vsel %vm2131_vm4, %v3005_v54, %v2901_v20 }
 0x2d3   : > { %3079 = vmatmul.mubr.bf16.gmra.mxu1 %v2986_v8  ;;  %v3024_v13 = vsel %vm2140_vm5, %v3013_v60, %v2915_v46 }
 0x2d4   : > { %3086 = vmatprep.mubr.bf16.mxu1 %v3021_v18 }
 0x2db   : > { %3087 = vmatmul.mubr.bf16.gmra.mxu1 %v2989_v43  ;;  %v6391_v43 = vld [vmem:[#allocation9_spill] sm:$0xff] }
 0x2dc   : > { %3094 = vmatprep.mubr.bf16.mxu1 %v3024_v13 }
 0x2e3   : > { %3095 = vmatmul.mubr.bf16.gmra.mxu1 %v2992_v15  ;;  %v6393_v15 = vld [vmem:[#allocation4_spill] sm:$0xff] }
 0x2e4   : > { %4281 = vmatprep.mubr.msk.bf16.mxu1 %vm1393_vm1, %v5744_v11  ;;  %v3206_v11 = vpop.permute.xlu1 %3205  ;;  %v3261_v9 = vshrl.u32 %v6393_v15, 16 }
 0x2eb   : > { %4282 = vmatmul.mubr.msk.bf16.vlgmr.msra.gmra.mxu1 %vm1393_vm1, %v5792_v10  ;;  %v3297_v10 = vsel %vm2140_vm5, %v3289_v53, %v3206_v11  ;;  %v3263_v53 = vor.u32 %v3261_v9, %v6394_v40 }
 0x2ec   : > { %4078 = vmatpush3.bf16.msra.mxu1 %v5875_v56  ;;  %4285 = vmatprep.mubr.msk.bf16.mxu1 %vm1393_vm1, %v5824_v57  ;;  %v3182_v56 = vpop.permute.xlu0 %3181  ;;  %v3200_v57 = vpop.permute.xlu1 %3199 }
 0x2ed   : > { %4079 = vmatprep.subr.bf16.mxu1 %v5885_v6 }
 0x2f0   : > { %4080 = vmatpush3.bf16.msra.mxu1 %v5893_v48  ;;  %v3192_v38 = vpop.permute.xlu0 %3191 }
 0x2f1   : > { %4081 = vmatprep.subr.bf16.mxu1 %v5899_v2  ;;  %v3283_v48 = vsel %vm1393_vm1, %v5581_v39, %v3192_v38 }
 0x2f3   : > { %4286 = vmatmul.mubr.msk.bf16.gmra.mxu1 %vm1393_vm1, %v5856_v19  ;;  %v3208_v19 = vpop.permute.xlu1 %3207 }
 0x2f4   : > { %4082 = vmatpush3.bf16.msra.mxu1 %v5907_v31  ;;  %3352 = vmatprep.mubr.bf16.mxu1 %v3297_v10  ;;  %v3184_v6 = vpop.permute.xlu0 %3183  ;;  %v3265_v31 = vsel %vm2131_vm4, %v5718_v51, %v3182_v56 }
 0x2f5   : > { %4083 = vmatprep.subr.bf16.mxu1 %v5915_v28 }
 0x2f7   : > { %v3202_v28 = vpop.permute.xlu1 %3201 }
 0x2f8   : > { %4084 = vmatpush3.bf16.msra.mxu1 %v5923_v59  ;;  %v3194_v2 = vpop.permute.xlu0 %3193  ;;  %v3291_v59 = vsel %vm2131_vm4, %v3283_v48, %v3200_v57 }
 0x2f9   : > { %4085 = vmatprep.subr.bf16.mxu1 %v5929_v63  ;;  %v3300_v39 = vsel %vm2140_vm5, %v3291_v59, %v3208_v19 }
 0x2fb   : > { %v3210_v24 = vpop.permute.xlu1 %3209 }
 0x2fc   : > { %4086 = vmatpush3.bf16.msra.mxu1 %v5935_v30  ;;  %v6387_v30 = vld [vmem:[#allocation7_spill] sm:$0xff] }
 0x2fd   : > { %4087 = vmatprep.subr.bf16.mxu1 %v5941_v58  ;;  %v3272_v58 = vsel %vm2140_vm5, %v3265_v31, %v6387_v30 }
 0x2ff   : > { %v3204_v61 = vpop.permute.xlu1 %3203 }
 0x300   : > { %4088 = vmatpush3.bf16.msra.mxu1 %v5947_v42 }
 0x301   : > { %4089 = vmatprep.subr.bf16.mxu1 %v6018_v21  ;;  %v3186_v21 = vpop.permute.xlu0 %3185 }
 0x302   : > { %v3269_v41 = vsel %vm2131_vm4, %v6388_v14, %v3186_v21 }
 0x303   : > { %v3276_v18 = vsel %vm2140_vm5, %v3269_v41, %v6389_v35 }
 0x304   : > { %4090 = vmatpush3.bf16.msra.mxu1 %v6024_v17  ;;  %v3285_v17 = vsel %vm1393_vm1, %v5618_v26, %v3194_v2 }
 0x305   : > { %4091 = vmatprep.subr.bf16.mxu1 %v6030_v22  ;;  %v3293_v37 = vsel %vm2131_vm4, %v3285_v17, %v3202_v28  ;;  %v3196_v55 = vpop.permute.xlu0 %3195 }
 0x306   : > { %v3303_v26 = vsel %vm2140_vm5, %v3293_v37, %v3210_v24 }
 0x308   : > { %4092 = vmatpush3.bf16.msra.mxu1 %v6038_v5  ;;  %v3267_v5 = vsel %vm2131_vm4, %v5761_v4, %v3184_v6  ;;  %v3287_v4 = vsel %vm1393_vm1, %v5642_v7, %v3196_v55 }
 0x309   : > { %4301 = vmatprep.subr.bf16.mxu1 %v5740_v45  ;;  %v3955_v63 = vpop.f32.mrf.mxu1  ;;  %v3295_v20 = vsel %vm2131_vm4, %v3287_v4, %v3204_v61  ;;  %v3188_v46 = vpop.permute.xlu0 %3187 }
 0x30a   : > { %v3271_v32 = vsel %vm2131_vm4, %v6390_v23, %v3188_v46 }
 0x30b   : > { %3353 = vmatmul.mubr.bf16.vlgmr.msra.gmra.mxu1 %v3272_v58  ;;  %v3956_v42 = vpop.f32.mrf.mxu1  ;;  %v3278_v13 = vsel %vm2140_vm5, %v3271_v32, %v6391_v43 }
 0x30c   : > { %3360 = vmatprep.mubr.bf16.mxu1 %v3300_v39  ;;  %4303 = vmatpush3.bf16.msra.mxu1 %v5740_v45  ;;  %v3957_v51 = vadd.f32 %v3956_v42, %v3955_v63  ;;  %v3274_v45 = vsel %vm2140_vm5, %v3267_v5, %v5699_v47  ;;  %v3212_v47 = vpop.permute.xlu1 %3211 }
 0x30d   : > { %v3958_v22 = vpop.f32.mrf.mxu1  ;;  %4302 = vmatprep.subr.bf16.mxu1 %v5750_v34  ;;  %v3306_v25 = vsel %vm2140_vm5, %v3295_v20, %v3212_v47 }
 0x30f   : > { %v3959_v33 = vpop.f32.mrf.mxu1 }
 0x310   : > { %v3960_v3 = vadd.f32 %v3959_v33, %v3958_v22  ;;  %4304 = vmatpush3.bf16.msra.mxu1 %v5750_v34 }
 0x311   : > { %v3961_v50 = vpop.f32.mrf.mxu1 }
 0x313   : > { %3361 = vmatmul.mubr.bf16.gmra.mxu1 %v3274_v45  ;;  %v3962_v49 = vpop.f32.mrf.mxu1 }
 0x314   : > { %3368 = vmatprep.mubr.bf16.mxu1 %v3303_v26  ;;  %v3963_v16 = vadd.f32 %v3962_v49, %v3961_v50 }
 0x315   : > { %v3964_v29 = vpop.f32.mrf.mxu1 }
 0x317   : > { %v3965_v34 = vpop.f32.mrf.mxu1 }
 0x318   : > { %v3966_v1 = vadd.f32 %v3965_v34, %v3964_v29 }
 0x319   : > { %v3967_v8 = vpop.f32.mrf.mxu1 }
 0x31b   : > { %3369 = vmatmul.mubr.bf16.gmra.mxu1 %v3276_v18  ;;  %v3968_v27 = vpop.f32.mrf.mxu1 }
 0x31c   : > { %3376 = vmatprep.mubr.bf16.mxu1 %v3306_v25  ;;  %v3969_v7 = vadd.f32 %v3968_v27, %v3967_v8 }
 0x31d   : > { %v3970_v0 = vpop.f32.mrf.mxu1 }
 0x31f   : > { %v3971_v54 = vpop.f32.mrf.mxu1 }
 0x320   : > { %v3972_v60 = vadd.f32 %v3971_v54, %v3970_v0 }
 0x323   : > { %3377 = vmatmul.mubr.bf16.gmra.mxu1 %v3278_v13  ;;  %v3973_v44 = vpop.f32.mrf.mxu1 }
 0x324   : > { %4297 = vmatprep.mubr.msk.bf16.mxu1 %vm1393_vm1, %v6392_v52 }
 0x325   : > { %v3974_v62 = vpop.f32.mrf.mxu1 }
 0x326   : > { %v3975_v12 = vadd.f32 %v3974_v62, %v3973_v44 }
 0x327   : > { %v3976_v36 = vpop.f32.mrf.mxu1 }
 0x329   : > { %v3977_v11 = vpop.f32.mrf.mxu1 }
 0x32b   : > { %4298 = vmatmul.mubr.msk.bf16.vlgmr.msra.gmra.mxu1 %vm1393_vm1, %v3263_v53  ;;  %v4259_v10 = vpop.f32.mrf.mxu1 }
 0x32c   : > { %v6136_v56 = vadd.f32 %v4259_v10, %v3963_v16 }
 0x32d   : > { %v2403_v38 = vpop.f32.mrf.mxu1 }
 0x32e   : > { %v6138_v57 = vadd.f32 %v3957_v51, %v2403_v38 }
 0x32f   : > { %v4260_v6 = vpop.f32.mrf.mxu1 }
 0x330   : > { %v6140_v19 = vadd.f32 %v4260_v6, %v3966_v1 }
 0x331   : > { %v2406_v48 = vpop.f32.mrf.mxu1 }
 0x332   : > { %v6142_v2 = vadd.f32 %v3960_v3, %v2406_v48 }
 0x333   : > { %v4263_v31 = vpop.f32.mrf.mxu1 }
 0x334   : > { %v6144_v28 = vadd.f32 %v4263_v31, %v3975_v12 }
 0x335   : > { %v2419_v59 = vpop.f32.mrf.mxu1 }
 0x336   : > { %v6146_v63 = vadd.f32 %v3969_v7, %v2419_v59 }
 0x337   : > { %v4264_v30 = vpop.f32.mrf.mxu1 }
 0x339   : > { %v2422_v58 = vpop.f32.mrf.mxu1 }
 0x33a   : > { %v6148_v39 = vadd.f32 %v3972_v60, %v2422_v58 }
 0x34b   : > { %v4001_v42 = vpop.f32.mrf.mxu1 }
 0x34d   : > { %v4002_v21 = vpop.f32.mrf.mxu1 }
 0x34e   : > { %v4003_v51 = vadd.f32 %v4002_v21, %v4001_v42 }
 0x34f   : > { %v4004_v17 = vpop.f32.mrf.mxu1 }
 0x351   : > { %v4005_v22 = vpop.f32.mrf.mxu1 }
 0x352   : > { %v4006_v24 = vadd.f32 %v4005_v22, %v4004_v17 }
 0x353   : > { %v4007_v5 = vpop.f32.mrf.mxu1 }
 0x355   : > { %v4008_v33 = vpop.f32.mrf.mxu1 }
 0x356   : > { %v4009_v3 = vadd.f32 %v4008_v33, %v4007_v5 }
 0x357   : > { %v4010_v37 = vpop.f32.mrf.mxu1 }
 0x359   : > { %v4011_v50 = vpop.f32.mrf.mxu1 }
 0x35a   : > { %v4012_v55 = vadd.f32 %v4011_v50, %v4010_v37 }
 0x35b   : > { %v4013_v45 = vpop.f32.mrf.mxu1 }
 0x35d   : > { %v4014_v26 = vpop.f32.mrf.mxu1 }
 0x35e   : > { %v4015_v49 = vadd.f32 %v4014_v26, %v4013_v45 }
 0x35f   : > { %v4016_v61 = vpop.f32.mrf.mxu1 }
 0x361   : > { %v4017_v16 = vpop.f32.mrf.mxu1 }
 0x362   : > { %v4018_v4 = vadd.f32 %v4017_v16, %v4016_v61 }
 0x363   : > { %v4019_v29 = vpop.f32.mrf.mxu1 }
 0x365   : > { %v4020_v14 = vpop.f32.mrf.mxu1 }
 0x366   : > { %v4021_v41 = vadd.f32 %v4020_v14, %v4019_v29 }
 0x367   : > { %v4022_v34 = vpop.f32.mrf.mxu1 }
 0x369   : > { %v4023_v1 = vpop.f32.mrf.mxu1 }
 0x36b   : > { %v4271_v20 = vpop.f32.mrf.mxu1 }
 0x36c   : > { %v2819_v8 = vadd.f32 %v4271_v20, %v4009_v3 }
 0x36d   : > { %v2810_v47 = vpop.f32.mrf.mxu1 }
 0x36e   : > { %v2842_v35 = vmax.f32 %v6136_v56, %v2819_v8  ;;  %v2811_v18 = vadd.f32 %v4003_v51, %v2810_v47 }
 0x36f   : > { %v4272_v25 = vpop.f32.mrf.mxu1 }
 0x370   : > { %v2840_v27 = vmax.f32 %v6138_v57, %v2811_v18  ;;  %v2822_v46 = vadd.f32 %v4272_v25, %v4012_v55 }
 0x371   : > { %v2813_v7 = vpop.f32.mrf.mxu1 }
 0x372   : > { %v2843_v0 = vmax.f32 %v6140_v19, %v2822_v46  ;;  %v2814_v23 = vadd.f32 %v4006_v24, %v2813_v7 }
 0x373   : > { %v4275_v32 = vpop.f32.mrf.mxu1 }
 0x374   : > { %v2841_v54 = vmax.f32 %v6142_v2, %v2814_v23  ;;  %v2835_v60 = vadd.f32 %v4275_v32, %v4021_v41  ;;  %v6166_v32 = vld [vmem:[%s6204_s3] ss:$0 sm:$0xff] }
 0x375   : > { %v2826_v43 = vpop.f32.mrf.mxu1 }
 0x376   : > { %v2846_v13 = vmax.f32 %v6144_v28, %v2835_v60  ;;  %v2827_v44 = vadd.f32 %v4015_v49, %v2826_v43 }
 0x377   : > { %v4276_v52 = vpop.f32.mrf.mxu1 }
 0x378   : > { %v2844_v62 = vmax.f32 %v6146_v63, %v2827_v44 }
 0x379   : > { %v2829_v12 = vpop.f32.mrf.mxu1 }
 0x37a   : > { %v2830_v15 = vadd.f32 %v4018_v4, %v2829_v12 }
 0x37c   : > { %v2845_v9 = vmax.f32 %v6148_v39, %v2830_v15 }
 0x38b   : > { %v4047_v36 = vpop.f32.mrf.mxu1 }
 0x38d   : > { %v4048_v40 = vpop.f32.mrf.mxu1 }
 0x38e   : > { %v4049_v51 = vadd.f32 %v4048_v40, %v4047_v36 }
 0x38f   : > { %v4050_v53 = vpop.f32.mrf.mxu1 }
 0x391   : > { %v4051_v11 = vpop.f32.mrf.mxu1 }
 0x392   : > { %v4052_v37 = vadd.f32 %v4051_v11, %v4050_v53 }
 0x393   : > { %v4053_v10 = vpop.f32.mrf.mxu1 }
 0x395   : > { %v4054_v56 = vpop.f32.mrf.mxu1 }
 0x396   : > { %v4055_v39 = vadd.f32 %v4054_v56, %v4053_v10 }
 0x397   : > { %v4056_v38 = vpop.f32.mrf.mxu1 }
 0x399   : > { %v4057_v57 = vpop.f32.mrf.mxu1 }
 0x39a   : > { %v4058_v24 = vadd.f32 %v4057_v57, %v4056_v38 }
 0x39b   : > { %v4059_v6 = vpop.f32.mrf.mxu1 }
 0x39d   : > { %v4060_v19 = vpop.f32.mrf.mxu1 }
 0x39e   : > { %v4061_v48 = vadd.f32 %v4060_v19, %v4059_v6 }
 0x39f   : > { %v4062_v2 = vpop.f32.mrf.mxu1 }
 0x3a1   : > { %v4063_v31 = vpop.f32.mrf.mxu1 }
 0x3a2   : > { %v4064_v28 = vadd.f32 %v4063_v31, %v4062_v2 }
 0x3a3   : > { %v4065_v59 = vpop.f32.mrf.mxu1 }
 0x3a5   : > { %v4066_v63 = vpop.f32.mrf.mxu1 }
 0x3a6   : > { %v4067_v30 = vadd.f32 %v4066_v63, %v4065_v59 }
 0x3a7   : > { %v4068_v58 = vpop.f32.mrf.mxu1 }
 0x3a9   : > { %v4069_v42 = vpop.f32.mrf.mxu1 }
 0x3ab   : > { %v4283_v21 = vpop.f32.mrf.mxu1 }
 0x3ac   : > { %v3145_v17 = vadd.f32 %v4283_v21, %v4055_v39 }
 0x3ad   : > { %v3136_v22 = vpop.f32.mrf.mxu1 }
 0x3ae   : > { %v3168_v5 = vmax.f32 %v2842_v35, %v3145_v17  ;;  %v3137_v33 = vadd.f32 %v4049_v51, %v3136_v22  ;;  %v4295_v35 = vpop.f32.mrf.mxu0 }
 0x3af   : > { %v4284_v3 = vpop.f32.mrf.mxu1 }
 0x3b0   : > { %v3166_v50 = vmax.f32 %v2840_v27, %v3137_v33  ;;  %v3148_v55 = vadd.f32 %v4284_v3, %v4058_v24  ;;  %v3418_v18 = vpop.f32.mrf.mxu0 }
 0x3b1   : > { %v3139_v45 = vpop.f32.mrf.mxu1 }
 0x3b2   : > { %v3169_v26 = vmax.f32 %v2843_v0, %v3148_v55  ;;  %v3140_v49 = vadd.f32 %v4052_v37, %v3139_v45  ;;  %v4296_v7 = vpop.f32.mrf.mxu0 }
 0x3b3   : > { %v4287_v61 = vpop.f32.mrf.mxu1 }
 0x3b4   : > { %v3167_v16 = vmax.f32 %v2841_v54, %v3140_v49  ;;  %v3161_v4 = vadd.f32 %v4287_v61, %v4067_v30 }
 0x3b5   : > { %v3152_v29 = vpop.f32.mrf.mxu1 }
 0x3b6   : > { %v6157_v14 = vmax.f32 %v2846_v13, %v3161_v4  ;;  %v3153_v41 = vadd.f32 %v4061_v48, %v3152_v29  ;;  %v3421_v13 = vpop.f32.mrf.mxu0 }
 0x3b7   : > { %v4288_v34 = vpop.f32.mrf.mxu1 }
 0x3b8   : > { %v6159_v1 = vmax.f32 %v2844_v62, %v3153_v41 }
 0x3b9   : > { %v3155_v20 = vpop.f32.mrf.mxu1 }
 0x3ba   : > { %v3156_v8 = vadd.f32 %v4064_v28, %v3155_v20 }
 0x3bc   : > { %v6161_v47 = vmax.f32 %v2845_v9, %v3156_v8 }
 0x3cb   : > { %v4093_v25 = vpop.f32.mrf.mxu1 }
 0x3cd   : > { %v4094_v27 = vpop.f32.mrf.mxu1 }
 0x3ce   : > { %v4095_v46 = vadd.f32 %v4094_v27, %v4093_v25 }
 0x3cf   : > { %v4096_v0 = vpop.f32.mrf.mxu1 }
 0x3d0   : > { %v3419_v23 = vadd.f32 %v4095_v46, %v3418_v18 }
 0x3d1   : > { %v4097_v54 = vpop.f32.mrf.mxu1 }
 0x3d2   : > { %v3448_v60 = vmax.f32 %v3166_v50, %v3419_v23  ;;  %v4098_v43 = vadd.f32 %v4097_v54, %v4096_v0 }
 0x3d3   : > { %v4099_v44 = vpop.f32.mrf.mxu1 }
 0x3d4   : > { %v3462_v52 = vadd.f32 %v6166_v32, %v3448_v60  ;;  %v3422_v62 = vadd.f32 %v4098_v43, %v3421_v13 }
 0x3d5   : > { %v4100_v12 = vpop.f32.mrf.mxu1 }
 0x3d6   : > { %v3469_v15 = vmax.f32 %v3462_v52, 0.0  ;;  %v3449_v9 = vmax.f32 %v3167_v16, %v3422_v62  ;;  %v4101_v36 = vadd.f32 %v4100_v12, %v4099_v44 }
 0x3d7   : > { %v4102_v40 = vpop.f32.mrf.mxu1 }
 0x3d8   : > { %v3867_v53 = vpack.c.bf16 %v3469_v15, %v3469_v15  ;;  %v3463_v11 = vadd.f32 %v6166_v32, %v3449_v9  ;;  %v3427_v10 = vadd.f32 %v4295_v35, %v4101_v36 }
 0x3d9   : > { %v4103_v56 = vpop.f32.mrf.mxu1 }
 0x3da   : > { %3506 = vst.msk [vmem:[%s6173_s6] sm:$0xf] %vm3505_vm6, %v3867_v53  ;;  %v3470_v38 = vmax.f32 %v3463_v11, 0.0  ;;  %v3450_v57 = vmax.f32 %v3168_v5, %v3427_v10  ;;  %v4104_v6 = vadd.f32 %v4103_v56, %v4102_v40 }
 0x3db   : > { %v4105_v19 = vpop.f32.mrf.mxu1 }
 0x3dc   : > { %v3868_v48 = vpack.c.bf16 %v3470_v38, %v3470_v38  ;;  %v3464_v2 = vadd.f32 %v6166_v32, %v3450_v57  ;;  %v3430_v31 = vadd.f32 %v4296_v7, %v4104_v6 }
 0x3dd   : > { %v4106_v28 = vpop.f32.mrf.mxu1 }
 0x3de   : > { %3507 = vst.msk [vmem:[%s6173_s6 + $0x4] sm:$0xf] %vm3505_vm6, %v3868_v48  ;;  %v3471_v59 = vmax.f32 %v3464_v2, 0.0  ;;  %v3451_v63 = vmax.f32 %v3169_v26, %v3430_v31  ;;  %v4107_v37 = vadd.f32 %v4106_v28, %v4105_v19 }
 0x3df   : > { %v4108_v30 = vpop.f32.mrf.mxu1 }
 0x3e0   : > { %v3869_v58 = vpack.c.bf16 %v3471_v59, %v3471_v59  ;;  %v3465_v42 = vadd.f32 %v6166_v32, %v3451_v63 }
 0x3e1   : > { %v4109_v39 = vpop.f32.mrf.mxu1 }
 0x3e2   : > { %3508 = vst.msk [vmem:[%s6173_s6 + $0x8] sm:$0xf] %vm3505_vm6, %v3869_v58  ;;  %v3472_v21 = vmax.f32 %v3465_v42, 0.0  ;;  %v4110_v61 = vadd.f32 %v4109_v39, %v4108_v30 }
 0x3e3   : > { %v4111_v51 = vpop.f32.mrf.mxu1 }
 0x3e4   : > { %v3870_v17 = vpack.c.bf16 %v3472_v21, %v3472_v21 }
 0x3e5   : > { %v4112_v22 = vpop.f32.mrf.mxu1 }
 0x3e6   : > { %3509 = vst.msk [vmem:[%s6173_s6 + $0xc] sm:$0xf] %vm3505_vm6, %v3870_v17  ;;  %v4113_v33 = vadd.f32 %v4112_v22, %v4111_v51 }
 0x3e7   : > { %v4114_v24 = vpop.f32.mrf.mxu1 }
 0x3e9   : > { %v4115_v5 = vpop.f32.mrf.mxu1 }
 0x3eb   : > { %v4299_v3 = vpop.f32.mrf.mxu1 }
 0x3ec   : > { %v3443_v50 = vadd.f32 %v4299_v3, %v4113_v33 }
 0x3ed   : > { %v3434_v55 = vpop.f32.mrf.mxu1 }
 0x3ee   : > { %v3454_v45 = vmax.f32 %v6157_v14, %v3443_v50  ;;  %v3435_v26 = vadd.f32 %v4107_v37, %v3434_v55 }
 0x3ef   : > { %v4300_v49 = vpop.f32.mrf.mxu1 }
 0x3f0   : > { %v3468_v16 = vadd.f32 %v6166_v32, %v3454_v45  ;;  %v3452_v4 = vmax.f32 %v6159_v1, %v3435_v26 }
 0x3f1   : > { %v3437_v29 = vpop.f32.mrf.mxu1 }
 0x3f2   : > { %v3475_v41 = vmax.f32 %v3468_v16, 0.0  ;;  %v3466_v34 = vadd.f32 %v6166_v32, %v3452_v4  ;;  %v3438_v20 = vadd.f32 %v4110_v61, %v3437_v29 }
 0x3f4   : > { %v3873_v8 = vpack.c.bf16 %v3475_v41, %v3475_v41  ;;  %v3473_v35 = vmax.f32 %v3466_v34, 0.0  ;;  %v3453_v18 = vmax.f32 %v6161_v47, %v3438_v20 }
 0x3f6   : > { %3512 = vst.msk [vmem:[%s6173_s6 + $0x18] sm:$0xf] %vm3505_vm6, %v3873_v8  ;;  %v3871_v14 = vpack.c.bf16 %v3473_v35, %v3473_v35  ;;  %v3467_v25 = vadd.f32 %v6166_v32, %v3453_v18 }
 0x3f8   : > { %3510 = vst.msk [vmem:[%s6173_s6 + $0x10] sm:$0xf] %vm3505_vm6, %v3871_v14  ;;  %v3474_v27 = vmax.f32 %v3467_v25, 0.0 }
 0x3fa   : > { %v3872_v46 = vpack.c.bf16 %v3474_v27, %v3474_v27 }
 0x3fc   : > { %3511 = vst.msk [vmem:[%s6173_s6 + $0x14] sm:$0xf] %vm3505_vm6, %v3872_v46 }
 0x3fd PF: > { %s14_s15 = sadd.s32 1, %s4469_s15  }
 0x3fe   : > { %p11_p4 = scmp.ge.s32.totalorder %s14_s15, 4  }
 0x400   :  { %13 = sbr.rel (!%p11_p4) target bundleno = 1 (0x1), region = 69 }

// kernel: simple_cnn_forward.3
= control target key start
LH: loop header
LB: loop body
LE: loop exit
PB: predicated region body
PF: predicated region fallthrough
CT: control target
= control target key end

     0   :  { %vm3472_vm0 = vmmov 0   ;;  %s4250_s1 = inlined_call_operand.vmem [shape: bf16[3584,128], index: 1, kind: input, shape index: {}]   ;;  %s4251_s0 = inlined_call_operand.vmem [shape: bf16[8,3584], index: 0, kind: input, shape index: {}]   ;;  %s4252_s2 = inlined_call_operand.vmem [shape: f32[1,128], index: 2, kind: input, shape index: {}]   ;;  %s4253_s3 = inlined_call_operand.vmem [shape: bf16[128,128], index: 3, kind: input, shape index: {}]   ;;  %s4254_s4 = inlined_call_operand.vmem [shape: f32[1,128], index: 4, kind: input, shape index: {}]   ;;  %s4255_s5 = inlined_call_operand.vmem [shape: f32[8,128], index: 5, kind: output, shape index: {}]  }
   0x1   :  { %v3211_v0 = vld [vmem:[%s4250_s1 + $0x78] sm:$0xff]   ;;  %v3215_v4 = vld [vmem:[%s4250_s1 + $0x70] sm:$0xff]   ;;  %v3219_v8 = vld [vmem:[%s4250_s1 + $0x68] sm:$0xff]  }
   0x2   :  { %v3212_v1 = vld [vmem:[%s4250_s1 + $0xf8] sm:$0xff]   ;;  %2872 = vmatprep.subr.bf16.mxu0 %v3211_v0  ;;  %v3216_v5 = vld [vmem:[%s4250_s1 + $0xf0] sm:$0xff]   ;;  %v3220_v9 = vld [vmem:[%s4250_s1 + $0xe8] sm:$0xff]  }
   0x3   :  { %v3213_v2 = vld [vmem:[%s4250_s1 + $0x38] sm:$0xff]   ;;  %2894 = vmatprep.subr.bf16.mxu1 %v3212_v1  ;;  %v3217_v6 = vld [vmem:[%s4250_s1 + $0x30] sm:$0xff]   ;;  %v3221_v10 = vld [vmem:[%s4250_s1 + $0x28] sm:$0xff]  }
   0x4   :  { %v3214_v3 = vld [vmem:[%s4250_s1 + $0xb8] sm:$0xff]   ;;  %2873 = vmatpush3.bf16.msra.mxu0 %v3213_v2  ;;  %v3218_v7 = vld [vmem:[%s4250_s1 + $0xb0] sm:$0xff]   ;;  %v3222_v11 = vld [vmem:[%s4250_s1 + $0xa8] sm:$0xff]  }
   0x5   :  { %2895 = vmatpush3.bf16.msra.mxu1 %v3214_v3  ;;  %2874 = vmatprep.subr.bf16.mxu0 %v3215_v4  ;;  %v3223_v12 = vld [vmem:[%s4250_s1 + $0x60] sm:$0xff]   ;;  %v3227_v16 = vld [vmem:[%s4250_s1 + $0x58] sm:$0xff]   ;;  %v3231_v20 = vld [vmem:[%s4250_s1 + $0x50] sm:$0xff]  }
   0x6   :  { %2896 = vmatprep.subr.bf16.mxu1 %v3216_v5  ;;  %v3224_v13 = vld [vmem:[%s4250_s1 + $0xe0] sm:$0xff]   ;;  %v3228_v17 = vld [vmem:[%s4250_s1 + $0xd8] sm:$0xff]   ;;  %v3232_v21 = vld [vmem:[%s4250_s1 + $0xd0] sm:$0xff]  }
   0x7   :  { %v3225_v14 = vld [vmem:[%s4250_s1 + $0x20] sm:$0xff]   ;;  %v3229_v18 = vld [vmem:[%s4250_s1 + $0x18] sm:$0xff]   ;;  %v3233_v22 = vld [vmem:[%s4250_s1 + $0x10] sm:$0xff]  }
   0x8   :  { %2875 = vmatpush3.bf16.msra.mxu0 %v3217_v6  ;;  %v3226_v15 = vld [vmem:[%s4250_s1 + $0xa0] sm:$0xff]   ;;  %v3230_v19 = vld [vmem:[%s4250_s1 + $0x98] sm:$0xff]   ;;  %v3234_v23 = vld [vmem:[%s4250_s1 + $0x90] sm:$0xff]  }
   0x9   :  { %2897 = vmatpush3.bf16.msra.mxu1 %v3218_v7  ;;  %2876 = vmatprep.subr.bf16.mxu0 %v3219_v8  ;;  %v3235_v24 = vld [vmem:[%s4250_s1 + $0x48] sm:$0xff]   ;;  %v3239_v28 = vld [vmem:[%s4250_s1 + $0x40] sm:$0xff]   ;;  %v3247_v38 = vld [vmem:[%s4250_s1 + $0x178] sm:$0xff]  }
   0xa   :  { %2898 = vmatprep.subr.bf16.mxu1 %v3220_v9  ;;  %v3236_v25 = vld [vmem:[%s4250_s1 + $0xc8] sm:$0xff]   ;;  %v3240_v29 = vld [vmem:[%s4250_s1 + $0xc0] sm:$0xff]   ;;  %v3248_v39 = vld [vmem:[%s4250_s1 + $0x1f8] sm:$0xff]  }
   0xb   :  { %v3237_v26 = vld [vmem:[%s4250_s1 + $0x8] sm:$0xff]   ;;  %v3241_v30 = vld [vmem:[%s4250_s1] sm:$0xff]   ;;  %v3249_v40 = vld [vmem:[%s4250_s1 + $0x138] sm:$0xff]  }
   0xc   :  { %2877 = vmatpush3.bf16.msra.mxu0 %v3221_v10  ;;  %v3238_v27 = vld [vmem:[%s4250_s1 + $0x88] sm:$0xff]   ;;  %v3242_v31 = vld [vmem:[%s4250_s1 + $0x80] sm:$0xff]   ;;  %v3250_v41 = vld [vmem:[%s4250_s1 + $0x1b8] sm:$0xff]  }
   0xd   :  { %2899 = vmatpush3.bf16.msra.mxu1 %v3222_v11  ;;  %2878 = vmatprep.subr.bf16.mxu0 %v3223_v12  ;;  %v21_v32 = vld [vmem:[%s4251_s0] sm:$0xff]  ;;  %v22_v33 = vld [vmem:[%s4251_s0 + $0x8] sm:$0xff]  ;;  %v3251_v42 = vld [vmem:[%s4250_s1 + $0x170] sm:$0xff]  }
   0xe   :  { %2900 = vmatprep.subr.bf16.mxu1 %v3224_v13  ;;  %v2611_v34 = vcombine.low %v21_v32, %v21_v32  ;;  %v2612_v35 = vcombine.high %v21_v32, %v21_v32  ;;  %v2613_v36 = vcombine.low %v22_v33, %v22_v33  ;;  %v2614_v37 = vcombine.high %v22_v33, %v22_v33  ;;  %v3252_v43 = vld [vmem:[%s4250_s1 + $0x1f0] sm:$0xff]   ;;  %v3255_v46 = vld [vmem:[%s4250_s1 + $0x168] sm:$0xff]   ;;  %v3259_v50 = vld [vmem:[%s4250_s1 + $0x160] sm:$0xff]  }
   0xf   :  { %v3253_v44 = vld [vmem:[%s4250_s1 + $0x130] sm:$0xff]   ;;  %v3256_v47 = vld [vmem:[%s4250_s1 + $0x1e8] sm:$0xff]   ;;  %v3260_v51 = vld [vmem:[%s4250_s1 + $0x1e0] sm:$0xff]  }
  0x10   :  { %2879 = vmatpush3.bf16.msra.mxu0 %v3225_v14  ;;  %1964 = vmatprep.mubr.bf16.mxu0 %v2612_v35  ;;  %v3254_v45 = vld [vmem:[%s4250_s1 + $0x1b0] sm:$0xff]   ;;  %v3257_v48 = vld [vmem:[%s4250_s1 + $0x128] sm:$0xff]   ;;  %v3261_v52 = vld [vmem:[%s4250_s1 + $0x120] sm:$0xff]  }
  0x11   :  { %2901 = vmatpush3.bf16.msra.mxu1 %v3226_v15  ;;  %2880 = vmatprep.subr.bf16.mxu0 %v3227_v16  ;;  %v3258_v49 = vld [vmem:[%s4250_s1 + $0x1a8] sm:$0xff]   ;;  %v3262_v53 = vld [vmem:[%s4250_s1 + $0x1a0] sm:$0xff]   ;;  %v3263_v54 = vld [vmem:[%s4250_s1 + $0x158] sm:$0xff]  }
  0x12   :  { %2902 = vmatprep.subr.bf16.mxu1 %v3228_v17  ;;  %2004 = vmatprep.mubr.bf16.mxu1 %v2614_v37  ;;  %v3264_v55 = vld [vmem:[%s4250_s1 + $0x1d8] sm:$0xff]   ;;  %v3267_v58 = vld [vmem:[%s4250_s1 + $0x150] sm:$0xff]   ;;  %v3271_v62 = vld [vmem:[%s4250_s1 + $0x148] sm:$0xff]  }
  0x13   :  { %v3265_v56 = vld [vmem:[%s4250_s1 + $0x118] sm:$0xff]   ;;  %v3268_v59 = vld [vmem:[%s4250_s1 + $0x1d0] sm:$0xff]   ;;  %v3272_v63 = vld [vmem:[%s4250_s1 + $0x1c8] sm:$0xff]  }
  0x14   :  { %2881 = vmatpush3.bf16.msra.mxu0 %v3229_v18  ;;  %v3266_v57 = vld [vmem:[%s4250_s1 + $0x198] sm:$0xff]   ;;  %v3269_v60 = vld [vmem:[%s4250_s1 + $0x110] sm:$0xff]   ;;  %v3273_v0 = vld [vmem:[%s4250_s1 + $0x108] sm:$0xff]  }
  0x15   :  { %2903 = vmatpush3.bf16.msra.mxu1 %v3230_v19  ;;  %2882 = vmatprep.subr.bf16.mxu0 %v3231_v20  ;;  %v3270_v61 = vld [vmem:[%s4250_s1 + $0x190] sm:$0xff]   ;;  %v3274_v1 = vld [vmem:[%s4250_s1 + $0x188] sm:$0xff]   ;;  %v3275_v2 = vld [vmem:[%s4250_s1 + $0x140] sm:$0xff]  }
  0x16   :  { %2904 = vmatprep.subr.bf16.mxu1 %v3232_v21  ;;  %v3276_v3 = vld [vmem:[%s4250_s1 + $0x1c0] sm:$0xff]   ;;  %v23_v6 = vld [vmem:[%s4251_s0 + $0x10] sm:$0xff]  ;;  %v24_v9 = vld [vmem:[%s4251_s0 + $0x18] sm:$0xff] }
  0x17   :  { %v3277_v4 = vld [vmem:[%s4250_s1 + $0x100] sm:$0xff]   ;;  %v2615_v7 = vcombine.low %v23_v6, %v23_v6  ;;  %v2616_v8 = vcombine.high %v23_v6, %v23_v6  ;;  %v2617_v10 = vcombine.low %v24_v9, %v24_v9  ;;  %v2618_v11 = vcombine.high %v24_v9, %v24_v9  ;;  %v3283_v12 = vld [vmem:[%s4250_s1 + $0x278] sm:$0xff]   ;;  %v3287_v16 = vld [vmem:[%s4250_s1 + $0x270] sm:$0xff]  }
  0x18   :  { %2883 = vmatpush3.bf16.msra.mxu0 %v3233_v22  ;;  %v3278_v5 = vld [vmem:[%s4250_s1 + $0x180] sm:$0xff]   ;;  %v3284_v13 = vld [vmem:[%s4250_s1 + $0x2f8] sm:$0xff]   ;;  %v3288_v17 = vld [vmem:[%s4250_s1 + $0x2f0] sm:$0xff]  }
  0x19   :  { %2905 = vmatpush3.bf16.msra.mxu1 %v3234_v23  ;;  %2884 = vmatprep.subr.bf16.mxu0 %v3235_v24  ;;  %v3285_v14 = vld [vmem:[%s4250_s1 + $0x238] sm:$0xff]   ;;  %v3289_v18 = vld [vmem:[%s4250_s1 + $0x230] sm:$0xff]   ;;  %v3291_v20 = vld [vmem:[%s4250_s1 + $0x268] sm:$0xff]  }
  0x1a   :  { %2906 = vmatprep.subr.bf16.mxu1 %v3236_v25  ;;  %v3286_v15 = vld [vmem:[%s4250_s1 + $0x2b8] sm:$0xff]   ;;  %v3290_v19 = vld [vmem:[%s4250_s1 + $0x2b0] sm:$0xff]   ;;  %v3292_v21 = vld [vmem:[%s4250_s1 + $0x2e8] sm:$0xff]  }
  0x1b   :  { %v3293_v22 = vld [vmem:[%s4250_s1 + $0x228] sm:$0xff]   ;;  %v3295_v24 = vld [vmem:[%s4250_s1 + $0x260] sm:$0xff]   ;;  %v3303_v32 = vld [vmem:[%s4250_s1 + $0x250] sm:$0xff]  }
  0x1c   :  { %2885 = vmatpush3.bf16.msra.mxu0 %v3237_v26  ;;  %v3294_v23 = vld [vmem:[%s4250_s1 + $0x2a8] sm:$0xff]   ;;  %v3296_v25 = vld [vmem:[%s4250_s1 + $0x2e0] sm:$0xff]   ;;  %v3304_v33 = vld [vmem:[%s4250_s1 + $0x2d0] sm:$0xff]  }
  0x1d   :  { %2907 = vmatpush3.bf16.msra.mxu1 %v3238_v27  ;;  %2886 = vmatprep.subr.bf16.mxu0 %v3239_v28  ;;  %v3297_v26 = vld [vmem:[%s4250_s1 + $0x220] sm:$0xff]   ;;  %v3299_v28 = vld [vmem:[%s4250_s1 + $0x258] sm:$0xff]   ;;  %v3306_v35 = vld [vmem:[%s4250_s1 + $0x290] sm:$0xff]  }
  0x1e   :  { %2908 = vmatprep.subr.bf16.mxu1 %v3240_v29  ;;  %v3298_v27 = vld [vmem:[%s4250_s1 + $0x2a0] sm:$0xff]   ;;  %v3300_v29 = vld [vmem:[%s4250_s1 + $0x2d8] sm:$0xff]   ;;  %v3308_v37 = vld [vmem:[%s4250_s1 + $0x2c8] sm:$0xff]  }
  0x1f   :  { %v3339_v6 = vld [vmem:[%s4250_s1 + $0x350] sm:$0xff]  }
  0x20   :  { %2887 = vmatpush3.bf16.msra.mxu0 %v3241_v30  ;;  %v3301_v30 = vld [vmem:[%s4250_s1 + $0x218] sm:$0xff]   ;;  %v3342_v9 = vld [vmem:[%s4250_s1 + $0x390] sm:$0xff]  }
  0x21   :  { %2909 = vmatpush3.bf16.msra.mxu1 %v3242_v31  ;;  %2916 = vmatprep.subr.bf16.mxu0 %v3247_v38  ;;  %v3302_v31 = vld [vmem:[%s4250_s1 + $0x298] sm:$0xff]   ;;  %v3309_v38 = vld [vmem:[%s4250_s1 + $0x208] sm:$0xff]  }
  0x22   :  { %2938 = vmatprep.subr.bf16.mxu1 %v3248_v39  ;;  %v3310_v39 = vld [vmem:[%s4250_s1 + $0x288] sm:$0xff]  }
  0x23   :  { %1965 = vmatmul.mubr.bf16.vlgmr.msra.gmra.mxu0 %v2611_v34  ;;  %v3305_v34 = vld [vmem:[%s4250_s1 + $0x210] sm:$0xff]  }
  0x24   :  { %2005 = vmatmul.mubr.bf16.vlgmr.msra.gmra.mxu1 %v2613_v36  ;;  %2917 = vmatpush3.bf16.msra.mxu0 %v3249_v40  ;;  %v3307_v36 = vld [vmem:[%s4250_s1 + $0x248] sm:$0xff]   ;;  %v3311_v40 = vld [vmem:[%s4250_s1 + $0x240] sm:$0xff]  }
  0x25   :  { %2939 = vmatpush3.bf16.msra.mxu1 %v3250_v41  ;;  %2918 = vmatprep.subr.bf16.mxu0 %v3251_v42  ;;  %v3312_v41 = vld [vmem:[%s4250_s1 + $0x2c0] sm:$0xff]  }
  0x26   :  { %2940 = vmatprep.subr.bf16.mxu1 %v3252_v43  ;;  %2044 = vmatprep.mubr.bf16.mxu0 %v2616_v8  ;;  %v3313_v42 = vld [vmem:[%s4250_s1 + $0x200] sm:$0xff]   ;;  %v3341_v8 = vld [vmem:[%s4250_s1 + $0x310] sm:$0xff]  }
  0x27   :  { %2084 = vmatprep.mubr.bf16.mxu1 %v2618_v11  ;;  %v3314_v43 = vld [vmem:[%s4250_s1 + $0x280] sm:$0xff]   ;;  %v3344_v11 = vld [vmem:[%s4250_s1 + $0x3c8] sm:$0xff]  }
  0x28   :  { %2919 = vmatpush3.bf16.msra.mxu0 %v3253_v44  ;;  %v25_v44 = vld [vmem:[%s4251_s0 + $0x20] sm:$0xff] }
  0x29   :  { %2941 = vmatpush3.bf16.msra.mxu1 %v3254_v45  ;;  %2920 = vmatprep.subr.bf16.mxu0 %v3255_v46  ;;  %v26_v45 = vld [vmem:[%s4251_s0 + $0x28] sm:$0xff]  ;;  %v2619_v46 = vcombine.low %v25_v44, %v25_v44 }
  0x2a   :  { %2942 = vmatprep.subr.bf16.mxu1 %v3256_v47  ;;  %v2620_v47 = vcombine.high %v25_v44, %v25_v44  ;;  %v3375_v44 = vld [vmem:[%s4250_s1 + $0x450] sm:$0xff]  }
  0x2c   :  { %2921 = vmatpush3.bf16.msra.mxu0 %v3257_v48  ;;  %v2621_v48 = vcombine.low %v26_v45, %v26_v45 }
  0x2d   :  { %2943 = vmatpush3.bf16.msra.mxu1 %v3258_v49  ;;  %2922 = vmatprep.subr.bf16.mxu0 %v3259_v50  ;;  %v2622_v49 = vcombine.high %v26_v45, %v26_v45  ;;  %v3319_v50 = vld [vmem:[%s4250_s1 + $0x378] sm:$0xff]   ;;  %v3376_v45 = vld [vmem:[%s4250_s1 + $0x4d0] sm:$0xff]  }
  0x2e   :  { %2944 = vmatprep.subr.bf16.mxu1 %v3260_v51  ;;  %v3320_v51 = vld [vmem:[%s4250_s1 + $0x3f8] sm:$0xff]  }
  0x30   :  { %2923 = vmatpush3.bf16.msra.mxu0 %v3261_v52  ;;  %v3321_v52 = vld [vmem:[%s4250_s1 + $0x338] sm:$0xff]  }
  0x31   :  { %2945 = vmatpush3.bf16.msra.mxu1 %v3262_v53  ;;  %2924 = vmatprep.subr.bf16.mxu0 %v3263_v54  ;;  %v3322_v53 = vld [vmem:[%s4250_s1 + $0x3b8] sm:$0xff]   ;;  %v3323_v54 = vld [vmem:[%s4250_s1 + $0x370] sm:$0xff]  }
  0x32   :  { %2946 = vmatprep.subr.bf16.mxu1 %v3264_v55  ;;  %v3324_v55 = vld [vmem:[%s4250_s1 + $0x3f0] sm:$0xff]  }
  0x34   :  { %2925 = vmatpush3.bf16.msra.mxu0 %v3265_v56  ;;  %v3325_v56 = vld [vmem:[%s4250_s1 + $0x330] sm:$0xff]  }
  0x35   :  { %2947 = vmatpush3.bf16.msra.mxu1 %v3266_v57  ;;  %2926 = vmatprep.subr.bf16.mxu0 %v3267_v58  ;;  %v3326_v57 = vld [vmem:[%s4250_s1 + $0x3b0] sm:$0xff]   ;;  %v3327_v58 = vld [vmem:[%s4250_s1 + $0x368] sm:$0xff]  }
  0x36   :  { %2948 = vmatprep.subr.bf16.mxu1 %v3268_v59  ;;  %v3328_v59 = vld [vmem:[%s4250_s1 + $0x3e8] sm:$0xff]  }
  0x38   :  { %2927 = vmatpush3.bf16.msra.mxu0 %v3269_v60  ;;  %v3329_v60 = vld [vmem:[%s4250_s1 + $0x328] sm:$0xff]  }
  0x39   :  { %2949 = vmatpush3.bf16.msra.mxu1 %v3270_v61  ;;  %2928 = vmatprep.subr.bf16.mxu0 %v3271_v62  ;;  %v3330_v61 = vld [vmem:[%s4250_s1 + $0x3a8] sm:$0xff]   ;;  %v3331_v62 = vld [vmem:[%s4250_s1 + $0x360] sm:$0xff]  }
  0x3a   :  { %2950 = vmatprep.subr.bf16.mxu1 %v3272_v63  ;;  %v3332_v63 = vld [vmem:[%s4250_s1 + $0x3e0] sm:$0xff]  }
  0x3c   :  { %2929 = vmatpush3.bf16.msra.mxu0 %v3273_v0  ;;  %v3333_v0 = vld [vmem:[%s4250_s1 + $0x320] sm:$0xff]  }
  0x3d   :  { %2951 = vmatpush3.bf16.msra.mxu1 %v3274_v1  ;;  %2930 = vmatprep.subr.bf16.mxu0 %v3275_v2  ;;  %v3334_v1 = vld [vmem:[%s4250_s1 + $0x3a0] sm:$0xff]   ;;  %v3335_v2 = vld [vmem:[%s4250_s1 + $0x358] sm:$0xff]  }
  0x3e   :  { %2952 = vmatprep.subr.bf16.mxu1 %v3276_v3  ;;  %v3336_v3 = vld [vmem:[%s4250_s1 + $0x3d8] sm:$0xff]  }
  0x40   :  { %2931 = vmatpush3.bf16.msra.mxu0 %v3277_v4  ;;  %v3337_v4 = vld [vmem:[%s4250_s1 + $0x318] sm:$0xff]  }
  0x41   :  { %2953 = vmatpush3.bf16.msra.mxu1 %v3278_v5  ;;  %2960 = vmatprep.subr.bf16.mxu0 %v3283_v12  ;;  %v3338_v5 = vld [vmem:[%s4250_s1 + $0x398] sm:$0xff]   ;;  %v3345_v12 = vld [vmem:[%s4250_s1 + $0x308] sm:$0xff]  }
  0x42   :  { %2982 = vmatprep.subr.bf16.mxu1 %v3284_v13  ;;  %v3346_v13 = vld [vmem:[%s4250_s1 + $0x388] sm:$0xff]  }
  0x43   :  { %2045 = vmatmul.mubr.bf16.vlgmr.msra.gmra.mxu0 %v2615_v7  ;;  %v3340_v7 = vld [vmem:[%s4250_s1 + $0x3d0] sm:$0xff]  }
  0x44   :  { %2085 = vmatmul.mubr.bf16.vlgmr.msra.gmra.mxu1 %v2617_v10  ;;  %2961 = vmatpush3.bf16.msra.mxu0 %v3285_v14  ;;  %v3343_v10 = vld [vmem:[%s4250_s1 + $0x348] sm:$0xff]   ;;  %v3347_v14 = vld [vmem:[%s4250_s1 + $0x340] sm:$0xff]  }
  0x45   :  { %2983 = vmatpush3.bf16.msra.mxu1 %v3286_v15  ;;  %2962 = vmatprep.subr.bf16.mxu0 %v3287_v16  ;;  %v3348_v15 = vld [vmem:[%s4250_s1 + $0x3c0] sm:$0xff]  }
  0x46   :  { %2984 = vmatprep.subr.bf16.mxu1 %v3288_v17  ;;  %2124 = vmatprep.mubr.bf16.mxu0 %v2620_v47  ;;  %v3349_v16 = vld [vmem:[%s4250_s1 + $0x300] sm:$0xff]   ;;  %v3378_v47 = vld [vmem:[%s4250_s1 + $0x490] sm:$0xff]  }
  0x47   :  { %2164 = vmatprep.mubr.bf16.mxu1 %v2622_v49  ;;  %v3350_v17 = vld [vmem:[%s4250_s1 + $0x380] sm:$0xff]   ;;  %v3380_v49 = vld [vmem:[%s4250_s1 + $0x4c8] sm:$0xff]  }
  0x48   :  { %2963 = vmatpush3.bf16.msra.mxu0 %v3289_v18  ;;  %v27_v18 = vld [vmem:[%s4251_s0 + $0x30] sm:$0xff] }
  0x49   :  { %2985 = vmatpush3.bf16.msra.mxu1 %v3290_v19  ;;  %2964 = vmatprep.subr.bf16.mxu0 %v3291_v20  ;;  %v28_v19 = vld [vmem:[%s4251_s0 + $0x38] sm:$0xff]  ;;  %v2623_v20 = vcombine.low %v27_v18, %v27_v18 }
  0x4a   :  { %2986 = vmatprep.subr.bf16.mxu1 %v3292_v21  ;;  %v2624_v21 = vcombine.high %v27_v18, %v27_v18  ;;  %v3411_v18 = vld [vmem:[%s4250_s1 + $0x550] sm:$0xff]  }
  0x4c   :  { %2965 = vmatpush3.bf16.msra.mxu0 %v3293_v22  ;;  %v2625_v22 = vcombine.low %v28_v19, %v28_v19 }
  0x4d   :  { %2987 = vmatpush3.bf16.msra.mxu1 %v3294_v23  ;;  %2966 = vmatprep.subr.bf16.mxu0 %v3295_v24  ;;  %v3355_v23 = vld [vmem:[%s4250_s1 + $0x478] sm:$0xff]   ;;  %v2626_v24 = vcombine.high %v28_v19, %v28_v19  ;;  %v3412_v19 = vld [vmem:[%s4250_s1 + $0x5d0] sm:$0xff]  }
  0x4e   :  { %2988 = vmatprep.subr.bf16.mxu1 %v3296_v25  ;;  %v3356_v25 = vld [vmem:[%s4250_s1 + $0x4f8] sm:$0xff]  }
  0x50   :  { %2967 = vmatpush3.bf16.msra.mxu0 %v3297_v26  ;;  %v3357_v26 = vld [vmem:[%s4250_s1 + $0x438] sm:$0xff]  }
  0x51   :  { %2989 = vmatpush3.bf16.msra.mxu1 %v3298_v27  ;;  %2968 = vmatprep.subr.bf16.mxu0 %v3299_v28  ;;  %v3358_v27 = vld [vmem:[%s4250_s1 + $0x4b8] sm:$0xff]   ;;  %v3359_v28 = vld [vmem:[%s4250_s1 + $0x470] sm:$0xff]  }
  0x52   :  { %2990 = vmatprep.subr.bf16.mxu1 %v3300_v29  ;;  %v3360_v29 = vld [vmem:[%s4250_s1 + $0x4f0] sm:$0xff]  }
  0x54   :  { %2969 = vmatpush3.bf16.msra.mxu0 %v3301_v30  ;;  %v3361_v30 = vld [vmem:[%s4250_s1 + $0x430] sm:$0xff]  }
  0x55   :  { %2991 = vmatpush3.bf16.msra.mxu1 %v3302_v31  ;;  %2970 = vmatprep.subr.bf16.mxu0 %v3303_v32  ;;  %v3362_v31 = vld [vmem:[%s4250_s1 + $0x4b0] sm:$0xff]   ;;  %v3363_v32 = vld [vmem:[%s4250_s1 + $0x468] sm:$0xff]  }
  0x56   :  { %2992 = vmatprep.subr.bf16.mxu1 %v3304_v33  ;;  %v3364_v33 = vld [vmem:[%s4250_s1 + $0x4e8] sm:$0xff]  }
  0x58   :  { %2971 = vmatpush3.bf16.msra.mxu0 %v3305_v34  ;;  %v3365_v34 = vld [vmem:[%s4250_s1 + $0x428] sm:$0xff]  }
  0x59   :  { %2993 = vmatpush3.bf16.msra.mxu1 %v3306_v35  ;;  %2972 = vmatprep.subr.bf16.mxu0 %v3307_v36  ;;  %v3366_v35 = vld [vmem:[%s4250_s1 + $0x4a8] sm:$0xff]   ;;  %v3367_v36 = vld [vmem:[%s4250_s1 + $0x460] sm:$0xff]  }
  0x5a   :  { %2994 = vmatprep.subr.bf16.mxu1 %v3308_v37  ;;  %v3368_v37 = vld [vmem:[%s4250_s1 + $0x4e0] sm:$0xff]  }
  0x5c   :  { %2973 = vmatpush3.bf16.msra.mxu0 %v3309_v38  ;;  %v3369_v38 = vld [vmem:[%s4250_s1 + $0x420] sm:$0xff]  }
  0x5d   :  { %2995 = vmatpush3.bf16.msra.mxu1 %v3310_v39  ;;  %2974 = vmatprep.subr.bf16.mxu0 %v3311_v40  ;;  %v3370_v39 = vld [vmem:[%s4250_s1 + $0x4a0] sm:$0xff]   ;;  %v3371_v40 = vld [vmem:[%s4250_s1 + $0x458] sm:$0xff]  }
  0x5e   :  { %2996 = vmatprep.subr.bf16.mxu1 %v3312_v41  ;;  %v3372_v41 = vld [vmem:[%s4250_s1 + $0x4d8] sm:$0xff]  }
  0x60   :  { %2975 = vmatpush3.bf16.msra.mxu0 %v3313_v42  ;;  %v3373_v42 = vld [vmem:[%s4250_s1 + $0x418] sm:$0xff]  }
  0x61   :  { %2997 = vmatpush3.bf16.msra.mxu1 %v3314_v43  ;;  %3004 = vmatprep.subr.bf16.mxu0 %v3319_v50  ;;  %v3374_v43 = vld [vmem:[%s4250_s1 + $0x498] sm:$0xff]   ;;  %v3381_v50 = vld [vmem:[%s4250_s1 + $0x408] sm:$0xff]  }
  0x62   :  { %3026 = vmatprep.subr.bf16.mxu1 %v3320_v51  ;;  %v3382_v51 = vld [vmem:[%s4250_s1 + $0x488] sm:$0xff]  }
  0x63   :  { %2125 = vmatmul.mubr.bf16.vlgmr.msra.gmra.mxu0 %v2619_v46  ;;  %v3377_v46 = vld [vmem:[%s4250_s1 + $0x410] sm:$0xff]  }
  0x64   :  { %2165 = vmatmul.mubr.bf16.vlgmr.msra.gmra.mxu1 %v2621_v48  ;;  %3005 = vmatpush3.bf16.msra.mxu0 %v3321_v52  ;;  %v3379_v48 = vld [vmem:[%s4250_s1 + $0x448] sm:$0xff]   ;;  %v3383_v52 = vld [vmem:[%s4250_s1 + $0x440] sm:$0xff]  }
  0x65   :  { %3027 = vmatpush3.bf16.msra.mxu1 %v3322_v53  ;;  %3006 = vmatprep.subr.bf16.mxu0 %v3323_v54  ;;  %v3384_v53 = vld [vmem:[%s4250_s1 + $0x4c0] sm:$0xff]  }
  0x66   :  { %3028 = vmatprep.subr.bf16.mxu1 %v3324_v55  ;;  %2204 = vmatprep.mubr.bf16.mxu0 %v2624_v21  ;;  %v3385_v54 = vld [vmem:[%s4250_s1 + $0x400] sm:$0xff]   ;;  %v3414_v21 = vld [vmem:[%s4250_s1 + $0x590] sm:$0xff]  }
  0x67   :  { %2244 = vmatprep.mubr.bf16.mxu1 %v2626_v24  ;;  %v3386_v55 = vld [vmem:[%s4250_s1 + $0x480] sm:$0xff]   ;;  %v3417_v24 = vld [vmem:[%s4250_s1 + $0x508] sm:$0xff]  }
  0x68   :  { %3007 = vmatpush3.bf16.msra.mxu0 %v3325_v56  ;;  %v29_v56 = vld [vmem:[%s4251_s0 + $0x40] sm:$0xff] }
  0x69   :  { %3029 = vmatpush3.bf16.msra.mxu1 %v3326_v57  ;;  %3008 = vmatprep.subr.bf16.mxu0 %v3327_v58  ;;  %v2627_v57 = vcombine.low %v29_v56, %v29_v56  ;;  %v2628_v58 = vcombine.high %v29_v56, %v29_v56  ;;  %v3447_v56 = vld [vmem:[%s4250_s1 + $0x650] sm:$0xff]  }
  0x6a   :  { %3030 = vmatprep.subr.bf16.mxu1 %v3328_v59  ;;  %v30_v59 = vld [vmem:[%s4251_s0 + $0x48] sm:$0xff] }
  0x6c   :  { %3009 = vmatpush3.bf16.msra.mxu0 %v3329_v60  ;;  %v2629_v60 = vcombine.low %v30_v59, %v30_v59 }
  0x6d   :  { %3031 = vmatpush3.bf16.msra.mxu1 %v3330_v61  ;;  %3010 = vmatprep.subr.bf16.mxu0 %v3331_v62  ;;  %v2630_v61 = vcombine.high %v30_v59, %v30_v59  ;;  %v3391_v62 = vld [vmem:[%s4250_s1 + $0x578] sm:$0xff]   ;;  %v3450_v59 = vld [vmem:[%s4250_s1 + $0x690] sm:$0xff]  }
  0x6e   :  { %3032 = vmatprep.subr.bf16.mxu1 %v3332_v63  ;;  %v3392_v63 = vld [vmem:[%s4250_s1 + $0x5f8] sm:$0xff]  }
  0x70   :  { %3011 = vmatpush3.bf16.msra.mxu0 %v3333_v0  ;;  %v3393_v0 = vld [vmem:[%s4250_s1 + $0x538] sm:$0xff]  }
  0x71   :  { %3033 = vmatpush3.bf16.msra.mxu1 %v3334_v1  ;;  %3012 = vmatprep.subr.bf16.mxu0 %v3335_v2  ;;  %v3394_v1 = vld [vmem:[%s4250_s1 + $0x5b8] sm:$0xff]   ;;  %v3395_v2 = vld [vmem:[%s4250_s1 + $0x570] sm:$0xff]  }
  0x72   :  { %3034 = vmatprep.subr.bf16.mxu1 %v3336_v3  ;;  %v3396_v3 = vld [vmem:[%s4250_s1 + $0x5f0] sm:$0xff]  }
  0x74   :  { %3013 = vmatpush3.bf16.msra.mxu0 %v3337_v4  ;;  %v3397_v4 = vld [vmem:[%s4250_s1 + $0x530] sm:$0xff]  }
  0x75   :  { %3035 = vmatpush3.bf16.msra.mxu1 %v3338_v5  ;;  %3014 = vmatprep.subr.bf16.mxu0 %v3339_v6  ;;  %v3398_v5 = vld [vmem:[%s4250_s1 + $0x5b0] sm:$0xff]   ;;  %v3399_v6 = vld [vmem:[%s4250_s1 + $0x568] sm:$0xff]  }
  0x76   :  { %3036 = vmatprep.subr.bf16.mxu1 %v3340_v7  ;;  %v3400_v7 = vld [vmem:[%s4250_s1 + $0x5e8] sm:$0xff]  }
  0x78   :  { %3015 = vmatpush3.bf16.msra.mxu0 %v3341_v8  ;;  %v3401_v8 = vld [vmem:[%s4250_s1 + $0x528] sm:$0xff]  }
  0x79   :  { %3037 = vmatpush3.bf16.msra.mxu1 %v3342_v9  ;;  %3016 = vmatprep.subr.bf16.mxu0 %v3343_v10  ;;  %v3402_v9 = vld [vmem:[%s4250_s1 + $0x5a8] sm:$0xff]   ;;  %v3403_v10 = vld [vmem:[%s4250_s1 + $0x560] sm:$0xff]  }
  0x7a   :  { %3038 = vmatprep.subr.bf16.mxu1 %v3344_v11  ;;  %v3404_v11 = vld [vmem:[%s4250_s1 + $0x5e0] sm:$0xff]  }
  0x7c   :  { %3017 = vmatpush3.bf16.msra.mxu0 %v3345_v12  ;;  %v3405_v12 = vld [vmem:[%s4250_s1 + $0x520] sm:$0xff]  }
  0x7d   :  { %3039 = vmatpush3.bf16.msra.mxu1 %v3346_v13  ;;  %3018 = vmatprep.subr.bf16.mxu0 %v3347_v14  ;;  %v3406_v13 = vld [vmem:[%s4250_s1 + $0x5a0] sm:$0xff]   ;;  %v3407_v14 = vld [vmem:[%s4250_s1 + $0x558] sm:$0xff]  }
  0x7e   :  { %3040 = vmatprep.subr.bf16.mxu1 %v3348_v15  ;;  %v3408_v15 = vld [vmem:[%s4250_s1 + $0x5d8] sm:$0xff]  }
  0x80   :  { %3019 = vmatpush3.bf16.msra.mxu0 %v3349_v16  ;;  %v3409_v16 = vld [vmem:[%s4250_s1 + $0x518] sm:$0xff]  }
  0x81   :  { %3041 = vmatpush3.bf16.msra.mxu1 %v3350_v17  ;;  %3048 = vmatprep.subr.bf16.mxu0 %v3355_v23  ;;  %v3410_v17 = vld [vmem:[%s4250_s1 + $0x598] sm:$0xff]   ;;  %v3416_v23 = vld [vmem:[%s4250_s1 + $0x5c8] sm:$0xff]  }
  0x82   :  { %3070 = vmatprep.subr.bf16.mxu1 %v3356_v25  ;;  %v3418_v25 = vld [vmem:[%s4250_s1 + $0x588] sm:$0xff]  }
  0x83   :  { %2205 = vmatmul.mubr.bf16.vlgmr.msra.gmra.mxu0 %v2623_v20  ;;  %v3413_v20 = vld [vmem:[%s4250_s1 + $0x510] sm:$0xff]  }
  0x84   :  { %2245 = vmatmul.mubr.bf16.vlgmr.msra.gmra.mxu1 %v2625_v22  ;;  %3049 = vmatpush3.bf16.msra.mxu0 %v3357_v26  ;;  %v3415_v22 = vld [vmem:[%s4250_s1 + $0x548] sm:$0xff]   ;;  %v3419_v26 = vld [vmem:[%s4250_s1 + $0x540] sm:$0xff]  }
  0x85   :  { %3071 = vmatpush3.bf16.msra.mxu1 %v3358_v27  ;;  %3050 = vmatprep.subr.bf16.mxu0 %v3359_v28  ;;  %v3420_v27 = vld [vmem:[%s4250_s1 + $0x5c0] sm:$0xff]  }
  0x86   :  { %3072 = vmatprep.subr.bf16.mxu1 %v3360_v29  ;;  %2284 = vmatprep.mubr.bf16.mxu0 %v2628_v58  ;;  %v3421_v28 = vld [vmem:[%s4250_s1 + $0x500] sm:$0xff]   ;;  %v3449_v58 = vld [vmem:[%s4250_s1 + $0x610] sm:$0xff]  }
  0x87   :  { %2324 = vmatprep.mubr.bf16.mxu1 %v2630_v61  ;;  %v3422_v29 = vld [vmem:[%s4250_s1 + $0x580] sm:$0xff]   ;;  %v3452_v61 = vld [vmem:[%s4250_s1 + $0x6c8] sm:$0xff]  }
  0x88   :  { %3051 = vmatpush3.bf16.msra.mxu0 %v3361_v30  ;;  %v31_v30 = vld [vmem:[%s4251_s0 + $0x50] sm:$0xff] }
  0x89   :  { %3073 = vmatpush3.bf16.msra.mxu1 %v3362_v31  ;;  %3052 = vmatprep.subr.bf16.mxu0 %v3363_v32  ;;  %v32_v31 = vld [vmem:[%s4251_s0 + $0x58] sm:$0xff]  ;;  %v2631_v32 = vcombine.low %v31_v30, %v31_v30 }
  0x8a   :  { %3074 = vmatprep.subr.bf16.mxu1 %v3364_v33  ;;  %v2632_v33 = vcombine.high %v31_v30, %v31_v30 }
  0x8c   :  { %3053 = vmatpush3.bf16.msra.mxu0 %v3365_v34  ;;  %v2633_v34 = vcombine.low %v32_v31, %v32_v31 }
  0x8d   :  { %3075 = vmatpush3.bf16.msra.mxu1 %v3366_v35  ;;  %3054 = vmatprep.subr.bf16.mxu0 %v3367_v36  ;;  %v2634_v35 = vcombine.high %v32_v31, %v32_v31  ;;  %v3427_v36 = vld [vmem:[%s4250_s1 + $0x678] sm:$0xff]  }
  0x8e   :  { %3076 = vmatprep.subr.bf16.mxu1 %v3368_v37  ;;  %v3428_v37 = vld [vmem:[%s4250_s1 + $0x6f8] sm:$0xff]  }
  0x90   :  { %3055 = vmatpush3.bf16.msra.mxu0 %v3369_v38  ;;  %v3429_v38 = vld [vmem:[%s4250_s1 + $0x638] sm:$0xff]  }
  0x91   :  { %3077 = vmatpush3.bf16.msra.mxu1 %v3370_v39  ;;  %3056 = vmatprep.subr.bf16.mxu0 %v3371_v40  ;;  %v3430_v39 = vld [vmem:[%s4250_s1 + $0x6b8] sm:$0xff]   ;;  %v3431_v40 = vld [vmem:[%s4250_s1 + $0x670] sm:$0xff]  }
  0x92   :  { %3078 = vmatprep.subr.bf16.mxu1 %v3372_v41  ;;  %v3432_v41 = vld [vmem:[%s4250_s1 + $0x6f0] sm:$0xff]  }
  0x94   :  { %3057 = vmatpush3.bf16.msra.mxu0 %v3373_v42  ;;  %v3433_v42 = vld [vmem:[%s4250_s1 + $0x630] sm:$0xff]  }
  0x95   :  { %3079 = vmatpush3.bf16.msra.mxu1 %v3374_v43  ;;  %3058 = vmatprep.subr.bf16.mxu0 %v3375_v44  ;;  %v3434_v43 = vld [vmem:[%s4250_s1 + $0x6b0] sm:$0xff]   ;;  %v3435_v44 = vld [vmem:[%s4250_s1 + $0x668] sm:$0xff]  }
  0x96   :  { %3080 = vmatprep.subr.bf16.mxu1 %v3376_v45  ;;  %v3436_v45 = vld [vmem:[%s4250_s1 + $0x6e8] sm:$0xff]  }
  0x98   :  { %3059 = vmatpush3.bf16.msra.mxu0 %v3377_v46  ;;  %v3437_v46 = vld [vmem:[%s4250_s1 + $0x628] sm:$0xff]  }
  0x99   :  { %3081 = vmatpush3.bf16.msra.mxu1 %v3378_v47  ;;  %3060 = vmatprep.subr.bf16.mxu0 %v3379_v48  ;;  %v3438_v47 = vld [vmem:[%s4250_s1 + $0x6a8] sm:$0xff]   ;;  %v3439_v48 = vld [vmem:[%s4250_s1 + $0x660] sm:$0xff]  }
  0x9a   :  { %3082 = vmatprep.subr.bf16.mxu1 %v3380_v49  ;;  %v3440_v49 = vld [vmem:[%s4250_s1 + $0x6e0] sm:$0xff]  }
  0x9c   :  { %3061 = vmatpush3.bf16.msra.mxu0 %v3381_v50  ;;  %v3441_v50 = vld [vmem:[%s4250_s1 + $0x620] sm:$0xff]  }
  0x9d   :  { %3083 = vmatpush3.bf16.msra.mxu1 %v3382_v51  ;;  %3062 = vmatprep.subr.bf16.mxu0 %v3383_v52  ;;  %v3442_v51 = vld [vmem:[%s4250_s1 + $0x6a0] sm:$0xff]   ;;  %v3443_v52 = vld [vmem:[%s4250_s1 + $0x658] sm:$0xff]  }
  0x9e   :  { %3084 = vmatprep.subr.bf16.mxu1 %v3384_v53  ;;  %v3444_v53 = vld [vmem:[%s4250_s1 + $0x6d8] sm:$0xff]  }
  0xa0   :  { %3063 = vmatpush3.bf16.msra.mxu0 %v3385_v54  ;;  %v3445_v54 = vld [vmem:[%s4250_s1 + $0x618] sm:$0xff]  }
  0xa1   :  { %3085 = vmatpush3.bf16.msra.mxu1 %v3386_v55  ;;  %3092 = vmatprep.subr.bf16.mxu0 %v3391_v62  ;;  %v3446_v55 = vld [vmem:[%s4250_s1 + $0x698] sm:$0xff]   ;;  %v3453_v62 = vld [vmem:[%s4250_s1 + $0x608] sm:$0xff]  }
  0xa2   :  { %3114 = vmatprep.subr.bf16.mxu1 %v3392_v63  ;;  %v3454_v63 = vld [vmem:[%s4250_s1 + $0x688] sm:$0xff]  }
  0xa3   :  { %2285 = vmatmul.mubr.bf16.vlgmr.msra.gmra.mxu0 %v2627_v57  ;;  %v3448_v57 = vld [vmem:[%s4250_s1 + $0x6d0] sm:$0xff]  }
  0xa4   :  { %2325 = vmatmul.mubr.bf16.vlgmr.msra.gmra.mxu1 %v2629_v60  ;;  %3093 = vmatpush3.bf16.msra.mxu0 %v3393_v0  ;;  %v3451_v60 = vld [vmem:[%s4250_s1 + $0x648] sm:$0xff]   ;;  %v3455_v0 = vld [vmem:[%s4250_s1 + $0x640] sm:$0xff]  }
  0xa5   :  { %3115 = vmatpush3.bf16.msra.mxu1 %v3394_v1  ;;  %3094 = vmatprep.subr.bf16.mxu0 %v3395_v2  ;;  %v3456_v1 = vld [vmem:[%s4250_s1 + $0x6c0] sm:$0xff]  }
  0xa6   :  { %3116 = vmatprep.subr.bf16.mxu1 %v3396_v3  ;;  %2364 = vmatprep.mubr.bf16.mxu0 %v2632_v33  ;;  %v3457_v2 = vld [vmem:[%s4250_s1 + $0x600] sm:$0xff]  }
  0xa7   :  { %2404 = vmatprep.mubr.bf16.mxu1 %v2634_v35  ;;  %v3458_v3 = vld [vmem:[%s4250_s1 + $0x680] sm:$0xff]   ;;  %v3471_v35 = vmov 0.0  }
  0xa8   :  { %3095 = vmatpush3.bf16.msra.mxu0 %v3397_v4  ;;  %v33_v4 = vld [vmem:[%s4251_s0 + $0x60] sm:$0xff] }
  0xa9   :  { %3117 = vmatpush3.bf16.msra.mxu1 %v3398_v5  ;;  %3096 = vmatprep.subr.bf16.mxu0 %v3399_v6  ;;  %v34_v5 = vld [vmem:[%s4251_s0 + $0x68] sm:$0xff] }
  0xaa   :  { %3118 = vmatprep.subr.bf16.mxu1 %v3400_v7 }
  0xac   :  { %3097 = vmatpush3.bf16.msra.mxu0 %v3401_v8  ;;  %v2635_v8 = vcombine.low %v33_v4, %v33_v4 }
  0xad   :  { %3119 = vmatpush3.bf16.msra.mxu1 %v3402_v9  ;;  %3098 = vmatprep.subr.bf16.mxu0 %v3403_v10  ;;  %v2636_v9 = vcombine.high %v33_v4, %v33_v4  ;;  %v2637_v10 = vcombine.low %v34_v5, %v34_v5 }
  0xae   :  { %3120 = vmatprep.subr.bf16.mxu1 %v3404_v11  ;;  %v2638_v11 = vcombine.high %v34_v5, %v34_v5 }
  0xb0   :  { %3099 = vmatpush3.bf16.msra.mxu0 %v3405_v12  ;;  %v2610_v12 = vld [vmem:[%s4252_s2] ss:$0 sm:$0xff] }
  0xb1   :  { %3121 = vmatpush3.bf16.msra.mxu1 %v3406_v13  ;;  %3100 = vmatprep.subr.bf16.mxu0 %v3407_v14 }
  0xb2   :  { %3122 = vmatprep.subr.bf16.mxu1 %v3408_v15 }
  0xb4   :  { %3101 = vmatpush3.bf16.msra.mxu0 %v3409_v16 }
  0xb5   :  { %3123 = vmatpush3.bf16.msra.mxu1 %v3410_v17  ;;  %3102 = vmatprep.subr.bf16.mxu0 %v3411_v18 }
  0xb6   :  { %3124 = vmatprep.subr.bf16.mxu1 %v3412_v19 }
  0xb8   :  { %3103 = vmatpush3.bf16.msra.mxu0 %v3413_v20 }
  0xb9   :  { %3125 = vmatpush3.bf16.msra.mxu1 %v3414_v21  ;;  %3104 = vmatprep.subr.bf16.mxu0 %v3415_v22 }
  0xba   :  { %3126 = vmatprep.subr.bf16.mxu1 %v3416_v23 }
  0xbc   :  { %3105 = vmatpush3.bf16.msra.mxu0 %v3417_v24 }
  0xbd   :  { %3127 = vmatpush3.bf16.msra.mxu1 %v3418_v25  ;;  %3106 = vmatprep.subr.bf16.mxu0 %v3419_v26 }
  0xbe   :  { %3128 = vmatprep.subr.bf16.mxu1 %v3420_v27 }
  0xc0   :  { %3107 = vmatpush3.bf16.msra.mxu0 %v3421_v28 }
  0xc1   :  { %3129 = vmatpush3.bf16.msra.mxu1 %v3422_v29  ;;  %3136 = vmatprep.subr.bf16.mxu0 %v3427_v36  ;;  %v3463_v36 = vld [vmem:[%s4253_s3 + $0x38] sm:$0xff]  }
  0xc2   :  { %3158 = vmatprep.subr.bf16.mxu1 %v3428_v37  ;;  %v3464_v37 = vld [vmem:[%s4253_s3 + $0x30] sm:$0xff]  }
  0xc3   :  { %2365 = vmatmul.mubr.bf16.vlgmr.msra.gmra.mxu0 %v2631_v32 }
  0xc4   :  { %2405 = vmatmul.mubr.bf16.vlgmr.msra.gmra.mxu1 %v2633_v34  ;;  %3137 = vmatpush3.bf16.msra.mxu0 %v3429_v38  ;;  %v3465_v38 = vld [vmem:[%s4253_s3 + $0x28] sm:$0xff]  }
  0xc5   :  { %3159 = vmatpush3.bf16.msra.mxu1 %v3430_v39  ;;  %3138 = vmatprep.subr.bf16.mxu0 %v3431_v40  ;;  %v3466_v39 = vld [vmem:[%s4253_s3 + $0x20] sm:$0xff]   ;;  %v3467_v40 = vld [vmem:[%s4253_s3 + $0x18] sm:$0xff]  }
  0xc6   :  { %3160 = vmatprep.subr.bf16.mxu1 %v3432_v41  ;;  %2444 = vmatprep.mubr.bf16.mxu0 %v2636_v9 }
  0xc7   :  { %2484 = vmatprep.mubr.bf16.mxu1 %v2638_v11 }
  0xc8   :  { %3139 = vmatpush3.bf16.msra.mxu0 %v3433_v42 }
  0xc9   :  { %3161 = vmatpush3.bf16.msra.mxu1 %v3434_v43  ;;  %3140 = vmatprep.subr.bf16.mxu0 %v3435_v44 }
  0xca   :  { %3162 = vmatprep.subr.bf16.mxu1 %v3436_v45 }
  0xcc   :  { %3141 = vmatpush3.bf16.msra.mxu0 %v3437_v46 }
  0xcd   :  { %3163 = vmatpush3.bf16.msra.mxu1 %v3438_v47  ;;  %3142 = vmatprep.subr.bf16.mxu0 %v3439_v48  ;;  %v3468_v48 = vld [vmem:[%s4253_s3 + $0x10] sm:$0xff]  }
  0xce   :  { %3164 = vmatprep.subr.bf16.mxu1 %v3440_v49 }
  0xd0   :  { %3143 = vmatpush3.bf16.msra.mxu0 %v3441_v50 }
  0xd1   :  { %3165 = vmatpush3.bf16.msra.mxu1 %v3442_v51  ;;  %3144 = vmatprep.subr.bf16.mxu0 %v3443_v52 }
  0xd2   :  { %3166 = vmatprep.subr.bf16.mxu1 %v3444_v53 }
  0xd4   :  { %3145 = vmatpush3.bf16.msra.mxu0 %v3445_v54  ;;  %v3469_v54 = vld [vmem:[%s4253_s3 + $0x8] sm:$0xff]  }
  0xd5   :  { %3167 = vmatpush3.bf16.msra.mxu1 %v3446_v55  ;;  %3146 = vmatprep.subr.bf16.mxu0 %v3447_v56  ;;  %v3470_v55 = vld [vmem:[%s4253_s3] sm:$0xff]  }
  0xd6   :  { %3168 = vmatprep.subr.bf16.mxu1 %v3448_v57 }
  0xd8   :  { %3147 = vmatpush3.bf16.msra.mxu0 %v3449_v58 }
  0xd9   :  { %3169 = vmatpush3.bf16.msra.mxu1 %v3450_v59  ;;  %3148 = vmatprep.subr.bf16.mxu0 %v3451_v60 }
  0xda   :  { %3170 = vmatprep.subr.bf16.mxu1 %v3452_v61 }
  0xdc   :  { %3149 = vmatpush3.bf16.msra.mxu0 %v3453_v62 }
  0xdd   :  { %3171 = vmatpush3.bf16.msra.mxu1 %v3454_v63  ;;  %3150 = vmatprep.subr.bf16.mxu0 %v3455_v0 }
  0xde   :  { %3172 = vmatprep.subr.bf16.mxu1 %v3456_v1 }
  0xe0   :  { %3151 = vmatpush3.bf16.msra.mxu0 %v3457_v2 }
  0xe1   :  { %3173 = vmatpush3.bf16.msra.mxu1 %v3458_v3  ;;  %3189 = vmatprep.subr.bf16.mxu0 %v3471_v35 }
  0xe3   :  { %v2888_v6 = vpop.f32.mrf.mxu0  ;;  %2445 = vmatmul.mubr.bf16.vlgmr.msra.gmra.mxu0 %v2635_v8 }
  0xe4   :  { %v2910_v7 = vpop.f32.mrf.mxu1  ;;  %2485 = vmatmul.mubr.bf16.vlgmr.msra.gmra.mxu1 %v2637_v10  ;;  %3190 = vmatpush3.bf16.msra.mxu0 %v3463_v36 }
  0xe5   :  { %v2889_v13 = vpop.f32.mrf.mxu0  ;;  %3191 = vmatprep.subr.bf16.mxu0 %v3471_v35  ;;  %3205 = vmatprep.mubr.msk.bf16.mxu0 %vm3472_vm0, %v3471_v35 }
  0xe6   :  { %v2911_v14 = vpop.f32.mrf.mxu1  ;;  %v2890_v15 = vadd.f32 %v2889_v13, %v2888_v6 }
  0xe7   :  { %v2912_v16 = vadd.f32 %v2911_v14, %v2910_v7  ;;  %v2891_v17 = vpop.f32.mrf.mxu0 }
  0xe8   :  { %v2913_v18 = vpop.f32.mrf.mxu1  ;;  %v1967_v19 = vadd.f32 %v2890_v15, %v2610_v12  ;;  %3192 = vmatpush3.bf16.msra.mxu0 %v3464_v37 }
  0xe9   :  { %v2892_v20 = vpop.f32.mrf.mxu0  ;;  %3193 = vmatprep.subr.bf16.mxu0 %v3471_v35 }
  0xea   :  { %v2914_v21 = vpop.f32.mrf.mxu1  ;;  %v2007_v22 = vadd.f32 %v2912_v16, %v1967_v19 }
  0xec   :  { %3194 = vmatpush3.bf16.msra.mxu0 %v3465_v38 }
  0xed   :  { %3195 = vmatprep.subr.bf16.mxu0 %v3471_v35 }
  0xf0   :  { %3196 = vmatpush3.bf16.msra.mxu0 %v3466_v39 }
  0xf1   :  { %3197 = vmatprep.subr.bf16.mxu0 %v3471_v35 }
  0xf4   :  { %3198 = vmatpush3.bf16.msra.mxu0 %v3467_v40 }
  0xf5   :  { %3199 = vmatprep.subr.bf16.mxu0 %v3471_v35 }
  0xf8   :  { %3200 = vmatpush3.bf16.msra.mxu0 %v3468_v48 }
  0xf9   :  { %3201 = vmatprep.subr.bf16.mxu0 %v3471_v35 }
  0xfc   :  { %3202 = vmatpush3.bf16.msra.mxu0 %v3469_v54 }
  0xfd   :  { %3203 = vmatprep.subr.bf16.mxu0 %v3471_v35 }
 0x100   :  { %3204 = vmatpush3.bf16.msra.mxu0 %v3470_v55 }
 0x103   :  { %v2932_v23 = vpop.f32.mrf.mxu0 }
 0x104   :  { %v2954_v24 = vpop.f32.mrf.mxu1 }
 0x105   :  { %v2933_v25 = vpop.f32.mrf.mxu0 }
 0x106   :  { %v2955_v26 = vpop.f32.mrf.mxu1  ;;  %v2934_v27 = vadd.f32 %v2933_v25, %v2932_v23 }
 0x107   :  { %v2956_v28 = vadd.f32 %v2955_v26, %v2954_v24  ;;  %v2935_v29 = vpop.f32.mrf.mxu0 }
 0x108   :  { %v2957_v30 = vpop.f32.mrf.mxu1  ;;  %v2047_v31 = vadd.f32 %v2934_v27, %v2007_v22 }
 0x109   :  { %v2936_v32 = vpop.f32.mrf.mxu0 }
 0x10a   :  { %v2958_v33 = vpop.f32.mrf.mxu1  ;;  %v2087_v34 = vadd.f32 %v2956_v28, %v2047_v31 }
 0x123   :  { %v2976_v41 = vpop.f32.mrf.mxu0 }
 0x124   :  { %v2998_v42 = vpop.f32.mrf.mxu1 }
 0x125   :  { %v2977_v43 = vpop.f32.mrf.mxu0 }
 0x126   :  { %v2978_v44 = vadd.f32 %v2977_v43, %v2976_v41  ;;  %v2999_v45 = vpop.f32.mrf.mxu1 }
 0x127   :  { %v3000_v46 = vadd.f32 %v2999_v45, %v2998_v42  ;;  %v2979_v47 = vpop.f32.mrf.mxu0  ;;  %v2863_v42 = vld [vmem:[%s4254_s4] ss:$0 sm:$0xff] }
 0x128   :  { %v2127_v49 = vadd.f32 %v2978_v44, %v2087_v34  ;;  %v3001_v50 = vpop.f32.mrf.mxu1 }
 0x129   :  { %v2980_v51 = vpop.f32.mrf.mxu0 }
 0x12a   :  { %v2167_v52 = vadd.f32 %v3000_v46, %v2127_v49  ;;  %v3002_v53 = vpop.f32.mrf.mxu1 }
 0x143   :  { %v3020_v56 = vpop.f32.mrf.mxu0 }
 0x144   :  { %v3042_v57 = vpop.f32.mrf.mxu1 }
 0x145   :  { %v3021_v58 = vpop.f32.mrf.mxu0 }
 0x146   :  { %v3022_v59 = vadd.f32 %v3021_v58, %v3020_v56  ;;  %v3043_v60 = vpop.f32.mrf.mxu1 }
 0x147   :  { %v3044_v61 = vadd.f32 %v3043_v60, %v3042_v57  ;;  %v3023_v62 = vpop.f32.mrf.mxu0 }
 0x148   :  { %v2207_v63 = vadd.f32 %v3022_v59, %v2167_v52  ;;  %v3045_v0 = vpop.f32.mrf.mxu1 }
 0x149   :  { %v3024_v1 = vpop.f32.mrf.mxu0 }
 0x14a   :  { %v2247_v2 = vadd.f32 %v3044_v61, %v2207_v63  ;;  %v3046_v3 = vpop.f32.mrf.mxu1 }
 0x163   :  { %v3064_v4 = vpop.f32.mrf.mxu0 }
 0x164   :  { %v3086_v5 = vpop.f32.mrf.mxu1 }
 0x165   :  { %v3065_v6 = vpop.f32.mrf.mxu0 }
 0x166   :  { %v3087_v7 = vpop.f32.mrf.mxu1  ;;  %v3066_v20 = vadd.f32 %v3065_v6, %v3064_v4 }
 0x167   :  { %v3067_v8 = vpop.f32.mrf.mxu0  ;;  %v3088_v22 = vadd.f32 %v3087_v7, %v3086_v5 }
 0x168   :  { %v3089_v9 = vpop.f32.mrf.mxu1  ;;  %v2287_v21 = vadd.f32 %v3066_v20, %v2247_v2 }
 0x169   :  { %v3068_v10 = vpop.f32.mrf.mxu0 }
 0x16a   :  { %v3090_v11 = vpop.f32.mrf.mxu1  ;;  %v2327_v24 = vadd.f32 %v3088_v22, %v2287_v21 }
 0x183   :  { %v3108_v12 = vpop.f32.mrf.mxu0 }
 0x184   :  { %v3130_v13 = vpop.f32.mrf.mxu1 }
 0x185   :  { %v3109_v14 = vpop.f32.mrf.mxu0 }
 0x186   :  { %v3131_v15 = vpop.f32.mrf.mxu1  ;;  %v3110_v23 = vadd.f32 %v3109_v14, %v3108_v12 }
 0x187   :  { %v3111_v16 = vpop.f32.mrf.mxu0  ;;  %v3132_v26 = vadd.f32 %v3131_v15, %v3130_v13 }
 0x188   :  { %v3133_v17 = vpop.f32.mrf.mxu1  ;;  %v2367_v25 = vadd.f32 %v3110_v23, %v2327_v24 }
 0x189   :  { %v3112_v18 = vpop.f32.mrf.mxu0 }
 0x18a   :  { %v3134_v19 = vpop.f32.mrf.mxu1  ;;  %v2407_v30 = vadd.f32 %v3132_v26, %v2367_v25 }
 0x1a3   :  { %v3152_v27 = vpop.f32.mrf.mxu0 }
 0x1a4   :  { %v3174_v28 = vpop.f32.mrf.mxu1 }
 0x1a5   :  { %v3153_v29 = vpop.f32.mrf.mxu0 }
 0x1a6   :  { %v3154_v31 = vadd.f32 %v3153_v29, %v3152_v27  ;;  %v3175_v32 = vpop.f32.mrf.mxu1 }
 0x1a7   :  { %v3155_v33 = vpop.f32.mrf.mxu0  ;;  %v3176_v35 = vadd.f32 %v3175_v32, %v3174_v28 }
 0x1a8   :  { %v2447_v34 = vadd.f32 %v3154_v31, %v2407_v30  ;;  %v3177_v36 = vpop.f32.mrf.mxu1 }
 0x1a9   :  { %v3156_v37 = vpop.f32.mrf.mxu0 }
 0x1aa   :  { %v2487_v38 = vadd.f32 %v3176_v35, %v2447_v34  ;;  %v3178_v39 = vpop.f32.mrf.mxu1 }
 0x1ac   :  { %v2492_v40 = vmax.f32 %v2487_v38, 0.0 }
 0x1ae   :  { %v2493_v41 = vpack.c.bf16 %v2492_v40, %v2492_v40 }
 0x1b0   :  { %3206 = vmatmul.mubr.bf16.vlgmr.msra.gmra.mxu0 %v2493_v41 }
 0x270   :  { %v2599_v43 = vpop.f32.mrf.mxu0 }
 0x271   :  { %v2600_v44 = vadd.f32 %v2863_v42, %v2599_v43 }
 0x272   :  { %v3207_v45 = vpop.f32.mrf.mxu0 }
 0x273   :  { %2605 = vst [vmem:[%s4255_s5] sm:$0xff] %v2600_v44 }
 0x274   :  { %v2602_v46 = vpop.f32.mrf.mxu0 }
 0x276   :  { %v3208_v47 = vpop.f32.mrf.mxu0 }

</bundles_post_ra>
